<compile_context>
chip_gen: v6e
topology: v6e:2x2x1
jax: 0.10.0
libtpu: 0.0.40
codegen_flags: <defaults>
</compile_context>

<pallas_src>
import functools
import math

import numpy as np
import jax
import jax.numpy as jnp
from jax.experimental import pallas as pl
from jax.experimental.pallas import tpu as pltpu


# --------------------- banded / block-diagonal weight prep ---------------------

def _col_sel(KW, Win, Wout, stride=1):
    """S[dx, w_in, w_out] = 1 iff w_in == stride*w_out + dx - KW//2 (in range)."""
    S = np.zeros((KW, Win, Wout), np.float32)
    p = KW // 2
    for dx in range(KW):
        for wo in range(Wout):
            wi = stride * wo + dx - p
            if 0 <= wi < Win:
                S[dx, wi, wo] = 1.0
    return jnp.asarray(S)


def _banded(w, Win, Wout, stride=1):
    """(KH,KW,Cin,Cout) conv weight -> (KH, Win*Cin, Wout*Cout) banded bf16.

    Column taps (dx) and column stride are folded into the band so the conv
    becomes KH matmuls over row-shifted (rows, Win*Cin) slabs.
    """
    KH, KW, Cin, Cout = w.shape
    S = _col_sel(KW, Win, Wout, stride)
    band = jnp.einsum("xio,yxcz->yicoz", S, w)
    return band.reshape(KH, Win * Cin, Wout * Cout).astype(jnp.bfloat16)


def _banded_dw(dw, W):
    """Depthwise (K,K,C) kernel -> (K, W*C, W*C) banded bf16 (diag channel blocks)."""
    K, _, C = dw.shape
    S = _col_sel(K, W, W, 1)
    band = jnp.einsum("xio,yxc,cz->yicoz", S, dw, jnp.eye(C, dtype=dw.dtype))
    return band.reshape(K, W * C, W * C).astype(jnp.bfloat16)


def _up_weights(w, W2, W):
    """Fused nearest-x2 upsample + 3x3 conv weights.

    w: (3,3,Cin,Cout) acting on the x2-upsampled grid.  Returns
    (w_upE, w_upO), each (2, W2*Cin, W*Cout) bf16 such that
      out_even[m] = hd[m-1] @ w_upE[0] + hd[m]   @ w_upE[1]   (output row 2m)
      out_odd[m]  = hd[m]   @ w_upO[0] + hd[m+1] @ w_upO[1]   (output row 2m+1)
    with out-of-range hd rows treated as zero.
    """
    KH, KW, Cin, Cout = w.shape
    S = np.zeros((KW, W2, W), np.float32)
    p = KW // 2
    for dx in range(KW):
        for wo in range(W):
            wu = wo + dx - p                     # column on the upsampled grid
            if 0 <= wu < W:
                S[dx, wu // 2, wo] = 1.0         # coarse source column
    S = jnp.asarray(S)

    def mk(wk):                                  # wk: (KW, Cin, Cout)
        return jnp.einsum("xio,xcz->icoz", S, wk).reshape(W2 * Cin, W * Cout)

    w_e = jnp.stack([mk(w[0]), mk(w[1] + w[2])])
    w_o = jnp.stack([mk(w[0] + w[1]), mk(w[2])])
    return w_e.astype(jnp.bfloat16), w_o.astype(jnp.bfloat16)


# ------------------------------- Pallas kernel -------------------------------

def _fwd_kernel(x_ref, w_in_ref, b_in_ref,
                w_e1_ref, bt_e1_ref, w_e2_ref, b_e2_ref,
                w_dn_ref, b_dn_ref,
                w_m1_ref, bt_m1_ref, w_m2_ref, b_m2_ref,
                w_upE_ref, w_upO_ref, b_up_ref,
                w_fu_h_ref, w_fu_s_ref, b_fu_ref,
                w_out_ref, b_out_ref,
                w_dw_ref, b_dw_ref,
                m_ln_ref, g_ln_ref, be_ln_ref,
                p1_ref, b1_ref, p2_ref, b2_ref,
                o_ref, *, H, H2, R):
    f32 = jnp.float32

    def gelu(v):
        # TODO(synk): tanh-approx GELU; PyTorch nn.GELU default is exact erf.
        return jax.nn.gelu(v, approximate=True)

    def fdot(a, b):
        return jnp.dot(a, b, preferred_element_type=f32)

    def band_conv(xf, w, rows):
        """'same' conv as K banded MXU matmuls.  xf: (rows, Lin) f32,
        w: (K, Lin, Lout) banded bf16.  Halo is a zero-row concat in VMEM."""
        K = w.shape[0]
        ph = K // 2
        zr = jnp.zeros((ph, xf.shape[1]), jnp.bfloat16)
        xp = jnp.concatenate([zr, xf.astype(jnp.bfloat16), zr], axis=0)
        acc = jnp.zeros((rows, w.shape[2]), f32)
        for dy in range(K):
            acc = acc + fdot(xp[dy:dy + rows, :], w[dy])
        return acc

    x = x_ref[0].astype(f32)                                   # (H, W*inCh)

    # ---------------- conv_in ----------------
    h = band_conv(x, w_in_ref[...], H) + b_in_ref[...]

    # ---------------- encoder res blocks (time conditioned) ----------------
    w_e1 = w_e1_ref[...]
    w_e2 = w_e2_ref[...]
    bt_e1 = bt_e1_ref[0]
    b_e2 = b_e2_ref[...]
    for r in range(R):
        h1 = band_conv(gelu(h), w_e1[r], H) + bt_e1[r:r + 1]
        h = band_conv(gelu(h1), w_e2[r], H) + b_e2[r:r + 1] + h
    skip = h

    # ---------------- stride-2 down conv ----------------
    # Column stride is folded into the banded weight; even output rows are
    # picked with a tiny 0/1 selection matmul (no strided slices).
    full = band_conv(h, w_dn_ref[...], H)                      # (H, W2*C2)
    mi = jax.lax.broadcasted_iota(jnp.int32, (H2, H), 0)
    hi = jax.lax.broadcasted_iota(jnp.int32, (H2, H), 1)
    sel_even = (hi == 2 * mi).astype(f32)
    hd = gelu(fdot(sel_even, full) + b_dn_ref[...])            # (H2, W2*C2)

    # ---------------- middle res block ----------------
    hd1 = band_conv(gelu(hd), w_m1_ref[...], H2) + bt_m1_ref[0]
    hd = band_conv(gelu(hd1), w_m2_ref[...], H2) + b_m2_ref[...] + hd

    # -------------- fused nearest-x2 upsample + 3x3 conv --------------
    hdb = hd.astype(jnp.bfloat16)
    zr = jnp.zeros((1, hdb.shape[1]), jnp.bfloat16)
    hd_top = jnp.concatenate([zr, hdb], axis=0)                # hd_top[m] = hd[m-1]
    hd_bot = jnp.concatenate([hdb, zr], axis=0)                # hd_bot[m] = hd[m]
    w_upE = w_upE_ref[...]
    w_upO = w_upO_ref[...]
    out_even = fdot(hd_top[0:H2], w_upE[0]) + fdot(hd_top[1:H2 + 1], w_upE[1])
    out_odd = fdot(hdb, w_upO[0]) + fdot(hd_bot[1:H2 + 1], w_upO[1])
    hh = jax.lax.broadcasted_iota(jnp.int32, (H, H2), 0)
    mm = jax.lax.broadcasted_iota(jnp.int32, (H, H2), 1)
    r_even = (hh == 2 * mm).astype(f32)
    r_odd = (hh == 2 * mm + 1).astype(f32)
    hu = gelu(fdot(r_even, out_even) + fdot(r_odd, out_odd) + b_up_ref[...])

    # --------- skip fusion conv: channel concat == sum of two banded convs ---------
    h = gelu(band_conv(hu, w_fu_h_ref[...], H)
             + band_conv(skip, w_fu_s_ref[...], H) + b_fu_ref[...])

    # ---------------- output conv: lanes = w*(2*inCh) + c ----------------
    z = band_conv(h, w_out_ref[...], H) + b_out_ref[...]

    # ---------- both ConvNeXt heads fused (c<inCh -> out_var, c>=inCh -> out_mean) ----------
    dw = band_conv(z, w_dw_ref[...], H) + b_dw_ref[...]        # 7x7 depthwise
    m_ln = m_ln_ref[...]
    mu = fdot(dw, m_ln)                                        # per-(w,head) mean
    d = dw - mu
    var = fdot(d * d, m_ln)                                    # per-(w,head) variance
    hn = d * jax.lax.rsqrt(var + 1e-6) * g_ln_ref[...] + be_ln_ref[...]
    e1 = gelu(fdot(hn.astype(jnp.bfloat16), p1_ref[...]) + b1_ref[...])
    e2 = fdot(e1.astype(jnp.bfloat16), p2_ref[...]) + b2_ref[...]
    o_ref[0] = (z + e2).astype(o_ref.dtype)


# ------------------------------- model pieces -------------------------------

def positional_encoding(t, dim):
    half = dim // 2
    freqs = jnp.exp(jnp.arange(half, dtype=jnp.float32)
                    * -(math.log(10000.0) / (half - 1)))
    args = t.astype(jnp.float32)[:, None] * freqs[None, :]
    return jnp.concatenate([jnp.sin(args), jnp.cos(args)], axis=-1)


def init_params(key, inCh, embCh, chMult, t_dim, num_res_blocks):
    C1 = embCh
    C2 = embCh * chMult
    ks = iter(jax.random.split(key, 64))

    def conv_w(k, kh, kw, ci, co):
        return jax.random.normal(k, (kh, kw, ci, co), jnp.float32) / math.sqrt(kh * kw * ci)

    def lin_w(k, ci, co):
        return jax.random.normal(k, (ci, co), jnp.float32) / math.sqrt(ci)

    def resblock_p(c, tdim):
        return {
            "c1_w": conv_w(next(ks), 3, 3, c, c), "c1_b": jnp.zeros((c,), jnp.float32),
            "t_w": lin_w(next(ks), tdim, c),      "t_b": jnp.zeros((c,), jnp.float32),
            "c2_w": conv_w(next(ks), 3, 3, c, c), "c2_b": jnp.zeros((c,), jnp.float32),
        }

    def convnext_p(c):
        return {
            "dw_w": jax.random.normal(next(ks), (7, 7, c), jnp.float32) / 7.0,
            "dw_b": jnp.zeros((c,), jnp.float32),
            "ln_g": jnp.ones((c,), jnp.float32), "ln_b": jnp.zeros((c,), jnp.float32),
            "pw1_w": lin_w(next(ks), c, 4 * c), "pw1_b": jnp.zeros((4 * c,), jnp.float32),
            "pw2_w": lin_w(next(ks), 4 * c, c), "pw2_b": jnp.zeros((c,), jnp.float32),
        }

    return {
        "t_lin_w": lin_w(next(ks), t_dim, C1), "t_lin_b": jnp.zeros((C1,), jnp.float32),
        "conv_in_w": conv_w(next(ks), 3, 3, inCh, C1), "conv_in_b": jnp.zeros((C1,), jnp.float32),
        "enc": [resblock_p(C1, C1) for _ in range(num_res_blocks)],
        "down_w": conv_w(next(ks), 3, 3, C1, C2), "down_b": jnp.zeros((C2,), jnp.float32),
        "mid": resblock_p(C2, C1),
        "up_w": conv_w(next(ks), 3, 3, C2, C1), "up_b": jnp.zeros((C1,), jnp.float32),
        "fuse_w": conv_w(next(ks), 3, 3, 2 * C1, C1), "fuse_b": jnp.zeros((C1,), jnp.float32),
        "out_w": conv_w(next(ks), 3, 3, C1, 2 * inCh), "out_b": jnp.zeros((2 * inCh,), jnp.float32),
        "out_mean": convnext_p(inCh),   # convNext(inCh, inCh) on the noise head
        "out_var": convnext_p(inCh),    # convNext(inCh, inCh) on the v head
    }


def diff_model_forward(params, x_nchw, t, *, inCh, t_dim):
    """Mirrors diff_model.forward: returns (noise, v), both NCHW (B, inCh, H, W)."""
    B, Cx, H, W = x_nchw.shape
    assert Cx == inCh and H % 2 == 0 and W % 2 == 0
    H2, W2 = H // 2, W // 2
    C1 = params["conv_in_w"].shape[-1]
    C2 = params["down_w"].shape[-1]
    Cz = 2 * inCh
    hid = 4 * inCh
    R = len(params["enc"])
    WC1, W2C2, WCz, WEz = W * C1, W2 * C2, W * Cz, W * 2 * hid

    gelu = lambda v: jax.nn.gelu(v, approximate=True)

    # ---- time embedding + MLP (tiny; plain XLA on purpose) ----
    temb = positional_encoding(t, t_dim)
    temb = gelu(temb @ params["t_lin_w"] + params["t_lin_b"])          # (B, C1)

    # ---- lane-dense layout plumbing (wrapper side only) ----
    x_l = jnp.transpose(x_nchw, (0, 2, 3, 1)).reshape(B, H, W * inCh).astype(jnp.float32)

    def tl(v, reps):                       # tile a per-channel vector over w (lane = w*C + c)
        return jnp.tile(v, reps)

    # ---- banded / block-diagonal weights (one small einsum each) ----
    w_in = _banded(params["conv_in_w"], W, W)
    b_in = tl(params["conv_in_b"], W).reshape(1, WC1)

    w_e1 = jnp.stack([_banded(p["c1_w"], W, W) for p in params["enc"]])
    w_e2 = jnp.stack([_banded(p["c2_w"], W, W) for p in params["enc"]])
    bt_e1 = jnp.stack([jnp.tile(temb @ p["t_w"] + p["t_b"] + p["c1_b"], (1, W))
                       for p in params["enc"]], axis=1)                # (B, R, WC1)
    b_e2 = jnp.stack([tl(p["c2_b"], W) for p in params["enc"]])        # (R, WC1)

    w_dn = _banded(params["down_w"], W, W2, stride=2)
    b_dn = tl(params["down_b"], W2).reshape(1, W2C2)

    mid = params["mid"]
    w_m1 = _banded(mid["c1_w"], W2, W2)
    w_m2 = _banded(mid["c2_w"], W2, W2)
    bt_m1 = jnp.tile(temb @ mid["t_w"] + mid["t_b"] + mid["c1_b"],
                     (1, W2)).reshape(B, 1, W2C2)
    b_m2 = tl(mid["c2_b"], W2).reshape(1, W2C2)

    w_upE, w_upO = _up_weights(params["up_w"], W2, W)
    b_up = tl(params["up_b"], W).reshape(1, WC1)

    fw = params["fuse_w"]
    w_fu_h = _banded(fw[:, :, :C1, :], W, W)
    w_fu_s = _banded(fw[:, :, C1:, :], W, W)
    b_fu = tl(params["fuse_b"], W).reshape(1, WC1)

    w_out = _banded(params["out_w"], W, W)
    b_out = tl(params["out_b"], W).reshape(1, WCz)

    # ---- both ConvNeXt heads: head 0 = out_var (v = c<inCh), head 1 = out_mean ----
    pv, pm = params["out_var"], params["out_mean"]
    dw_comb = jnp.concatenate([pv["dw_w"], pm["dw_w"]], axis=-1)       # (7, 7, Cz)
    w_dw = _banded_dw(dw_comb, W)
    b_dw = tl(jnp.concatenate([pv["dw_b"], pm["dw_b"]]), W).reshape(1, WCz)
    m_ln = jnp.asarray(np.kron(np.eye(2 * W, dtype=np.float32),
                               np.ones((inCh, inCh), np.float32) / inCh))
    g_ln = tl(jnp.concatenate([pv["ln_g"], pm["ln_g"]]), W).reshape(1, WCz)
    be_ln = tl(jnp.concatenate([pv["ln_b"], pm["ln_b"]]), W).reshape(1, WCz)
    eye_w = jnp.eye(W, dtype=jnp.float32)
    eye_h = jnp.eye(2, dtype=jnp.float32)
    w1h = jnp.stack([pv["pw1_w"], pm["pw1_w"]])                        # (2, inCh, hid)
    p1 = jnp.einsum("wv,hg,hce->whcvge", eye_w, eye_h, w1h
                    ).reshape(WCz, WEz).astype(jnp.bfloat16)
    b1 = tl(jnp.concatenate([pv["pw1_b"], pm["pw1_b"]]), W).reshape(1, WEz)
    w2h = jnp.stack([pv["pw2_w"], pm["pw2_w"]])                        # (2, hid, inCh)
    p2 = jnp.einsum("wv,hg,hec->whevgc", eye_w, eye_h, w2h
                    ).reshape(WEz, WCz).astype(jnp.bfloat16)
    b2 = tl(jnp.concatenate([pv["pw2_b"], pm["pw2_b"]]), W).reshape(1, WCz)

    inputs = [x_l, w_in, b_in, w_e1, bt_e1, w_e2, b_e2, w_dn, b_dn,
              w_m1, bt_m1, w_m2, b_m2, w_upE, w_upO, b_up,
              w_fu_h, w_fu_s, b_fu, w_out, b_out,
              w_dw, b_dw, m_ln, g_ln, be_ln, p1, b1, p2, b2]

    def _rep(a):
        nd = a.ndim
        return pl.BlockSpec(a.shape, lambda b, _n=nd: (0,) * _n)

    in_specs = [
        pl.BlockSpec((1, H, W * inCh), lambda b: (b, 0, 0)),   # x (per batch)
        _rep(w_in), _rep(b_in),
        _rep(w_e1),
        pl.BlockSpec((1, R, WC1), lambda b: (b, 0, 0)),        # bias+temb (per batch)
        _rep(w_e2), _rep(b_e2),
        _rep(w_dn), _rep(b_dn),
        _rep(w_m1),
        pl.BlockSpec((1, 1, W2C2), lambda b: (b, 0, 0)),       # bias+temb (per batch)
        _rep(w_m2), _rep(b_m2),
        _rep(w_upE), _rep(w_upO), _rep(b_up),
        _rep(w_fu_h), _rep(w_fu_s), _rep(b_fu),
        _rep(w_out), _rep(b_out),
        _rep(w_dw), _rep(b_dw),
        _rep(m_ln), _rep(g_ln), _rep(be_ln),
        _rep(p1), _rep(b1), _rep(p2), _rep(b2),
    ]

    kernel = functools.partial(_fwd_kernel, H=H, H2=H2, R=R)
    out = pl.pallas_call(
        kernel,
        out_shape=jax.ShapeDtypeStruct((B, H, WCz), jnp.float32),
        grid=(B,),
        in_specs=in_specs,
        out_specs=pl.BlockSpec((1, H, WCz), lambda b: (b, 0, 0)),
        compiler_params=pltpu.CompilerParams(dimension_semantics=("parallel",)),
    )(*inputs)

    # ---- wrapper-side layout plumbing back to NCHW + channel split ----
    out = out.reshape(B, H, W, Cz)
    v = out[..., :inCh]          # out[:, :inCh]  -> v      (out_var head, head 0)
    noise = out[..., inCh:]      # out[:, inCh:]  -> noise  (out_mean head, head 1)
    return (jnp.transpose(noise, (0, 3, 1, 2)),
            jnp.transpose(v, (0, 3, 1, 2)))


if __name__ == "__main__":
    # Small config consistent with diff_model.__init__ signature.
    inCh, embCh, chMult, num_heads, num_res_blocks, t_dim = 4, 8, 2, 1, 1, 32
    B, H, W = 2, 16, 16

    key = jax.random.PRNGKey(0)
    kx, kp = jax.random.split(key)
    x = jax.random.normal(kx, (B, inCh, H, W), jnp.float32)     # NCHW, like PyTorch
    params = init_params(kp, inCh, embCh, chMult, t_dim, num_res_blocks)

    # scalar timestep -> repeated per batch element (same as the torch repeat path)
    t_scalar = 7
    t_vec = jnp.full((B,), t_scalar, dtype=jnp.int32)

    fwd = jax.jit(functools.partial(diff_model_forward, inCh=inCh, t_dim=t_dim))
    noise, v = fwd(params, x, t_vec)
    jax.block_until_ready((noise, v))

    assert noise.shape == (B, inCh, H, W), noise.shape
    assert v.shape == (B, inCh, H, W), v.shape
    assert jnp.all(jnp.isfinite(noise)) and jnp.all(jnp.isfinite(v))
    print("KERNEL_OK")
</pallas_src>

<mosaic_0001>
module attributes {stable_mosaic.version = 11 : i64} {
  func.func @_fwd_kernel(%arg0: i32, %arg1: memref<1x16x64xf32, #tpu.memory_space<vmem>>, %arg2: memref<3x64x128xbf16, #tpu.memory_space<vmem>>, %arg3: memref<1x128xf32, #tpu.memory_space<vmem>>, %arg4: memref<1x3x128x128xbf16, #tpu.memory_space<vmem>>, %arg5: memref<1x1x128xf32, #tpu.memory_space<vmem>>, %arg6: memref<1x3x128x128xbf16, #tpu.memory_space<vmem>>, %arg7: memref<1x128xf32, #tpu.memory_space<vmem>>, %arg8: memref<3x128x128xbf16, #tpu.memory_space<vmem>>, %arg9: memref<1x128xf32, #tpu.memory_space<vmem>>, %arg10: memref<3x128x128xbf16, #tpu.memory_space<vmem>>, %arg11: memref<1x1x128xf32, #tpu.memory_space<vmem>>, %arg12: memref<3x128x128xbf16, #tpu.memory_space<vmem>>, %arg13: memref<1x128xf32, #tpu.memory_space<vmem>>, %arg14: memref<2x128x128xbf16, #tpu.memory_space<vmem>>, %arg15: memref<2x128x128xbf16, #tpu.memory_space<vmem>>, %arg16: memref<1x128xf32, #tpu.memory_space<vmem>>, %arg17: memref<3x128x128xbf16, #tpu.memory_space<vmem>>, %arg18: memref<3x128x128xbf16, #tpu.memory_space<vmem>>, %arg19: memref<1x128xf32, #tpu.memory_space<vmem>>, %arg20: memref<3x128x128xbf16, #tpu.memory_space<vmem>>, %arg21: memref<1x128xf32, #tpu.memory_space<vmem>>, %arg22: memref<7x128x128xbf16, #tpu.memory_space<vmem>>, %arg23: memref<1x128xf32, #tpu.memory_space<vmem>>, %arg24: memref<128x128xf32, #tpu.memory_space<vmem>>, %arg25: memref<1x128xf32, #tpu.memory_space<vmem>>, %arg26: memref<1x128xf32, #tpu.memory_space<vmem>>, %arg27: memref<128x512xbf16, #tpu.memory_space<vmem>>, %arg28: memref<1x512xf32, #tpu.memory_space<vmem>>, %arg29: memref<512x128xbf16, #tpu.memory_space<vmem>>, %arg30: memref<1x128xf32, #tpu.memory_space<vmem>>, %arg31: memref<1x16x128xf32, #tpu.memory_space<vmem>>) attributes {dimension_semantics = [#tpu.dimension_semantics<parallel>], iteration_bounds = array<i64: 2>, scalar_prefetch = 0 : i64, scratch_operands = 0 : i64, tpu.core_type = #tpu.core_type<tc>, window_params = [{transform_indices = @transform_0, window_bounds = array<i64: 1, 16, 64>}, {pipeline_mode = #tpu.pipeline_mode<synchronous>, transform_indices = @transform_1, window_bounds = array<i64: 3, 64, 128>}, {pipeline_mode = #tpu.pipeline_mode<synchronous>, transform_indices = @transform_2, window_bounds = array<i64: 1, 128>}, {pipeline_mode = #tpu.pipeline_mode<synchronous>, transform_indices = @transform_3, window_bounds = array<i64: 1, 3, 128, 128>}, {transform_indices = @transform_4, window_bounds = array<i64: 1, 1, 128>}, {pipeline_mode = #tpu.pipeline_mode<synchronous>, transform_indices = @transform_5, window_bounds = array<i64: 1, 3, 128, 128>}, {pipeline_mode = #tpu.pipeline_mode<synchronous>, transform_indices = @transform_6, window_bounds = array<i64: 1, 128>}, {pipeline_mode = #tpu.pipeline_mode<synchronous>, transform_indices = @transform_7, window_bounds = array<i64: 3, 128, 128>}, {pipeline_mode = #tpu.pipeline_mode<synchronous>, transform_indices = @transform_8, window_bounds = array<i64: 1, 128>}, {pipeline_mode = #tpu.pipeline_mode<synchronous>, transform_indices = @transform_9, window_bounds = array<i64: 3, 128, 128>}, {transform_indices = @transform_10, window_bounds = array<i64: 1, 1, 128>}, {pipeline_mode = #tpu.pipeline_mode<synchronous>, transform_indices = @transform_11, window_bounds = array<i64: 3, 128, 128>}, {pipeline_mode = #tpu.pipeline_mode<synchronous>, transform_indices = @transform_12, window_bounds = array<i64: 1, 128>}, {pipeline_mode = #tpu.pipeline_mode<synchronous>, transform_indices = @transform_13, window_bounds = array<i64: 2, 128, 128>}, {pipeline_mode = #tpu.pipeline_mode<synchronous>, transform_indices = @transform_14, window_bounds = array<i64: 2, 128, 128>}, {pipeline_mode = #tpu.pipeline_mode<synchronous>, transform_indices = @transform_15, window_bounds = array<i64: 1, 128>}, {pipeline_mode = #tpu.pipeline_mode<synchronous>, transform_indices = @transform_16, window_bounds = array<i64: 3, 128, 128>}, {pipeline_mode = #tpu.pipeline_mode<synchronous>, transform_indices = @transform_17, window_bounds = array<i64: 3, 128, 128>}, {pipeline_mode = #tpu.pipeline_mode<synchronous>, transform_indices = @transform_18, window_bounds = array<i64: 1, 128>}, {pipeline_mode = #tpu.pipeline_mode<synchronous>, transform_indices = @transform_19, window_bounds = array<i64: 3, 128, 128>}, {pipeline_mode = #tpu.pipeline_mode<synchronous>, transform_indices = @transform_20, window_bounds = array<i64: 1, 128>}, {pipeline_mode = #tpu.pipeline_mode<synchronous>, transform_indices = @transform_21, window_bounds = array<i64: 7, 128, 128>}, {pipeline_mode = #tpu.pipeline_mode<synchronous>, transform_indices = @transform_22, window_bounds = array<i64: 1, 128>}, {pipeline_mode = #tpu.pipeline_mode<synchronous>, transform_indices = @transform_23, window_bounds = array<i64: 128, 128>}, {pipeline_mode = #tpu.pipeline_mode<synchronous>, transform_indices = @transform_24, window_bounds = array<i64: 1, 128>}, {pipeline_mode = #tpu.pipeline_mode<synchronous>, transform_indices = @transform_25, window_bounds = array<i64: 1, 128>}, {pipeline_mode = #tpu.pipeline_mode<synchronous>, transform_indices = @transform_26, window_bounds = array<i64: 128, 512>}, {pipeline_mode = #tpu.pipeline_mode<synchronous>, transform_indices = @transform_27, window_bounds = array<i64: 1, 512>}, {pipeline_mode = #tpu.pipeline_mode<synchronous>, transform_indices = @transform_28, window_bounds = array<i64: 512, 128>}, {pipeline_mode = #tpu.pipeline_mode<synchronous>, transform_indices = @transform_29, window_bounds = array<i64: 1, 128>}, {transform_indices = @transform_30, window_bounds = array<i64: 1, 16, 128>}]} {
    %c0 = arith.constant 0 : index
    %c0_0 = arith.constant 0 : index
    %c0_1 = arith.constant 0 : index
    %0 = vector.load %arg1[%c0, %c0_0, %c0_1] : memref<1x16x64xf32, #tpu.memory_space<vmem>>, vector<1x16x64xf32>
    %1 = vector.shape_cast %0 : vector<1x16x64xf32> to vector<16x64xf32>
    %c0_2 = arith.constant 0 : index
    %c0_3 = arith.constant 0 : index
    %c0_4 = arith.constant 0 : index
    %2 = vector.load %arg2[%c0_2, %c0_3, %c0_4] : memref<3x64x128xbf16, #tpu.memory_space<vmem>>, vector<3x64x128xbf16>
    %cst = arith.constant 0.000000e+00 : bf16
    %3 = vector.broadcast %cst : bf16 to vector<1x64xbf16>
    %4 = arith.truncf %1 : vector<16x64xf32> to vector<16x64xbf16>
    %5 = tpu.concatenate %3, %4, %3 in 0 : vector<1x64xbf16>, vector<16x64xbf16>, vector<1x64xbf16> -> vector<18x64xbf16>
    %cst_5 = arith.constant 0.000000e+00 : f32
    %6 = vector.broadcast %cst_5 : f32 to vector<16x128xf32>
    %7 = vector.extract_strided_slice %5 {offsets = [0, 0], sizes = [16, 64], strides = [1, 1]} : vector<18x64xbf16> to vector<16x64xbf16>
    %8 = vector.extract_strided_slice %2 {offsets = [0, 0, 0], sizes = [1, 64, 128], strides = [1, 1, 1]} : vector<3x64x128xbf16> to vector<1x64x128xbf16>
    %9 = vector.shape_cast %8 : vector<1x64x128xbf16> to vector<64x128xbf16>
    %cst_6 = arith.constant dense<0.000000e+00> : vector<16x128xf32>
    %10 = tpu.matmul %7, %9, %cst_6 {dimension_numbers = #tpu.dot_dimension_numbers<[1], [0], [0], [1], [0, 0, 1, 1], [], []>} : vector<16x64xbf16>, vector<64x128xbf16>, vector<16x128xf32> -> vector<16x128xf32>
    %11 = arith.addf %6, %10 : vector<16x128xf32>
    %12 = vector.extract_strided_slice %5 {offsets = [1, 0], sizes = [16, 64], strides = [1, 1]} : vector<18x64xbf16> to vector<16x64xbf16>
    %13 = vector.extract_strided_slice %2 {offsets = [1, 0, 0], sizes = [1, 64, 128], strides = [1, 1, 1]} : vector<3x64x128xbf16> to vector<1x64x128xbf16>
    %14 = vector.shape_cast %13 : vector<1x64x128xbf16> to vector<64x128xbf16>
    %cst_7 = arith.constant dense<0.000000e+00> : vector<16x128xf32>
    %15 = tpu.matmul %12, %14, %cst_7 {dimension_numbers = #tpu.dot_dimension_numbers<[1], [0], [0], [1], [0, 0, 1, 1], [], []>} : vector<16x64xbf16>, vector<64x128xbf16>, vector<16x128xf32> -> vector<16x128xf32>
    %16 = arith.addf %11, %15 : vector<16x128xf32>
    %17 = vector.extract_strided_slice %5 {offsets = [2, 0], sizes = [16, 64], strides = [1, 1]} : vector<18x64xbf16> to vector<16x64xbf16>
    %18 = vector.extract_strided_slice %2 {offsets = [2, 0, 0], sizes = [1, 64, 128], strides = [1, 1, 1]} : vector<3x64x128xbf16> to vector<1x64x128xbf16>
    %19 = vector.shape_cast %18 : vector<1x64x128xbf16> to vector<64x128xbf16>
    %cst_8 = arith.constant dense<0.000000e+00> : vector<16x128xf32>
    %20 = tpu.matmul %17, %19, %cst_8 {dimension_numbers = #tpu.dot_dimension_numbers<[1], [0], [0], [1], [0, 0, 1, 1], [], []>} : vector<16x64xbf16>, vector<64x128xbf16>, vector<16x128xf32> -> vector<16x128xf32>
    %21 = arith.addf %16, %20 : vector<16x128xf32>
    %c0_9 = arith.constant 0 : index
    %c0_10 = arith.constant 0 : index
    %22 = vector.load %arg3[%c0_9, %c0_10] : memref<1x128xf32, #tpu.memory_space<vmem>>, vector<1x128xf32>
    %23 = vector.broadcast %22 : vector<1x128xf32> to vector<16x128xf32>
    %24 = arith.addf %21, %23 : vector<16x128xf32>
    %c0_11 = arith.constant 0 : index
    %c0_12 = arith.constant 0 : index
    %c0_13 = arith.constant 0 : index
    %c0_14 = arith.constant 0 : index
    %25 = vector.load %arg4[%c0_11, %c0_12, %c0_13, %c0_14] : memref<1x3x128x128xbf16, #tpu.memory_space<vmem>>, vector<1x3x128x128xbf16>
    %c0_15 = arith.constant 0 : index
    %c0_16 = arith.constant 0 : index
    %c0_17 = arith.constant 0 : index
    %c0_18 = arith.constant 0 : index
    %26 = vector.load %arg6[%c0_15, %c0_16, %c0_17, %c0_18] : memref<1x3x128x128xbf16, #tpu.memory_space<vmem>>, vector<1x3x128x128xbf16>
    %c0_19 = arith.constant 0 : index
    %c0_20 = arith.constant 0 : index
    %c0_21 = arith.constant 0 : index
    %27 = vector.load %arg5[%c0_19, %c0_20, %c0_21] : memref<1x1x128xf32, #tpu.memory_space<vmem>>, vector<1x1x128xf32>
    %28 = vector.shape_cast %27 : vector<1x1x128xf32> to vector<1x128xf32>
    %c0_22 = arith.constant 0 : index
    %c0_23 = arith.constant 0 : index
    %29 = vector.load %arg7[%c0_22, %c0_23] : memref<1x128xf32, #tpu.memory_space<vmem>>, vector<1x128xf32>
    %30 = arith.mulf %24, %24 : vector<16x128xf32>
    %31 = arith.mulf %24, %30 : vector<16x128xf32>
    %cst_24 = arith.constant 4.471500e-02 : f32
    %32 = vector.broadcast %cst_24 : f32 to vector<16x128xf32>
    %33 = arith.mulf %32, %31 : vector<16x128xf32>
    %34 = arith.addf %24, %33 : vector<16x128xf32>
    %cst_25 = arith.constant 0.797884583 : f32
    %35 = vector.broadcast %cst_25 : f32 to vector<16x128xf32>
    %36 = arith.mulf %35, %34 : vector<16x128xf32>
    %37 = math.tanh %36 : vector<16x128xf32>
    %cst_26 = arith.constant 1.000000e+00 : f32
    %38 = vector.broadcast %cst_26 : f32 to vector<16x128xf32>
    %39 = arith.addf %38, %37 : vector<16x128xf32>
    %cst_27 = arith.constant 5.000000e-01 : f32
    %40 = vector.broadcast %cst_27 : f32 to vector<16x128xf32>
    %41 = arith.mulf %40, %39 : vector<16x128xf32>
    %42 = arith.mulf %24, %41 : vector<16x128xf32>
    %43 = vector.shape_cast %25 : vector<1x3x128x128xbf16> to vector<3x128x128xbf16>
    %cst_28 = arith.constant 0.000000e+00 : bf16
    %44 = vector.broadcast %cst_28 : bf16 to vector<1x128xbf16>
    %45 = arith.truncf %42 : vector<16x128xf32> to vector<16x128xbf16>
    %46 = tpu.concatenate %44, %45, %44 in 0 : vector<1x128xbf16>, vector<16x128xbf16>, vector<1x128xbf16> -> vector<18x128xbf16>
    %cst_29 = arith.constant 0.000000e+00 : f32
    %47 = vector.broadcast %cst_29 : f32 to vector<16x128xf32>
    %48 = vector.extract_strided_slice %46 {offsets = [0, 0], sizes = [16, 128], strides = [1, 1]} : vector<18x128xbf16> to vector<16x128xbf16>
    %49 = vector.extract_strided_slice %43 {offsets = [0, 0, 0], sizes = [1, 128, 128], strides = [1, 1, 1]} : vector<3x128x128xbf16> to vector<1x128x128xbf16>
    %50 = vector.shape_cast %49 : vector<1x128x128xbf16> to vector<128x128xbf16>
    %cst_30 = arith.constant dense<0.000000e+00> : vector<16x128xf32>
    %51 = tpu.matmul %48, %50, %cst_30 {dimension_numbers = #tpu.dot_dimension_numbers<[1], [0], [0], [1], [0, 0, 1, 1], [], []>} : vector<16x128xbf16>, vector<128x128xbf16>, vector<16x128xf32> -> vector<16x128xf32>
    %52 = arith.addf %47, %51 : vector<16x128xf32>
    %53 = vector.extract_strided_slice %46 {offsets = [1, 0], sizes = [16, 128], strides = [1, 1]} : vector<18x128xbf16> to vector<16x128xbf16>
    %54 = vector.extract_strided_slice %43 {offsets = [1, 0, 0], sizes = [1, 128, 128], strides = [1, 1, 1]} : vector<3x128x128xbf16> to vector<1x128x128xbf16>
    %55 = vector.shape_cast %54 : vector<1x128x128xbf16> to vector<128x128xbf16>
    %cst_31 = arith.constant dense<0.000000e+00> : vector<16x128xf32>
    %56 = tpu.matmul %53, %55, %cst_31 {dimension_numbers = #tpu.dot_dimension_numbers<[1], [0], [0], [1], [0, 0, 1, 1], [], []>} : vector<16x128xbf16>, vector<128x128xbf16>, vector<16x128xf32> -> vector<16x128xf32>
    %57 = arith.addf %52, %56 : vector<16x128xf32>
    %58 = vector.extract_strided_slice %46 {offsets = [2, 0], sizes = [16, 128], strides = [1, 1]} : vector<18x128xbf16> to vector<16x128xbf16>
    %59 = vector.extract_strided_slice %43 {offsets = [2, 0, 0], sizes = [1, 128, 128], strides = [1, 1, 1]} : vector<3x128x128xbf16> to vector<1x128x128xbf16>
    %60 = vector.shape_cast %59 : vector<1x128x128xbf16> to vector<128x128xbf16>
    %cst_32 = arith.constant dense<0.000000e+00> : vector<16x128xf32>
    %61 = tpu.matmul %58, %60, %cst_32 {dimension_numbers = #tpu.dot_dimension_numbers<[1], [0], [0], [1], [0, 0, 1, 1], [], []>} : vector<16x128xbf16>, vector<128x128xbf16>, vector<16x128xf32> -> vector<16x128xf32>
    %62 = arith.addf %57, %61 : vector<16x128xf32>
    %63 = vector.broadcast %28 : vector<1x128xf32> to vector<16x128xf32>
    %64 = arith.addf %62, %63 : vector<16x128xf32>
    %65 = arith.mulf %64, %64 : vector<16x128xf32>
    %66 = arith.mulf %64, %65 : vector<16x128xf32>
    %cst_33 = arith.constant 4.471500e-02 : f32
    %67 = vector.broadcast %cst_33 : f32 to vector<16x128xf32>
    %68 = arith.mulf %67, %66 : vector<16x128xf32>
    %69 = arith.addf %64, %68 : vector<16x128xf32>
    %cst_34 = arith.constant 0.797884583 : f32
    %70 = vector.broadcast %cst_34 : f32 to vector<16x128xf32>
    %71 = arith.mulf %70, %69 : vector<16x128xf32>
    %72 = math.tanh %71 : vector<16x128xf32>
    %cst_35 = arith.constant 1.000000e+00 : f32
    %73 = vector.broadcast %cst_35 : f32 to vector<16x128xf32>
    %74 = arith.addf %73, %72 : vector<16x128xf32>
    %cst_36 = arith.constant 5.000000e-01 : f32
    %75 = vector.broadcast %cst_36 : f32 to vector<16x128xf32>
    %76 = arith.mulf %75, %74 : vector<16x128xf32>
    %77 = arith.mulf %64, %76 : vector<16x128xf32>
    %78 = vector.shape_cast %26 : vector<1x3x128x128xbf16> to vector<3x128x128xbf16>
    %cst_37 = arith.constant 0.000000e+00 : bf16
    %79 = vector.broadcast %cst_37 : bf16 to vector<1x128xbf16>
    %80 = arith.truncf %77 : vector<16x128xf32> to vector<16x128xbf16>
    %81 = tpu.concatenate %79, %80, %79 in 0 : vector<1x128xbf16>, vector<16x128xbf16>, vector<1x128xbf16> -> vector<18x128xbf16>
    %cst_38 = arith.constant 0.000000e+00 : f32
    %82 = vector.broadcast %cst_38 : f32 to vector<16x128xf32>
    %83 = vector.extract_strided_slice %81 {offsets = [0, 0], sizes = [16, 128], strides = [1, 1]} : vector<18x128xbf16> to vector<16x128xbf16>
    %84 = vector.extract_strided_slice %78 {offsets = [0, 0, 0], sizes = [1, 128, 128], strides = [1, 1, 1]} : vector<3x128x128xbf16> to vector<1x128x128xbf16>
    %85 = vector.shape_cast %84 : vector<1x128x128xbf16> to vector<128x128xbf16>
    %cst_39 = arith.constant dense<0.000000e+00> : vector<16x128xf32>
    %86 = tpu.matmul %83, %85, %cst_39 {dimension_numbers = #tpu.dot_dimension_numbers<[1], [0], [0], [1], [0, 0, 1, 1], [], []>} : vector<16x128xbf16>, vector<128x128xbf16>, vector<16x128xf32> -> vector<16x128xf32>
    %87 = arith.addf %82, %86 : vector<16x128xf32>
    %88 = vector.extract_strided_slice %81 {offsets = [1, 0], sizes = [16, 128], strides = [1, 1]} : vector<18x128xbf16> to vector<16x128xbf16>
    %89 = vector.extract_strided_slice %78 {offsets = [1, 0, 0], sizes = [1, 128, 128], strides = [1, 1, 1]} : vector<3x128x128xbf16> to vector<1x128x128xbf16>
    %90 = vector.shape_cast %89 : vector<1x128x128xbf16> to vector<128x128xbf16>
    %cst_40 = arith.constant dense<0.000000e+00> : vector<16x128xf32>
    %91 = tpu.matmul %88, %90, %cst_40 {dimension_numbers = #tpu.dot_dimension_numbers<[1], [0], [0], [1], [0, 0, 1, 1], [], []>} : vector<16x128xbf16>, vector<128x128xbf16>, vector<16x128xf32> -> vector<16x128xf32>
    %92 = arith.addf %87, %91 : vector<16x128xf32>
    %93 = vector.extract_strided_slice %81 {offsets = [2, 0], sizes = [16, 128], strides = [1, 1]} : vector<18x128xbf16> to vector<16x128xbf16>
    %94 = vector.extract_strided_slice %78 {offsets = [2, 0, 0], sizes = [1, 128, 128], strides = [1, 1, 1]} : vector<3x128x128xbf16> to vector<1x128x128xbf16>
    %95 = vector.shape_cast %94 : vector<1x128x128xbf16> to vector<128x128xbf16>
    %cst_41 = arith.constant dense<0.000000e+00> : vector<16x128xf32>
    %96 = tpu.matmul %93, %95, %cst_41 {dimension_numbers = #tpu.dot_dimension_numbers<[1], [0], [0], [1], [0, 0, 1, 1], [], []>} : vector<16x128xbf16>, vector<128x128xbf16>, vector<16x128xf32> -> vector<16x128xf32>
    %97 = arith.addf %92, %96 : vector<16x128xf32>
    %98 = vector.broadcast %29 : vector<1x128xf32> to vector<16x128xf32>
    %99 = arith.addf %97, %98 : vector<16x128xf32>
    %100 = arith.addf %99, %24 : vector<16x128xf32>
    %c0_42 = arith.constant 0 : index
    %c0_43 = arith.constant 0 : index
    %c0_44 = arith.constant 0 : index
    %101 = vector.load %arg8[%c0_42, %c0_43, %c0_44] : memref<3x128x128xbf16, #tpu.memory_space<vmem>>, vector<3x128x128xbf16>
    %cst_45 = arith.constant 0.000000e+00 : bf16
    %102 = vector.broadcast %cst_45 : bf16 to vector<1x128xbf16>
    %103 = arith.truncf %100 : vector<16x128xf32> to vector<16x128xbf16>
    %104 = tpu.concatenate %102, %103, %102 in 0 : vector<1x128xbf16>, vector<16x128xbf16>, vector<1x128xbf16> -> vector<18x128xbf16>
    %cst_46 = arith.constant 0.000000e+00 : f32
    %105 = vector.broadcast %cst_46 : f32 to vector<16x128xf32>
    %106 = vector.extract_strided_slice %104 {offsets = [0, 0], sizes = [16, 128], strides = [1, 1]} : vector<18x128xbf16> to vector<16x128xbf16>
    %107 = vector.extract_strided_slice %101 {offsets = [0, 0, 0], sizes = [1, 128, 128], strides = [1, 1, 1]} : vector<3x128x128xbf16> to vector<1x128x128xbf16>
    %108 = vector.shape_cast %107 : vector<1x128x128xbf16> to vector<128x128xbf16>
    %cst_47 = arith.constant dense<0.000000e+00> : vector<16x128xf32>
    %109 = tpu.matmul %106, %108, %cst_47 {dimension_numbers = #tpu.dot_dimension_numbers<[1], [0], [0], [1], [0, 0, 1, 1], [], []>} : vector<16x128xbf16>, vector<128x128xbf16>, vector<16x128xf32> -> vector<16x128xf32>
    %110 = arith.addf %105, %109 : vector<16x128xf32>
    %111 = vector.extract_strided_slice %104 {offsets = [1, 0], sizes = [16, 128], strides = [1, 1]} : vector<18x128xbf16> to vector<16x128xbf16>
    %112 = vector.extract_strided_slice %101 {offsets = [1, 0, 0], sizes = [1, 128, 128], strides = [1, 1, 1]} : vector<3x128x128xbf16> to vector<1x128x128xbf16>
    %113 = vector.shape_cast %112 : vector<1x128x128xbf16> to vector<128x128xbf16>
    %cst_48 = arith.constant dense<0.000000e+00> : vector<16x128xf32>
    %114 = tpu.matmul %111, %113, %cst_48 {dimension_numbers = #tpu.dot_dimension_numbers<[1], [0], [0], [1], [0, 0, 1, 1], [], []>} : vector<16x128xbf16>, vector<128x128xbf16>, vector<16x128xf32> -> vector<16x128xf32>
    %115 = arith.addf %110, %114 : vector<16x128xf32>
    %116 = vector.extract_strided_slice %104 {offsets = [2, 0], sizes = [16, 128], strides = [1, 1]} : vector<18x128xbf16> to vector<16x128xbf16>
    %117 = vector.extract_strided_slice %101 {offsets = [2, 0, 0], sizes = [1, 128, 128], strides = [1, 1, 1]} : vector<3x128x128xbf16> to vector<1x128x128xbf16>
    %118 = vector.shape_cast %117 : vector<1x128x128xbf16> to vector<128x128xbf16>
    %cst_49 = arith.constant dense<0.000000e+00> : vector<16x128xf32>
    %119 = tpu.matmul %116, %118, %cst_49 {dimension_numbers = #tpu.dot_dimension_numbers<[1], [0], [0], [1], [0, 0, 1, 1], [], []>} : vector<16x128xbf16>, vector<128x128xbf16>, vector<16x128xf32> -> vector<16x128xf32>
    %120 = arith.addf %115, %119 : vector<16x128xf32>
    %121 = tpu.iota {dimensions = array<i32: 0>} : vector<8x16xi32>
    %122 = tpu.iota {dimensions = array<i32: 1>} : vector<8x16xi32>
    %c2_i32 = arith.constant 2 : i32
    %123 = vector.broadcast %c2_i32 : i32 to vector<8x16xi32>
    %124 = arith.muli %123, %121 : vector<8x16xi32>
    %125 = arith.cmpi eq, %122, %124 : vector<8x16xi32>
    %126 = arith.extui %125 : vector<8x16xi1> to vector<8x16xi32>
    %127 = arith.sitofp %126 : vector<8x16xi32> to vector<8x16xf32>
    %cst_50 = arith.constant dense<0.000000e+00> : vector<8x128xf32>
    %128 = tpu.matmul %127, %120, %cst_50 {dimension_numbers = #tpu.dot_dimension_numbers<[1], [0], [0], [1], [0, 0, 1, 1], [], []>} : vector<8x16xf32>, vector<16x128xf32>, vector<8x128xf32> -> vector<8x128xf32>
    %c0_51 = arith.constant 0 : index
    %c0_52 = arith.constant 0 : index
    %129 = vector.load %arg9[%c0_51, %c0_52] : memref<1x128xf32, #tpu.memory_space<vmem>>, vector<1x128xf32>
    %130 = vector.broadcast %129 : vector<1x128xf32> to vector<8x128xf32>
    %131 = arith.addf %128, %130 : vector<8x128xf32>
    %132 = arith.mulf %131, %131 : vector<8x128xf32>
    %133 = arith.mulf %131, %132 : vector<8x128xf32>
    %cst_53 = arith.constant 4.471500e-02 : f32
    %134 = vector.broadcast %cst_53 : f32 to vector<8x128xf32>
    %135 = arith.mulf %134, %133 : vector<8x128xf32>
    %136 = arith.addf %131, %135 : vector<8x128xf32>
    %cst_54 = arith.constant 0.797884583 : f32
    %137 = vector.broadcast %cst_54 : f32 to vector<8x128xf32>
    %138 = arith.mulf %137, %136 : vector<8x128xf32>
    %139 = math.tanh %138 : vector<8x128xf32>
    %cst_55 = arith.constant 1.000000e+00 : f32
    %140 = vector.broadcast %cst_55 : f32 to vector<8x128xf32>
    %141 = arith.addf %140, %139 : vector<8x128xf32>
    %cst_56 = arith.constant 5.000000e-01 : f32
    %142 = vector.broadcast %cst_56 : f32 to vector<8x128xf32>
    %143 = arith.mulf %142, %141 : vector<8x128xf32>
    %144 = arith.mulf %131, %143 : vector<8x128xf32>
    %145 = arith.mulf %144, %144 : vector<8x128xf32>
    %146 = arith.mulf %144, %145 : vector<8x128xf32>
    %cst_57 = arith.constant 4.471500e-02 : f32
    %147 = vector.broadcast %cst_57 : f32 to vector<8x128xf32>
    %148 = arith.mulf %147, %146 : vector<8x128xf32>
    %149 = arith.addf %144, %148 : vector<8x128xf32>
    %cst_58 = arith.constant 0.797884583 : f32
    %150 = vector.broadcast %cst_58 : f32 to vector<8x128xf32>
    %151 = arith.mulf %150, %149 : vector<8x128xf32>
    %152 = math.tanh %151 : vector<8x128xf32>
    %cst_59 = arith.constant 1.000000e+00 : f32
    %153 = vector.broadcast %cst_59 : f32 to vector<8x128xf32>
    %154 = arith.addf %153, %152 : vector<8x128xf32>
    %cst_60 = arith.constant 5.000000e-01 : f32
    %155 = vector.broadcast %cst_60 : f32 to vector<8x128xf32>
    %156 = arith.mulf %155, %154 : vector<8x128xf32>
    %157 = arith.mulf %144, %156 : vector<8x128xf32>
    %c0_61 = arith.constant 0 : index
    %c0_62 = arith.constant 0 : index
    %c0_63 = arith.constant 0 : index
    %158 = vector.load %arg10[%c0_61, %c0_62, %c0_63] : memref<3x128x128xbf16, #tpu.memory_space<vmem>>, vector<3x128x128xbf16>
    %cst_64 = arith.constant 0.000000e+00 : bf16
    %159 = vector.broadcast %cst_64 : bf16 to vector<1x128xbf16>
    %160 = arith.truncf %157 : vector<8x128xf32> to vector<8x128xbf16>
    %161 = tpu.concatenate %159, %160, %159 in 0 : vector<1x128xbf16>, vector<8x128xbf16>, vector<1x128xbf16> -> vector<10x128xbf16>
    %cst_65 = arith.constant 0.000000e+00 : f32
    %162 = vector.broadcast %cst_65 : f32 to vector<8x128xf32>
    %163 = vector.extract_strided_slice %161 {offsets = [0, 0], sizes = [8, 128], strides = [1, 1]} : vector<10x128xbf16> to vector<8x128xbf16>
    %164 = vector.extract_strided_slice %158 {offsets = [0, 0, 0], sizes = [1, 128, 128], strides = [1, 1, 1]} : vector<3x128x128xbf16> to vector<1x128x128xbf16>
    %165 = vector.shape_cast %164 : vector<1x128x128xbf16> to vector<128x128xbf16>
    %cst_66 = arith.constant dense<0.000000e+00> : vector<8x128xf32>
    %166 = tpu.matmul %163, %165, %cst_66 {dimension_numbers = #tpu.dot_dimension_numbers<[1], [0], [0], [1], [0, 0, 1, 1], [], []>} : vector<8x128xbf16>, vector<128x128xbf16>, vector<8x128xf32> -> vector<8x128xf32>
    %167 = arith.addf %162, %166 : vector<8x128xf32>
    %168 = vector.extract_strided_slice %161 {offsets = [1, 0], sizes = [8, 128], strides = [1, 1]} : vector<10x128xbf16> to vector<8x128xbf16>
    %169 = vector.extract_strided_slice %158 {offsets = [1, 0, 0], sizes = [1, 128, 128], strides = [1, 1, 1]} : vector<3x128x128xbf16> to vector<1x128x128xbf16>
    %170 = vector.shape_cast %169 : vector<1x128x128xbf16> to vector<128x128xbf16>
    %cst_67 = arith.constant dense<0.000000e+00> : vector<8x128xf32>
    %171 = tpu.matmul %168, %170, %cst_67 {dimension_numbers = #tpu.dot_dimension_numbers<[1], [0], [0], [1], [0, 0, 1, 1], [], []>} : vector<8x128xbf16>, vector<128x128xbf16>, vector<8x128xf32> -> vector<8x128xf32>
    %172 = arith.addf %167, %171 : vector<8x128xf32>
    %173 = vector.extract_strided_slice %161 {offsets = [2, 0], sizes = [8, 128], strides = [1, 1]} : vector<10x128xbf16> to vector<8x128xbf16>
    %174 = vector.extract_strided_slice %158 {offsets = [2, 0, 0], sizes = [1, 128, 128], strides = [1, 1, 1]} : vector<3x128x128xbf16> to vector<1x128x128xbf16>
    %175 = vector.shape_cast %174 : vector<1x128x128xbf16> to vector<128x128xbf16>
    %cst_68 = arith.constant dense<0.000000e+00> : vector<8x128xf32>
    %176 = tpu.matmul %173, %175, %cst_68 {dimension_numbers = #tpu.dot_dimension_numbers<[1], [0], [0], [1], [0, 0, 1, 1], [], []>} : vector<8x128xbf16>, vector<128x128xbf16>, vector<8x128xf32> -> vector<8x128xf32>
    %177 = arith.addf %172, %176 : vector<8x128xf32>
    %c0_69 = arith.constant 0 : index
    %c0_70 = arith.constant 0 : index
    %c0_71 = arith.constant 0 : index
    %178 = vector.load %arg11[%c0_69, %c0_70, %c0_71] : memref<1x1x128xf32, #tpu.memory_space<vmem>>, vector<1x1x128xf32>
    %179 = vector.shape_cast %178 : vector<1x1x128xf32> to vector<1x128xf32>
    %180 = vector.broadcast %179 : vector<1x128xf32> to vector<8x128xf32>
    %181 = arith.addf %177, %180 : vector<8x128xf32>
    %182 = arith.mulf %181, %181 : vector<8x128xf32>
    %183 = arith.mulf %181, %182 : vector<8x128xf32>
    %cst_72 = arith.constant 4.471500e-02 : f32
    %184 = vector.broadcast %cst_72 : f32 to vector<8x128xf32>
    %185 = arith.mulf %184, %183 : vector<8x128xf32>
    %186 = arith.addf %181, %185 : vector<8x128xf32>
    %cst_73 = arith.constant 0.797884583 : f32
    %187 = vector.broadcast %cst_73 : f32 to vector<8x128xf32>
    %188 = arith.mulf %187, %186 : vector<8x128xf32>
    %189 = math.tanh %188 : vector<8x128xf32>
    %cst_74 = arith.constant 1.000000e+00 : f32
    %190 = vector.broadcast %cst_74 : f32 to vector<8x128xf32>
    %191 = arith.addf %190, %189 : vector<8x128xf32>
    %cst_75 = arith.constant 5.000000e-01 : f32
    %192 = vector.broadcast %cst_75 : f32 to vector<8x128xf32>
    %193 = arith.mulf %192, %191 : vector<8x128xf32>
    %194 = arith.mulf %181, %193 : vector<8x128xf32>
    %c0_76 = arith.constant 0 : index
    %c0_77 = arith.constant 0 : index
    %c0_78 = arith.constant 0 : index
    %195 = vector.load %arg12[%c0_76, %c0_77, %c0_78] : memref<3x128x128xbf16, #tpu.memory_space<vmem>>, vector<3x128x128xbf16>
    %cst_79 = arith.constant 0.000000e+00 : bf16
    %196 = vector.broadcast %cst_79 : bf16 to vector<1x128xbf16>
    %197 = arith.truncf %194 : vector<8x128xf32> to vector<8x128xbf16>
    %198 = tpu.concatenate %196, %197, %196 in 0 : vector<1x128xbf16>, vector<8x128xbf16>, vector<1x128xbf16> -> vector<10x128xbf16>
    %cst_80 = arith.constant 0.000000e+00 : f32
    %199 = vector.broadcast %cst_80 : f32 to vector<8x128xf32>
    %200 = vector.extract_strided_slice %198 {offsets = [0, 0], sizes = [8, 128], strides = [1, 1]} : vector<10x128xbf16> to vector<8x128xbf16>
    %201 = vector.extract_strided_slice %195 {offsets = [0, 0, 0], sizes = [1, 128, 128], strides = [1, 1, 1]} : vector<3x128x128xbf16> to vector<1x128x128xbf16>
    %202 = vector.shape_cast %201 : vector<1x128x128xbf16> to vector<128x128xbf16>
    %cst_81 = arith.constant dense<0.000000e+00> : vector<8x128xf32>
    %203 = tpu.matmul %200, %202, %cst_81 {dimension_numbers = #tpu.dot_dimension_numbers<[1], [0], [0], [1], [0, 0, 1, 1], [], []>} : vector<8x128xbf16>, vector<128x128xbf16>, vector<8x128xf32> -> vector<8x128xf32>
    %204 = arith.addf %199, %203 : vector<8x128xf32>
    %205 = vector.extract_strided_slice %198 {offsets = [1, 0], sizes = [8, 128], strides = [1, 1]} : vector<10x128xbf16> to vector<8x128xbf16>
    %206 = vector.extract_strided_slice %195 {offsets = [1, 0, 0], sizes = [1, 128, 128], strides = [1, 1, 1]} : vector<3x128x128xbf16> to vector<1x128x128xbf16>
    %207 = vector.shape_cast %206 : vector<1x128x128xbf16> to vector<128x128xbf16>
    %cst_82 = arith.constant dense<0.000000e+00> : vector<8x128xf32>
    %208 = tpu.matmul %205, %207, %cst_82 {dimension_numbers = #tpu.dot_dimension_numbers<[1], [0], [0], [1], [0, 0, 1, 1], [], []>} : vector<8x128xbf16>, vector<128x128xbf16>, vector<8x128xf32> -> vector<8x128xf32>
    %209 = arith.addf %204, %208 : vector<8x128xf32>
    %210 = vector.extract_strided_slice %198 {offsets = [2, 0], sizes = [8, 128], strides = [1, 1]} : vector<10x128xbf16> to vector<8x128xbf16>
    %211 = vector.extract_strided_slice %195 {offsets = [2, 0, 0], sizes = [1, 128, 128], strides = [1, 1, 1]} : vector<3x128x128xbf16> to vector<1x128x128xbf16>
    %212 = vector.shape_cast %211 : vector<1x128x128xbf16> to vector<128x128xbf16>
    %cst_83 = arith.constant dense<0.000000e+00> : vector<8x128xf32>
    %213 = tpu.matmul %210, %212, %cst_83 {dimension_numbers = #tpu.dot_dimension_numbers<[1], [0], [0], [1], [0, 0, 1, 1], [], []>} : vector<8x128xbf16>, vector<128x128xbf16>, vector<8x128xf32> -> vector<8x128xf32>
    %214 = arith.addf %209, %213 : vector<8x128xf32>
    %c0_84 = arith.constant 0 : index
    %c0_85 = arith.constant 0 : index
    %215 = vector.load %arg13[%c0_84, %c0_85] : memref<1x128xf32, #tpu.memory_space<vmem>>, vector<1x128xf32>
    %216 = vector.broadcast %215 : vector<1x128xf32> to vector<8x128xf32>
    %217 = arith.addf %214, %216 : vector<8x128xf32>
    %218 = arith.addf %217, %144 : vector<8x128xf32>
    %219 = arith.truncf %218 : vector<8x128xf32> to vector<8x128xbf16>
    %cst_86 = arith.constant 0.000000e+00 : bf16
    %220 = vector.broadcast %cst_86 : bf16 to vector<1x128xbf16>
    %221 = tpu.concatenate %220, %219 in 0 : vector<1x128xbf16>, vector<8x128xbf16> -> vector<9x128xbf16>
    %222 = tpu.concatenate %219, %220 in 0 : vector<8x128xbf16>, vector<1x128xbf16> -> vector<9x128xbf16>
    %c0_87 = arith.constant 0 : index
    %c0_88 = arith.constant 0 : index
    %c0_89 = arith.constant 0 : index
    %223 = vector.load %arg14[%c0_87, %c0_88, %c0_89] : memref<2x128x128xbf16, #tpu.memory_space<vmem>>, vector<2x128x128xbf16>
    %c0_90 = arith.constant 0 : index
    %c0_91 = arith.constant 0 : index
    %c0_92 = arith.constant 0 : index
    %224 = vector.load %arg15[%c0_90, %c0_91, %c0_92] : memref<2x128x128xbf16, #tpu.memory_space<vmem>>, vector<2x128x128xbf16>
    %225 = vector.extract_strided_slice %221 {offsets = [0, 0], sizes = [8, 128], strides = [1, 1]} : vector<9x128xbf16> to vector<8x128xbf16>
    %226 = vector.extract_strided_slice %223 {offsets = [0, 0, 0], sizes = [1, 128, 128], strides = [1, 1, 1]} : vector<2x128x128xbf16> to vector<1x128x128xbf16>
    %227 = vector.shape_cast %226 : vector<1x128x128xbf16> to vector<128x128xbf16>
    %cst_93 = arith.constant dense<0.000000e+00> : vector<8x128xf32>
    %228 = tpu.matmul %225, %227, %cst_93 {dimension_numbers = #tpu.dot_dimension_numbers<[1], [0], [0], [1], [0, 0, 1, 1], [], []>} : vector<8x128xbf16>, vector<128x128xbf16>, vector<8x128xf32> -> vector<8x128xf32>
    %229 = vector.extract_strided_slice %221 {offsets = [1, 0], sizes = [8, 128], strides = [1, 1]} : vector<9x128xbf16> to vector<8x128xbf16>
    %230 = vector.extract_strided_slice %223 {offsets = [1, 0, 0], sizes = [1, 128, 128], strides = [1, 1, 1]} : vector<2x128x128xbf16> to vector<1x128x128xbf16>
    %231 = vector.shape_cast %230 : vector<1x128x128xbf16> to vector<128x128xbf16>
    %cst_94 = arith.constant dense<0.000000e+00> : vector<8x128xf32>
    %232 = tpu.matmul %229, %231, %cst_94 {dimension_numbers = #tpu.dot_dimension_numbers<[1], [0], [0], [1], [0, 0, 1, 1], [], []>} : vector<8x128xbf16>, vector<128x128xbf16>, vector<8x128xf32> -> vector<8x128xf32>
    %233 = arith.addf %228, %232 : vector<8x128xf32>
    %234 = vector.extract_strided_slice %224 {offsets = [0, 0, 0], sizes = [1, 128, 128], strides = [1, 1, 1]} : vector<2x128x128xbf16> to vector<1x128x128xbf16>
    %235 = vector.shape_cast %234 : vector<1x128x128xbf16> to vector<128x128xbf16>
    %cst_95 = arith.constant dense<0.000000e+00> : vector<8x128xf32>
    %236 = tpu.matmul %219, %235, %cst_95 {dimension_numbers = #tpu.dot_dimension_numbers<[1], [0], [0], [1], [0, 0, 1, 1], [], []>} : vector<8x128xbf16>, vector<128x128xbf16>, vector<8x128xf32> -> vector<8x128xf32>
    %237 = vector.extract_strided_slice %222 {offsets = [1, 0], sizes = [8, 128], strides = [1, 1]} : vector<9x128xbf16> to vector<8x128xbf16>
    %238 = vector.extract_strided_slice %224 {offsets = [1, 0, 0], sizes = [1, 128, 128], strides = [1, 1, 1]} : vector<2x128x128xbf16> to vector<1x128x128xbf16>
    %239 = vector.shape_cast %238 : vector<1x128x128xbf16> to vector<128x128xbf16>
    %cst_96 = arith.constant dense<0.000000e+00> : vector<8x128xf32>
    %240 = tpu.matmul %237, %239, %cst_96 {dimension_numbers = #tpu.dot_dimension_numbers<[1], [0], [0], [1], [0, 0, 1, 1], [], []>} : vector<8x128xbf16>, vector<128x128xbf16>, vector<8x128xf32> -> vector<8x128xf32>
    %241 = arith.addf %236, %240 : vector<8x128xf32>
    %242 = tpu.iota {dimensions = array<i32: 0>} : vector<16x8xi32>
    %243 = tpu.iota {dimensions = array<i32: 1>} : vector<16x8xi32>
    %c2_i32_97 = arith.constant 2 : i32
    %244 = vector.broadcast %c2_i32_97 : i32 to vector<16x8xi32>
    %245 = arith.muli %244, %243 : vector<16x8xi32>
    %246 = arith.cmpi eq, %242, %245 : vector<16x8xi32>
    %247 = arith.extui %246 : vector<16x8xi1> to vector<16x8xi32>
    %248 = arith.sitofp %247 : vector<16x8xi32> to vector<16x8xf32>
    %c2_i32_98 = arith.constant 2 : i32
    %249 = vector.broadcast %c2_i32_98 : i32 to vector<16x8xi32>
    %250 = arith.muli %249, %243 : vector<16x8xi32>
    %c1_i32 = arith.constant 1 : i32
    %251 = vector.broadcast %c1_i32 : i32 to vector<16x8xi32>
    %252 = arith.addi %250, %251 : vector<16x8xi32>
    %253 = arith.cmpi eq, %242, %252 : vector<16x8xi32>
    %254 = arith.extui %253 : vector<16x8xi1> to vector<16x8xi32>
    %255 = arith.sitofp %254 : vector<16x8xi32> to vector<16x8xf32>
    %cst_99 = arith.constant dense<0.000000e+00> : vector<16x128xf32>
    %256 = tpu.matmul %248, %233, %cst_99 {dimension_numbers = #tpu.dot_dimension_numbers<[1], [0], [0], [1], [0, 0, 1, 1], [], []>} : vector<16x8xf32>, vector<8x128xf32>, vector<16x128xf32> -> vector<16x128xf32>
    %cst_100 = arith.constant dense<0.000000e+00> : vector<16x128xf32>
    %257 = tpu.matmul %255, %241, %cst_100 {dimension_numbers = #tpu.dot_dimension_numbers<[1], [0], [0], [1], [0, 0, 1, 1], [], []>} : vector<16x8xf32>, vector<8x128xf32>, vector<16x128xf32> -> vector<16x128xf32>
    %258 = arith.addf %256, %257 : vector<16x128xf32>
    %c0_101 = arith.constant 0 : index
    %c0_102 = arith.constant 0 : index
    %259 = vector.load %arg16[%c0_101, %c0_102] : memref<1x128xf32, #tpu.memory_space<vmem>>, vector<1x128xf32>
    %260 = vector.broadcast %259 : vector<1x128xf32> to vector<16x128xf32>
    %261 = arith.addf %258, %260 : vector<16x128xf32>
    %262 = arith.mulf %261, %261 : vector<16x128xf32>
    %263 = arith.mulf %261, %262 : vector<16x128xf32>
    %cst_103 = arith.constant 4.471500e-02 : f32
    %264 = vector.broadcast %cst_103 : f32 to vector<16x128xf32>
    %265 = arith.mulf %264, %263 : vector<16x128xf32>
    %266 = arith.addf %261, %265 : vector<16x128xf32>
    %cst_104 = arith.constant 0.797884583 : f32
    %267 = vector.broadcast %cst_104 : f32 to vector<16x128xf32>
    %268 = arith.mulf %267, %266 : vector<16x128xf32>
    %269 = math.tanh %268 : vector<16x128xf32>
    %cst_105 = arith.constant 1.000000e+00 : f32
    %270 = vector.broadcast %cst_105 : f32 to vector<16x128xf32>
    %271 = arith.addf %270, %269 : vector<16x128xf32>
    %cst_106 = arith.constant 5.000000e-01 : f32
    %272 = vector.broadcast %cst_106 : f32 to vector<16x128xf32>
    %273 = arith.mulf %272, %271 : vector<16x128xf32>
    %274 = arith.mulf %261, %273 : vector<16x128xf32>
    %c0_107 = arith.constant 0 : index
    %c0_108 = arith.constant 0 : index
    %c0_109 = arith.constant 0 : index
    %275 = vector.load %arg17[%c0_107, %c0_108, %c0_109] : memref<3x128x128xbf16, #tpu.memory_space<vmem>>, vector<3x128x128xbf16>
    %cst_110 = arith.constant 0.000000e+00 : bf16
    %276 = vector.broadcast %cst_110 : bf16 to vector<1x128xbf16>
    %277 = arith.truncf %274 : vector<16x128xf32> to vector<16x128xbf16>
    %278 = tpu.concatenate %276, %277, %276 in 0 : vector<1x128xbf16>, vector<16x128xbf16>, vector<1x128xbf16> -> vector<18x128xbf16>
    %cst_111 = arith.constant 0.000000e+00 : f32
    %279 = vector.broadcast %cst_111 : f32 to vector<16x128xf32>
    %280 = vector.extract_strided_slice %278 {offsets = [0, 0], sizes = [16, 128], strides = [1, 1]} : vector<18x128xbf16> to vector<16x128xbf16>
    %281 = vector.extract_strided_slice %275 {offsets = [0, 0, 0], sizes = [1, 128, 128], strides = [1, 1, 1]} : vector<3x128x128xbf16> to vector<1x128x128xbf16>
    %282 = vector.shape_cast %281 : vector<1x128x128xbf16> to vector<128x128xbf16>
    %cst_112 = arith.constant dense<0.000000e+00> : vector<16x128xf32>
    %283 = tpu.matmul %280, %282, %cst_112 {dimension_numbers = #tpu.dot_dimension_numbers<[1], [0], [0], [1], [0, 0, 1, 1], [], []>} : vector<16x128xbf16>, vector<128x128xbf16>, vector<16x128xf32> -> vector<16x128xf32>
    %284 = arith.addf %279, %283 : vector<16x128xf32>
    %285 = vector.extract_strided_slice %278 {offsets = [1, 0], sizes = [16, 128], strides = [1, 1]} : vector<18x128xbf16> to vector<16x128xbf16>
    %286 = vector.extract_strided_slice %275 {offsets = [1, 0, 0], sizes = [1, 128, 128], strides = [1, 1, 1]} : vector<3x128x128xbf16> to vector<1x128x128xbf16>
    %287 = vector.shape_cast %286 : vector<1x128x128xbf16> to vector<128x128xbf16>
    %cst_113 = arith.constant dense<0.000000e+00> : vector<16x128xf32>
    %288 = tpu.matmul %285, %287, %cst_113 {dimension_numbers = #tpu.dot_dimension_numbers<[1], [0], [0], [1], [0, 0, 1, 1], [], []>} : vector<16x128xbf16>, vector<128x128xbf16>, vector<16x128xf32> -> vector<16x128xf32>
    %289 = arith.addf %284, %288 : vector<16x128xf32>
    %290 = vector.extract_strided_slice %278 {offsets = [2, 0], sizes = [16, 128], strides = [1, 1]} : vector<18x128xbf16> to vector<16x128xbf16>
    %291 = vector.extract_strided_slice %275 {offsets = [2, 0, 0], sizes = [1, 128, 128], strides = [1, 1, 1]} : vector<3x128x128xbf16> to vector<1x128x128xbf16>
    %292 = vector.shape_cast %291 : vector<1x128x128xbf16> to vector<128x128xbf16>
    %cst_114 = arith.constant dense<0.000000e+00> : vector<16x128xf32>
    %293 = tpu.matmul %290, %292, %cst_114 {dimension_numbers = #tpu.dot_dimension_numbers<[1], [0], [0], [1], [0, 0, 1, 1], [], []>} : vector<16x128xbf16>, vector<128x128xbf16>, vector<16x128xf32> -> vector<16x128xf32>
    %294 = arith.addf %289, %293 : vector<16x128xf32>
    %c0_115 = arith.constant 0 : index
    %c0_116 = arith.constant 0 : index
    %c0_117 = arith.constant 0 : index
    %295 = vector.load %arg18[%c0_115, %c0_116, %c0_117] : memref<3x128x128xbf16, #tpu.memory_space<vmem>>, vector<3x128x128xbf16>
    %cst_118 = arith.constant 0.000000e+00 : bf16
    %296 = vector.broadcast %cst_118 : bf16 to vector<1x128xbf16>
    %297 = arith.truncf %100 : vector<16x128xf32> to vector<16x128xbf16>
    %298 = tpu.concatenate %296, %297, %296 in 0 : vector<1x128xbf16>, vector<16x128xbf16>, vector<1x128xbf16> -> vector<18x128xbf16>
    %cst_119 = arith.constant 0.000000e+00 : f32
    %299 = vector.broadcast %cst_119 : f32 to vector<16x128xf32>
    %300 = vector.extract_strided_slice %298 {offsets = [0, 0], sizes = [16, 128], strides = [1, 1]} : vector<18x128xbf16> to vector<16x128xbf16>
    %301 = vector.extract_strided_slice %295 {offsets = [0, 0, 0], sizes = [1, 128, 128], strides = [1, 1, 1]} : vector<3x128x128xbf16> to vector<1x128x128xbf16>
    %302 = vector.shape_cast %301 : vector<1x128x128xbf16> to vector<128x128xbf16>
    %cst_120 = arith.constant dense<0.000000e+00> : vector<16x128xf32>
    %303 = tpu.matmul %300, %302, %cst_120 {dimension_numbers = #tpu.dot_dimension_numbers<[1], [0], [0], [1], [0, 0, 1, 1], [], []>} : vector<16x128xbf16>, vector<128x128xbf16>, vector<16x128xf32> -> vector<16x128xf32>
    %304 = arith.addf %299, %303 : vector<16x128xf32>
    %305 = vector.extract_strided_slice %298 {offsets = [1, 0], sizes = [16, 128], strides = [1, 1]} : vector<18x128xbf16> to vector<16x128xbf16>
    %306 = vector.extract_strided_slice %295 {offsets = [1, 0, 0], sizes = [1, 128, 128], strides = [1, 1, 1]} : vector<3x128x128xbf16> to vector<1x128x128xbf16>
    %307 = vector.shape_cast %306 : vector<1x128x128xbf16> to vector<128x128xbf16>
    %cst_121 = arith.constant dense<0.000000e+00> : vector<16x128xf32>
    %308 = tpu.matmul %305, %307, %cst_121 {dimension_numbers = #tpu.dot_dimension_numbers<[1], [0], [0], [1], [0, 0, 1, 1], [], []>} : vector<16x128xbf16>, vector<128x128xbf16>, vector<16x128xf32> -> vector<16x128xf32>
    %309 = arith.addf %304, %308 : vector<16x128xf32>
    %310 = vector.extract_strided_slice %298 {offsets = [2, 0], sizes = [16, 128], strides = [1, 1]} : vector<18x128xbf16> to vector<16x128xbf16>
    %311 = vector.extract_strided_slice %295 {offsets = [2, 0, 0], sizes = [1, 128, 128], strides = [1, 1, 1]} : vector<3x128x128xbf16> to vector<1x128x128xbf16>
    %312 = vector.shape_cast %311 : vector<1x128x128xbf16> to vector<128x128xbf16>
    %cst_122 = arith.constant dense<0.000000e+00> : vector<16x128xf32>
    %313 = tpu.matmul %310, %312, %cst_122 {dimension_numbers = #tpu.dot_dimension_numbers<[1], [0], [0], [1], [0, 0, 1, 1], [], []>} : vector<16x128xbf16>, vector<128x128xbf16>, vector<16x128xf32> -> vector<16x128xf32>
    %314 = arith.addf %309, %313 : vector<16x128xf32>
    %315 = arith.addf %294, %314 : vector<16x128xf32>
    %c0_123 = arith.constant 0 : index
    %c0_124 = arith.constant 0 : index
    %316 = vector.load %arg19[%c0_123, %c0_124] : memref<1x128xf32, #tpu.memory_space<vmem>>, vector<1x128xf32>
    %317 = vector.broadcast %316 : vector<1x128xf32> to vector<16x128xf32>
    %318 = arith.addf %315, %317 : vector<16x128xf32>
    %319 = arith.mulf %318, %318 : vector<16x128xf32>
    %320 = arith.mulf %318, %319 : vector<16x128xf32>
    %cst_125 = arith.constant 4.471500e-02 : f32
    %321 = vector.broadcast %cst_125 : f32 to vector<16x128xf32>
    %322 = arith.mulf %321, %320 : vector<16x128xf32>
    %323 = arith.addf %318, %322 : vector<16x128xf32>
    %cst_126 = arith.constant 0.797884583 : f32
    %324 = vector.broadcast %cst_126 : f32 to vector<16x128xf32>
    %325 = arith.mulf %324, %323 : vector<16x128xf32>
    %326 = math.tanh %325 : vector<16x128xf32>
    %cst_127 = arith.constant 1.000000e+00 : f32
    %327 = vector.broadcast %cst_127 : f32 to vector<16x128xf32>
    %328 = arith.addf %327, %326 : vector<16x128xf32>
    %cst_128 = arith.constant 5.000000e-01 : f32
    %329 = vector.broadcast %cst_128 : f32 to vector<16x128xf32>
    %330 = arith.mulf %329, %328 : vector<16x128xf32>
    %331 = arith.mulf %318, %330 : vector<16x128xf32>
    %c0_129 = arith.constant 0 : index
    %c0_130 = arith.constant 0 : index
    %c0_131 = arith.constant 0 : index
    %332 = vector.load %arg20[%c0_129, %c0_130, %c0_131] : memref<3x128x128xbf16, #tpu.memory_space<vmem>>, vector<3x128x128xbf16>
    %cst_132 = arith.constant 0.000000e+00 : bf16
    %333 = vector.broadcast %cst_132 : bf16 to vector<1x128xbf16>
    %334 = arith.truncf %331 : vector<16x128xf32> to vector<16x128xbf16>
    %335 = tpu.concatenate %333, %334, %333 in 0 : vector<1x128xbf16>, vector<16x128xbf16>, vector<1x128xbf16> -> vector<18x128xbf16>
    %cst_133 = arith.constant 0.000000e+00 : f32
    %336 = vector.broadcast %cst_133 : f32 to vector<16x128xf32>
    %337 = vector.extract_strided_slice %335 {offsets = [0, 0], sizes = [16, 128], strides = [1, 1]} : vector<18x128xbf16> to vector<16x128xbf16>
    %338 = vector.extract_strided_slice %332 {offsets = [0, 0, 0], sizes = [1, 128, 128], strides = [1, 1, 1]} : vector<3x128x128xbf16> to vector<1x128x128xbf16>
    %339 = vector.shape_cast %338 : vector<1x128x128xbf16> to vector<128x128xbf16>
    %cst_134 = arith.constant dense<0.000000e+00> : vector<16x128xf32>
    %340 = tpu.matmul %337, %339, %cst_134 {dimension_numbers = #tpu.dot_dimension_numbers<[1], [0], [0], [1], [0, 0, 1, 1], [], []>} : vector<16x128xbf16>, vector<128x128xbf16>, vector<16x128xf32> -> vector<16x128xf32>
    %341 = arith.addf %336, %340 : vector<16x128xf32>
    %342 = vector.extract_strided_slice %335 {offsets = [1, 0], sizes = [16, 128], strides = [1, 1]} : vector<18x128xbf16> to vector<16x128xbf16>
    %343 = vector.extract_strided_slice %332 {offsets = [1, 0, 0], sizes = [1, 128, 128], strides = [1, 1, 1]} : vector<3x128x128xbf16> to vector<1x128x128xbf16>
    %344 = vector.shape_cast %343 : vector<1x128x128xbf16> to vector<128x128xbf16>
    %cst_135 = arith.constant dense<0.000000e+00> : vector<16x128xf32>
    %345 = tpu.matmul %342, %344, %cst_135 {dimension_numbers = #tpu.dot_dimension_numbers<[1], [0], [0], [1], [0, 0, 1, 1], [], []>} : vector<16x128xbf16>, vector<128x128xbf16>, vector<16x128xf32> -> vector<16x128xf32>
    %346 = arith.addf %341, %345 : vector<16x128xf32>
    %347 = vector.extract_strided_slice %335 {offsets = [2, 0], sizes = [16, 128], strides = [1, 1]} : vector<18x128xbf16> to vector<16x128xbf16>
    %348 = vector.extract_strided_slice %332 {offsets = [2, 0, 0], sizes = [1, 128, 128], strides = [1, 1, 1]} : vector<3x128x128xbf16> to vector<1x128x128xbf16>
    %349 = vector.shape_cast %348 : vector<1x128x128xbf16> to vector<128x128xbf16>
    %cst_136 = arith.constant dense<0.000000e+00> : vector<16x128xf32>
    %350 = tpu.matmul %347, %349, %cst_136 {dimension_numbers = #tpu.dot_dimension_numbers<[1], [0], [0], [1], [0, 0, 1, 1], [], []>} : vector<16x128xbf16>, vector<128x128xbf16>, vector<16x128xf32> -> vector<16x128xf32>
    %351 = arith.addf %346, %350 : vector<16x128xf32>
    %c0_137 = arith.constant 0 : index
    %c0_138 = arith.constant 0 : index
    %352 = vector.load %arg21[%c0_137, %c0_138] : memref<1x128xf32, #tpu.memory_space<vmem>>, vector<1x128xf32>
    %353 = vector.broadcast %352 : vector<1x128xf32> to vector<16x128xf32>
    %354 = arith.addf %351, %353 : vector<16x128xf32>
    %c0_139 = arith.constant 0 : index
    %c0_140 = arith.constant 0 : index
    %c0_141 = arith.constant 0 : index
    %355 = vector.load %arg22[%c0_139, %c0_140, %c0_141] : memref<7x128x128xbf16, #tpu.memory_space<vmem>>, vector<7x128x128xbf16>
    %cst_142 = arith.constant 0.000000e+00 : bf16
    %356 = vector.broadcast %cst_142 : bf16 to vector<3x128xbf16>
    %357 = arith.truncf %354 : vector<16x128xf32> to vector<16x128xbf16>
    %358 = tpu.concatenate %356, %357, %356 in 0 : vector<3x128xbf16>, vector<16x128xbf16>, vector<3x128xbf16> -> vector<22x128xbf16>
    %cst_143 = arith.constant 0.000000e+00 : f32
    %359 = vector.broadcast %cst_143 : f32 to vector<16x128xf32>
    %360 = vector.extract_strided_slice %358 {offsets = [0, 0], sizes = [16, 128], strides = [1, 1]} : vector<22x128xbf16> to vector<16x128xbf16>
    %361 = vector.extract_strided_slice %355 {offsets = [0, 0, 0], sizes = [1, 128, 128], strides = [1, 1, 1]} : vector<7x128x128xbf16> to vector<1x128x128xbf16>
    %362 = vector.shape_cast %361 : vector<1x128x128xbf16> to vector<128x128xbf16>
    %cst_144 = arith.constant dense<0.000000e+00> : vector<16x128xf32>
    %363 = tpu.matmul %360, %362, %cst_144 {dimension_numbers = #tpu.dot_dimension_numbers<[1], [0], [0], [1], [0, 0, 1, 1], [], []>} : vector<16x128xbf16>, vector<128x128xbf16>, vector<16x128xf32> -> vector<16x128xf32>
    %364 = arith.addf %359, %363 : vector<16x128xf32>
    %365 = vector.extract_strided_slice %358 {offsets = [1, 0], sizes = [16, 128], strides = [1, 1]} : vector<22x128xbf16> to vector<16x128xbf16>
    %366 = vector.extract_strided_slice %355 {offsets = [1, 0, 0], sizes = [1, 128, 128], strides = [1, 1, 1]} : vector<7x128x128xbf16> to vector<1x128x128xbf16>
    %367 = vector.shape_cast %366 : vector<1x128x128xbf16> to vector<128x128xbf16>
    %cst_145 = arith.constant dense<0.000000e+00> : vector<16x128xf32>
    %368 = tpu.matmul %365, %367, %cst_145 {dimension_numbers = #tpu.dot_dimension_numbers<[1], [0], [0], [1], [0, 0, 1, 1], [], []>} : vector<16x128xbf16>, vector<128x128xbf16>, vector<16x128xf32> -> vector<16x128xf32>
    %369 = arith.addf %364, %368 : vector<16x128xf32>
    %370 = vector.extract_strided_slice %358 {offsets = [2, 0], sizes = [16, 128], strides = [1, 1]} : vector<22x128xbf16> to vector<16x128xbf16>
    %371 = vector.extract_strided_slice %355 {offsets = [2, 0, 0], sizes = [1, 128, 128], strides = [1, 1, 1]} : vector<7x128x128xbf16> to vector<1x128x128xbf16>
    %372 = vector.shape_cast %371 : vector<1x128x128xbf16> to vector<128x128xbf16>
    %cst_146 = arith.constant dense<0.000000e+00> : vector<16x128xf32>
    %373 = tpu.matmul %370, %372, %cst_146 {dimension_numbers = #tpu.dot_dimension_numbers<[1], [0], [0], [1], [0, 0, 1, 1], [], []>} : vector<16x128xbf16>, vector<128x128xbf16>, vector<16x128xf32> -> vector<16x128xf32>
    %374 = arith.addf %369, %373 : vector<16x128xf32>
    %375 = vector.extract_strided_slice %358 {offsets = [3, 0], sizes = [16, 128], strides = [1, 1]} : vector<22x128xbf16> to vector<16x128xbf16>
    %376 = vector.extract_strided_slice %355 {offsets = [3, 0, 0], sizes = [1, 128, 128], strides = [1, 1, 1]} : vector<7x128x128xbf16> to vector<1x128x128xbf16>
    %377 = vector.shape_cast %376 : vector<1x128x128xbf16> to vector<128x128xbf16>
    %cst_147 = arith.constant dense<0.000000e+00> : vector<16x128xf32>
    %378 = tpu.matmul %375, %377, %cst_147 {dimension_numbers = #tpu.dot_dimension_numbers<[1], [0], [0], [1], [0, 0, 1, 1], [], []>} : vector<16x128xbf16>, vector<128x128xbf16>, vector<16x128xf32> -> vector<16x128xf32>
    %379 = arith.addf %374, %378 : vector<16x128xf32>
    %380 = vector.extract_strided_slice %358 {offsets = [4, 0], sizes = [16, 128], strides = [1, 1]} : vector<22x128xbf16> to vector<16x128xbf16>
    %381 = vector.extract_strided_slice %355 {offsets = [4, 0, 0], sizes = [1, 128, 128], strides = [1, 1, 1]} : vector<7x128x128xbf16> to vector<1x128x128xbf16>
    %382 = vector.shape_cast %381 : vector<1x128x128xbf16> to vector<128x128xbf16>
    %cst_148 = arith.constant dense<0.000000e+00> : vector<16x128xf32>
    %383 = tpu.matmul %380, %382, %cst_148 {dimension_numbers = #tpu.dot_dimension_numbers<[1], [0], [0], [1], [0, 0, 1, 1], [], []>} : vector<16x128xbf16>, vector<128x128xbf16>, vector<16x128xf32> -> vector<16x128xf32>
    %384 = arith.addf %379, %383 : vector<16x128xf32>
    %385 = vector.extract_strided_slice %358 {offsets = [5, 0], sizes = [16, 128], strides = [1, 1]} : vector<22x128xbf16> to vector<16x128xbf16>
    %386 = vector.extract_strided_slice %355 {offsets = [5, 0, 0], sizes = [1, 128, 128], strides = [1, 1, 1]} : vector<7x128x128xbf16> to vector<1x128x128xbf16>
    %387 = vector.shape_cast %386 : vector<1x128x128xbf16> to vector<128x128xbf16>
    %cst_149 = arith.constant dense<0.000000e+00> : vector<16x128xf32>
    %388 = tpu.matmul %385, %387, %cst_149 {dimension_numbers = #tpu.dot_dimension_numbers<[1], [0], [0], [1], [0, 0, 1, 1], [], []>} : vector<16x128xbf16>, vector<128x128xbf16>, vector<16x128xf32> -> vector<16x128xf32>
    %389 = arith.addf %384, %388 : vector<16x128xf32>
    %390 = vector.extract_strided_slice %358 {offsets = [6, 0], sizes = [16, 128], strides = [1, 1]} : vector<22x128xbf16> to vector<16x128xbf16>
    %391 = vector.extract_strided_slice %355 {offsets = [6, 0, 0], sizes = [1, 128, 128], strides = [1, 1, 1]} : vector<7x128x128xbf16> to vector<1x128x128xbf16>
    %392 = vector.shape_cast %391 : vector<1x128x128xbf16> to vector<128x128xbf16>
    %cst_150 = arith.constant dense<0.000000e+00> : vector<16x128xf32>
    %393 = tpu.matmul %390, %392, %cst_150 {dimension_numbers = #tpu.dot_dimension_numbers<[1], [0], [0], [1], [0, 0, 1, 1], [], []>} : vector<16x128xbf16>, vector<128x128xbf16>, vector<16x128xf32> -> vector<16x128xf32>
    %394 = arith.addf %389, %393 : vector<16x128xf32>
    %c0_151 = arith.constant 0 : index
    %c0_152 = arith.constant 0 : index
    %395 = vector.load %arg23[%c0_151, %c0_152] : memref<1x128xf32, #tpu.memory_space<vmem>>, vector<1x128xf32>
    %396 = vector.broadcast %395 : vector<1x128xf32> to vector<16x128xf32>
    %397 = arith.addf %394, %396 : vector<16x128xf32>
    %c0_153 = arith.constant 0 : index
    %c0_154 = arith.constant 0 : index
    %398 = vector.load %arg24[%c0_153, %c0_154] : memref<128x128xf32, #tpu.memory_space<vmem>>, vector<128x128xf32>
    %cst_155 = arith.constant dense<0.000000e+00> : vector<16x128xf32>
    %399 = tpu.matmul %397, %398, %cst_155 {dimension_numbers = #tpu.dot_dimension_numbers<[1], [0], [0], [1], [0, 0, 1, 1], [], []>} : vector<16x128xf32>, vector<128x128xf32>, vector<16x128xf32> -> vector<16x128xf32>
    %400 = arith.subf %397, %399 : vector<16x128xf32>
    %401 = arith.mulf %400, %400 : vector<16x128xf32>
    %cst_156 = arith.constant dense<0.000000e+00> : vector<16x128xf32>
    %402 = tpu.matmul %401, %398, %cst_156 {dimension_numbers = #tpu.dot_dimension_numbers<[1], [0], [0], [1], [0, 0, 1, 1], [], []>} : vector<16x128xf32>, vector<128x128xf32>, vector<16x128xf32> -> vector<16x128xf32>
    %cst_157 = arith.constant 9.99999997E-7 : f32
    %403 = vector.broadcast %cst_157 : f32 to vector<16x128xf32>
    %404 = arith.addf %402, %403 : vector<16x128xf32>
    %405 = math.rsqrt %404 : vector<16x128xf32>
    %406 = arith.mulf %400, %405 : vector<16x128xf32>
    %c0_158 = arith.constant 0 : index
    %c0_159 = arith.constant 0 : index
    %407 = vector.load %arg25[%c0_158, %c0_159] : memref<1x128xf32, #tpu.memory_space<vmem>>, vector<1x128xf32>
    %408 = vector.broadcast %407 : vector<1x128xf32> to vector<16x128xf32>
    %409 = arith.mulf %406, %408 : vector<16x128xf32>
    %c0_160 = arith.constant 0 : index
    %c0_161 = arith.constant 0 : index
    %410 = vector.load %arg26[%c0_160, %c0_161] : memref<1x128xf32, #tpu.memory_space<vmem>>, vector<1x128xf32>
    %411 = vector.broadcast %410 : vector<1x128xf32> to vector<16x128xf32>
    %412 = arith.addf %409, %411 : vector<16x128xf32>
    %413 = arith.truncf %412 : vector<16x128xf32> to vector<16x128xbf16>
    %c0_162 = arith.constant 0 : index
    %c0_163 = arith.constant 0 : index
    %414 = vector.load %arg27[%c0_162, %c0_163] : memref<128x512xbf16, #tpu.memory_space<vmem>>, vector<128x512xbf16>
    %cst_164 = arith.constant dense<0.000000e+00> : vector<16x512xf32>
    %415 = tpu.matmul %413, %414, %cst_164 {dimension_numbers = #tpu.dot_dimension_numbers<[1], [0], [0], [1], [0, 0, 1, 1], [], []>} : vector<16x128xbf16>, vector<128x512xbf16>, vector<16x512xf32> -> vector<16x512xf32>
    %c0_165 = arith.constant 0 : index
    %c0_166 = arith.constant 0 : index
    %416 = vector.load %arg28[%c0_165, %c0_166] : memref<1x512xf32, #tpu.memory_space<vmem>>, vector<1x512xf32>
    %417 = vector.broadcast %416 : vector<1x512xf32> to vector<16x512xf32>
    %418 = arith.addf %415, %417 : vector<16x512xf32>
    %419 = arith.mulf %418, %418 : vector<16x512xf32>
    %420 = arith.mulf %418, %419 : vector<16x512xf32>
    %cst_167 = arith.constant 4.471500e-02 : f32
    %421 = vector.broadcast %cst_167 : f32 to vector<16x512xf32>
    %422 = arith.mulf %421, %420 : vector<16x512xf32>
    %423 = arith.addf %418, %422 : vector<16x512xf32>
    %cst_168 = arith.constant 0.797884583 : f32
    %424 = vector.broadcast %cst_168 : f32 to vector<16x512xf32>
    %425 = arith.mulf %424, %423 : vector<16x512xf32>
    %426 = math.tanh %425 : vector<16x512xf32>
    %cst_169 = arith.constant 1.000000e+00 : f32
    %427 = vector.broadcast %cst_169 : f32 to vector<16x512xf32>
    %428 = arith.addf %427, %426 : vector<16x512xf32>
    %cst_170 = arith.constant 5.000000e-01 : f32
    %429 = vector.broadcast %cst_170 : f32 to vector<16x512xf32>
    %430 = arith.mulf %429, %428 : vector<16x512xf32>
    %431 = arith.mulf %418, %430 : vector<16x512xf32>
    %432 = arith.truncf %431 : vector<16x512xf32> to vector<16x512xbf16>
    %c0_171 = arith.constant 0 : index
    %c0_172 = arith.constant 0 : index
    %433 = vector.load %arg29[%c0_171, %c0_172] : memref<512x128xbf16, #tpu.memory_space<vmem>>, vector<512x128xbf16>
    %cst_173 = arith.constant dense<0.000000e+00> : vector<16x128xf32>
    %434 = tpu.matmul %432, %433, %cst_173 {dimension_numbers = #tpu.dot_dimension_numbers<[1], [0], [0], [1], [0, 0, 1, 1], [], []>} : vector<16x512xbf16>, vector<512x128xbf16>, vector<16x128xf32> -> vector<16x128xf32>
    %c0_174 = arith.constant 0 : index
    %c0_175 = arith.constant 0 : index
    %435 = vector.load %arg30[%c0_174, %c0_175] : memref<1x128xf32, #tpu.memory_space<vmem>>, vector<1x128xf32>
    %436 = vector.broadcast %435 : vector<1x128xf32> to vector<16x128xf32>
    %437 = arith.addf %434, %436 : vector<16x128xf32>
    %438 = arith.addf %354, %437 : vector<16x128xf32>
    %c0_176 = arith.constant 0 : index
    %c0_177 = arith.constant 0 : index
    %c0_178 = arith.constant 0 : index
    %439 = vector.load %arg31[%c0_176, %c0_177, %c0_178] : memref<1x16x128xf32, #tpu.memory_space<vmem>>, vector<1x16x128xf32>
    %440 = vector.shape_cast %439 : vector<1x16x128xf32> to vector<16x128xf32>
    %441 = vector.shape_cast %438 : vector<16x128xf32> to vector<1x16x128xf32>
    tpu.vector_store %arg31[%c0_176, %c0_177, %c0_178], %441 {strides = array<i32>} : memref<1x16x128xf32, #tpu.memory_space<vmem>>, vector<1x16x128xf32>,
    return
  }
  func.func @transform_0(%arg0: i32) -> (i32, i32, i32) {
    %c0_i32 = arith.constant 0 : i32
    %c0_i32_0 = arith.constant 0 : i32
    %c0_i32_1 = arith.constant 0 : i32
    return %arg0, %c0_i32, %c0_i32_0 : i32, i32, i32
  }
  func.func @transform_1(%arg0: i32) -> (i32, i32, i32) {
    %c0_i32 = arith.constant 0 : i32
    %c0_i32_0 = arith.constant 0 : i32
    %c0_i32_1 = arith.constant 0 : i32
    %c0_i32_2 = arith.constant 0 : i32
    return %c0_i32, %c0_i32_0, %c0_i32_1 : i32, i32, i32
  }
  func.func @transform_2(%arg0: i32) -> (i32, i32) {
    %c0_i32 = arith.constant 0 : i32
    %c0_i32_0 = arith.constant 0 : i32
    %c0_i32_1 = arith.constant 0 : i32
    return %c0_i32, %c0_i32_0 : i32, i32
  }
  func.func @transform_3(%arg0: i32) -> (i32, i32, i32, i32) {
    %c0_i32 = arith.constant 0 : i32
    %c0_i32_0 = arith.constant 0 : i32
    %c0_i32_1 = arith.constant 0 : i32
    %c0_i32_2 = arith.constant 0 : i32
    %c0_i32_3 = arith.constant 0 : i32
    return %c0_i32, %c0_i32_0, %c0_i32_1, %c0_i32_2 : i32, i32, i32, i32
  }
  func.func @transform_4(%arg0: i32) -> (i32, i32, i32) {
    %c0_i32 = arith.constant 0 : i32
    %c0_i32_0 = arith.constant 0 : i32
    %c0_i32_1 = arith.constant 0 : i32
    return %arg0, %c0_i32, %c0_i32_0 : i32, i32, i32
  }
  func.func @transform_5(%arg0: i32) -> (i32, i32, i32, i32) {
    %c0_i32 = arith.constant 0 : i32
    %c0_i32_0 = arith.constant 0 : i32
    %c0_i32_1 = arith.constant 0 : i32
    %c0_i32_2 = arith.constant 0 : i32
    %c0_i32_3 = arith.constant 0 : i32
    return %c0_i32, %c0_i32_0, %c0_i32_1, %c0_i32_2 : i32, i32, i32, i32
  }
  func.func @transform_6(%arg0: i32) -> (i32, i32) {
    %c0_i32 = arith.constant 0 : i32
    %c0_i32_0 = arith.constant 0 : i32
    %c0_i32_1 = arith.constant 0 : i32
    return %c0_i32, %c0_i32_0 : i32, i32
  }
  func.func @transform_7(%arg0: i32) -> (i32, i32, i32) {
    %c0_i32 = arith.constant 0 : i32
    %c0_i32_0 = arith.constant 0 : i32
    %c0_i32_1 = arith.constant 0 : i32
    %c0_i32_2 = arith.constant 0 : i32
    return %c0_i32, %c0_i32_0, %c0_i32_1 : i32, i32, i32
  }
  func.func @transform_8(%arg0: i32) -> (i32, i32) {
    %c0_i32 = arith.constant 0 : i32
    %c0_i32_0 = arith.constant 0 : i32
    %c0_i32_1 = arith.constant 0 : i32
    return %c0_i32, %c0_i32_0 : i32, i32
  }
  func.func @transform_9(%arg0: i32) -> (i32, i32, i32) {
    %c0_i32 = arith.constant 0 : i32
    %c0_i32_0 = arith.constant 0 : i32
    %c0_i32_1 = arith.constant 0 : i32
    %c0_i32_2 = arith.constant 0 : i32
    return %c0_i32, %c0_i32_0, %c0_i32_1 : i32, i32, i32
  }
  func.func @transform_10(%arg0: i32) -> (i32, i32, i32) {
    %c0_i32 = arith.constant 0 : i32
    %c0_i32_0 = arith.constant 0 : i32
    %c0_i32_1 = arith.constant 0 : i32
    return %arg0, %c0_i32, %c0_i32_0 : i32, i32, i32
  }
  func.func @transform_11(%arg0: i32) -> (i32, i32, i32) {
    %c0_i32 = arith.constant 0 : i32
    %c0_i32_0 = arith.constant 0 : i32
    %c0_i32_1 = arith.constant 0 : i32
    %c0_i32_2 = arith.constant 0 : i32
    return %c0_i32, %c0_i32_0, %c0_i32_1 : i32, i32, i32
  }
  func.func @transform_12(%arg0: i32) -> (i32, i32) {
    %c0_i32 = arith.constant 0 : i32
    %c0_i32_0 = arith.constant 0 : i32
    %c0_i32_1 = arith.constant 0 : i32
    return %c0_i32, %c0_i32_0 : i32, i32
  }
  func.func @transform_13(%arg0: i32) -> (i32, i32, i32) {
    %c0_i32 = arith.constant 0 : i32
    %c0_i32_0 = arith.constant 0 : i32
    %c0_i32_1 = arith.constant 0 : i32
    %c0_i32_2 = arith.constant 0 : i32
    return %c0_i32, %c0_i32_0, %c0_i32_1 : i32, i32, i32
  }
  func.func @transform_14(%arg0: i32) -> (i32, i32, i32) {
    %c0_i32 = arith.constant 0 : i32
    %c0_i32_0 = arith.constant 0 : i32
    %c0_i32_1 = arith.constant 0 : i32
    %c0_i32_2 = arith.constant 0 : i32
    return %c0_i32, %c0_i32_0, %c0_i32_1 : i32, i32, i32
  }
  func.func @transform_15(%arg0: i32) -> (i32, i32) {
    %c0_i32 = arith.constant 0 : i32
    %c0_i32_0 = arith.constant 0 : i32
    %c0_i32_1 = arith.constant 0 : i32
    return %c0_i32, %c0_i32_0 : i32, i32
  }
  func.func @transform_16(%arg0: i32) -> (i32, i32, i32) {
    %c0_i32 = arith.constant 0 : i32
    %c0_i32_0 = arith.constant 0 : i32
    %c0_i32_1 = arith.constant 0 : i32
    %c0_i32_2 = arith.constant 0 : i32
    return %c0_i32, %c0_i32_0, %c0_i32_1 : i32, i32, i32
  }
  func.func @transform_17(%arg0: i32) -> (i32, i32, i32) {
    %c0_i32 = arith.constant 0 : i32
    %c0_i32_0 = arith.constant 0 : i32
    %c0_i32_1 = arith.constant 0 : i32
    %c0_i32_2 = arith.constant 0 : i32
    return %c0_i32, %c0_i32_0, %c0_i32_1 : i32, i32, i32
  }
  func.func @transform_18(%arg0: i32) -> (i32, i32) {
    %c0_i32 = arith.constant 0 : i32
    %c0_i32_0 = arith.constant 0 : i32
    %c0_i32_1 = arith.constant 0 : i32
    return %c0_i32, %c0_i32_0 : i32, i32
  }
  func.func @transform_19(%arg0: i32) -> (i32, i32, i32) {
    %c0_i32 = arith.constant 0 : i32
    %c0_i32_0 = arith.constant 0 : i32
    %c0_i32_1 = arith.constant 0 : i32
    %c0_i32_2 = arith.constant 0 : i32
    return %c0_i32, %c0_i32_0, %c0_i32_1 : i32, i32, i32
  }
  func.func @transform_20(%arg0: i32) -> (i32, i32) {
    %c0_i32 = arith.constant 0 : i32
    %c0_i32_0 = arith.constant 0 : i32
    %c0_i32_1 = arith.constant 0 : i32
    return %c0_i32, %c0_i32_0 : i32, i32
  }
  func.func @transform_21(%arg0: i32) -> (i32, i32, i32) {
    %c0_i32 = arith.constant 0 : i32
    %c0_i32_0 = arith.constant 0 : i32
    %c0_i32_1 = arith.constant 0 : i32
    %c0_i32_2 = arith.constant 0 : i32
    return %c0_i32, %c0_i32_0, %c0_i32_1 : i32, i32, i32
  }
  func.func @transform_22(%arg0: i32) -> (i32, i32) {
    %c0_i32 = arith.constant 0 : i32
    %c0_i32_0 = arith.constant 0 : i32
    %c0_i32_1 = arith.constant 0 : i32
    return %c0_i32, %c0_i32_0 : i32, i32
  }
  func.func @transform_23(%arg0: i32) -> (i32, i32) {
    %c0_i32 = arith.constant 0 : i32
    %c0_i32_0 = arith.constant 0 : i32
    %c0_i32_1 = arith.constant 0 : i32
    return %c0_i32, %c0_i32_0 : i32, i32
  }
  func.func @transform_24(%arg0: i32) -> (i32, i32) {
    %c0_i32 = arith.constant 0 : i32
    %c0_i32_0 = arith.constant 0 : i32
    %c0_i32_1 = arith.constant 0 : i32
    return %c0_i32, %c0_i32_0 : i32, i32
  }
  func.func @transform_25(%arg0: i32) -> (i32, i32) {
    %c0_i32 = arith.constant 0 : i32
    %c0_i32_0 = arith.constant 0 : i32
    %c0_i32_1 = arith.constant 0 : i32
    return %c0_i32, %c0_i32_0 : i32, i32
  }
  func.func @transform_26(%arg0: i32) -> (i32, i32) {
    %c0_i32 = arith.constant 0 : i32
    %c0_i32_0 = arith.constant 0 : i32
    %c0_i32_1 = arith.constant 0 : i32
    return %c0_i32, %c0_i32_0 : i32, i32
  }
  func.func @transform_27(%arg0: i32) -> (i32, i32) {
    %c0_i32 = arith.constant 0 : i32
    %c0_i32_0 = arith.constant 0 : i32
    %c0_i32_1 = arith.constant 0 : i32
    return %c0_i32, %c0_i32_0 : i32, i32
  }
  func.func @transform_28(%arg0: i32) -> (i32, i32) {
    %c0_i32 = arith.constant 0 : i32
    %c0_i32_0 = arith.constant 0 : i32
    %c0_i32_1 = arith.constant 0 : i32
    return %c0_i32, %c0_i32_0 : i32, i32
  }
  func.func @transform_29(%arg0: i32) -> (i32, i32) {
    %c0_i32 = arith.constant 0 : i32
    %c0_i32_0 = arith.constant 0 : i32
    %c0_i32_1 = arith.constant 0 : i32
    return %c0_i32, %c0_i32_0 : i32, i32
  }
  func.func @transform_30(%arg0: i32) -> (i32, i32, i32) {
    %c0_i32 = arith.constant 0 : i32
    %c0_i32_0 = arith.constant 0 : i32
    %c0_i32_1 = arith.constant 0 : i32
    return %arg0, %c0_i32, %c0_i32_0 : i32, i32, i32
  }
}

</mosaic_0001>

<bundles_post_ra>
// kernel: tile.133
= control target key start
LH: loop header
LB: loop body
LE: loop exit
PB: predicated region body
PF: predicated region fallthrough
CT: control target
= control target key end

     0   :  { %s28_s0 = inlined_call_operand.vmem [shape: f32[32], index: 0, kind: input, shape index: {}]   ;;  %s29_s1 = inlined_call_operand.vmem [shape: f32[16,32], index: 1, kind: output, shape index: {}]  }
   0x1   :  { %v4_v0 = vld [vmem:[%s28_s0] ss:$0 sm:$0xff] }
   0x2   :  { %5 = vst [vmem:[%s29_s1] sm:$0xff] %v4_v0  ;;  %8 = vst [vmem:[%s29_s1 + $0x8] sm:$0xff] %v4_v0 }

// kernel: tile.134
= control target key start
LH: loop header
LB: loop body
LE: loop exit
PB: predicated region body
PF: predicated region fallthrough
CT: control target
= control target key end

     0   :  { %s62_s8 = smov 96   ;;  %vm3_vm0 = vcmask 261120   ;;  %s64_s15 = smov 64   ;;  %vm9_vm1 = vcmask 1048320   ;;  %vm15_vm2 = vcmask 785920   ;;  %vm21_vm3 = vcmask 523520   ;;  %s99_s0 = inlined_call_operand.vmem [shape: f32[16,32], index: 0, kind: input, shape index: {}]   ;;  %s100_s1 = inlined_call_operand.vmem [shape: f32[1,512], index: 1, kind: output, shape index: {}]  }
   0x1   :  { %v53_v0 = vld [vmem:[%s99_s0 + $0x3] ss:$4 sm:$0xf]   ;;  %v54_v1 = vld [vmem:[%s99_s0 + $0x2] ss:$4 sm:$0xf]  }
   0x2   :  { %7 = vrot.lane.b32.xlu0 %v53_v0, %s62_s8  ;;  %v55_v2 = vld [vmem:[%s99_s0 + $0x1] ss:$4 sm:$0xf]   ;;  %v2_v3 = vld [vmem:[%s99_s0] ss:$4 sm:$0xf]  }
   0x3   :  { %s63_s0 = smov 32   ;;  %4 = vst.msk [vmem:[#allocation0] ss:$8 sm:$0xf] %vm3_vm0, %v2_v3  }
   0x4   :  { %19 = vrot.lane.b32.xlu1 %v55_v2, %s63_s0 }
   0x6   :  { %13 = vrot.lane.b32.xlu0 %v54_v1, %s64_s15 }
  0x74   :  { %v8_v4 = vpop.permute.xlu0 %7  }
  0x75   :  { %10 = vst.msk [vmem:[#allocation0] ss:$8 sm:$0xf] %vm9_vm1, %v8_v4  }
  0x76   :  { %v20_v5 = vpop.permute.xlu1 %19  }
  0x78   :  { %v14_v6 = vpop.permute.xlu0 %13  }
  0x79   :  { %16 = vst.msk [vmem:[#allocation0] ss:$8 sm:$0xf] %vm15_vm2, %v14_v6  }
  0x7a   :  { %22 = vst.msk [vmem:[#allocation0] ss:$8 sm:$0xf] %vm21_vm3, %v20_v5  }
  0x81   :  { %v27_v7 = vld [vmem:[#allocation0] sm:$0x1]  ;;  %v32_v8 = vld [vmem:[#allocation0 + $0x8] sm:$0x1]  ;;  %v38_v9 = vld [vmem:[#allocation0 + $0x10] sm:$0x1] }
  0x82   :  { %30 = vst [vmem:[%s100_s1] sm:$0x1] %v27_v7  ;;  %56 = vst [vmem:[%s100_s1 + $0x1] sm:$0x1] %v32_v8  ;;  %v45_v10 = vld [vmem:[#allocation0 + $0x18] sm:$0x1] }
  0x83   :  { %57 = vst [vmem:[%s100_s1 + $0x2] sm:$0x1] %v38_v9  ;;  %58 = vst [vmem:[%s100_s1 + $0x3] sm:$0x1] %v45_v10 }

// kernel: tile.118
= control target key start
LH: loop header
LB: loop body
LE: loop exit
PB: predicated region body
PF: predicated region fallthrough
CT: control target
= control target key end

     0   :  { %s28_s0 = inlined_call_operand.vmem [shape: f32[8], index: 0, kind: input, shape index: {}]   ;;  %s29_s1 = inlined_call_operand.vmem [shape: f32[16,8], index: 1, kind: output, shape index: {}]  }
   0x1   :  { %v4_v0 = vld [vmem:[%s28_s0] ss:$0 sm:$0xff] }
   0x2   :  { %5 = vst [vmem:[%s29_s1] sm:$0xff] %v4_v0  ;;  %8 = vst [vmem:[%s29_s1 + $0x8] sm:$0xff] %v4_v0 }

// kernel: tile.119
= control target key start
LH: loop header
LB: loop body
LE: loop exit
PB: predicated region body
PF: predicated region fallthrough
CT: control target
= control target key end

     0   :  { %s133_s10 = smov 120   ;;  %s134_s11 = smov 104   ;;  %vm3_vm0 = vcmask 64512   ;;  %vm9_vm1 = vcmask 1048512   ;;  %vm15_vm2 = vcmask 982912   ;;  %vm21_vm3 = vcmask 917312   ;;  %s209_s0 = inlined_call_operand.vmem [shape: f32[16,8], index: 0, kind: input, shape index: {}]   ;;  %s210_s1 = inlined_call_operand.vmem [shape: f32[1,128], index: 1, kind: output, shape index: {}]  }
   0x1   :  { %v103_v0 = vld [vmem:[%s209_s0 + $0xf] sm:$0x1]   ;;  %v105_v1 = vld [vmem:[%s209_s0 + $0xd] sm:$0x1]   ;;  %v104_v2 = vld [vmem:[%s209_s0 + $0xe] sm:$0x1]  }
   0x2   :  { %7 = vrot.lane.b32.xlu0 %v103_v0, %s133_s10  ;;  %19 = vrot.lane.b32.xlu1 %v105_v1, %s134_s11  ;;  %v106_v3 = vld [vmem:[%s209_s0 + $0xc] sm:$0x1]   ;;  %s135_s16 = smov 112   ;;  %s136_s17 = smov 96   ;;  %v107_v4 = vld [vmem:[%s209_s0 + $0xb] sm:$0x1]  }
   0x3   :  { %v108_v5 = vld [vmem:[%s209_s0 + $0xa] sm:$0x1]   ;;  %v2_v6 = vld [vmem:[%s209_s0] sm:$0x1]   ;;  %s137_s24 = smov 88   ;;  %s138_s25 = smov 80  }
   0x4   :  { %4 = vst.msk [vmem:[#allocation0] sm:$0x1] %vm3_vm0, %v2_v6   ;;  %v109_v7 = vld [vmem:[%s209_s0 + $0x9] sm:$0x1]   ;;  %v110_v8 = vld [vmem:[%s209_s0 + $0x8] sm:$0x1]  }
   0x5   :  { %s139_s30 = smov 72   ;;  %s140_s2 = smov 64   ;;  %v111_v9 = vld [vmem:[%s209_s0 + $0x7] sm:$0x1]   ;;  %v112_v10 = vld [vmem:[%s209_s0 + $0x6] sm:$0x1]  }
   0x6   :  { %13 = vrot.lane.b32.xlu0 %v104_v2, %s135_s16  ;;  %25 = vrot.lane.b32.xlu1 %v106_v3, %s136_s17  ;;  %s141_s7 = smov 56   ;;  %s142_s8 = smov 48   ;;  %v113_v11 = vld [vmem:[%s209_s0 + $0x5] sm:$0x1]   ;;  %v114_v12 = vld [vmem:[%s209_s0 + $0x4] sm:$0x1]  }
   0x7   :  { %s143_s13 = smov 40   ;;  %s144_s14 = smov 32   ;;  %v115_v13 = vld [vmem:[%s209_s0 + $0x3] sm:$0x1]   ;;  %v116_v14 = vld [vmem:[%s209_s0 + $0x2] sm:$0x1]  }
   0x8   :  { %s145_s19 = smov 24   ;;  %s146_s20 = smov 16   ;;  %v117_v15 = vld [vmem:[%s209_s0 + $0x1] sm:$0x1]   ;;  %vm27_vm4 = vcmask 851712   ;;  %vm33_vm5 = vcmask 786112  }
   0x9   :  { %s147_s0 = smov 8   ;;  %vm39_vm6 = vcmask 720512   ;;  %vm45_vm7 = vcmask 654912   ;;  %vm51_vm8 = vcmask 589312   ;;  %vm57_vm9 = vcmask 523712  }
   0xa   :  { %31 = vrot.lane.b32.xlu0 %v107_v4, %s137_s24  ;;  %37 = vrot.lane.b32.xlu1 %v108_v5, %s138_s25  ;;  %vm63_vm10 = vcmask 458112   ;;  %vm69_vm11 = vcmask 392512   ;;  %vm75_vm12 = vcmask 326912   ;;  %vm81_vm13 = vcmask 261312  }
   0xb   :  { %vm87_vm14 = vcmask 195712   ;;  %vm93_vm15 = vcmask 130112  }
   0xe   :  { %43 = vrot.lane.b32.xlu0 %v109_v7, %s139_s30  ;;  %49 = vrot.lane.b32.xlu1 %v110_v8, %s140_s2 }
  0x12   :  { %55 = vrot.lane.b32.xlu0 %v111_v9, %s141_s7  ;;  %61 = vrot.lane.b32.xlu1 %v112_v10, %s142_s8 }
  0x16   :  { %67 = vrot.lane.b32.xlu0 %v113_v11, %s143_s13  ;;  %73 = vrot.lane.b32.xlu1 %v114_v12, %s144_s14 }
  0x1a   :  { %79 = vrot.lane.b32.xlu0 %v115_v13, %s145_s19  ;;  %85 = vrot.lane.b32.xlu1 %v116_v14, %s146_s20 }
  0x1e   :  { %91 = vrot.lane.b32.xlu0 %v117_v15, %s147_s0 }
  0x74   :  { %v8_v16 = vpop.permute.xlu0 %7   ;;  %v20_v17 = vpop.permute.xlu1 %19  }
  0x75   :  { %10 = vst.msk [vmem:[#allocation0] sm:$0x1] %vm9_vm1, %v8_v16  }
  0x78   :  { %v14_v18 = vpop.permute.xlu0 %13   ;;  %v26_v19 = vpop.permute.xlu1 %25  }
  0x79   :  { %16 = vst.msk [vmem:[#allocation0] sm:$0x1] %vm15_vm2, %v14_v18  }
  0x7a   :  { %22 = vst.msk [vmem:[#allocation0] sm:$0x1] %vm21_vm3, %v20_v17  }
  0x7b   :  { %28 = vst.msk [vmem:[#allocation0] sm:$0x1] %vm27_vm4, %v26_v19  }
  0x7c   :  { %v32_v20 = vpop.permute.xlu0 %31   ;;  %v38_v21 = vpop.permute.xlu1 %37  }
  0x7d   :  { %34 = vst.msk [vmem:[#allocation0] sm:$0x1] %vm33_vm5, %v32_v20  }
  0x7e   :  { %40 = vst.msk [vmem:[#allocation0] sm:$0x1] %vm39_vm6, %v38_v21  }
  0x80   :  { %v44_v22 = vpop.permute.xlu0 %43   ;;  %v50_v23 = vpop.permute.xlu1 %49  }
  0x81   :  { %46 = vst.msk [vmem:[#allocation0] sm:$0x1] %vm45_vm7, %v44_v22  }
  0x82   :  { %52 = vst.msk [vmem:[#allocation0] sm:$0x1] %vm51_vm8, %v50_v23  }
  0x84   :  { %v56_v24 = vpop.permute.xlu0 %55   ;;  %v62_v25 = vpop.permute.xlu1 %61  }
  0x85   :  { %58 = vst.msk [vmem:[#allocation0] sm:$0x1] %vm57_vm9, %v56_v24  }
  0x86   :  { %64 = vst.msk [vmem:[#allocation0] sm:$0x1] %vm63_vm10, %v62_v25  }
  0x88   :  { %v68_v26 = vpop.permute.xlu0 %67   ;;  %v74_v27 = vpop.permute.xlu1 %73  }
  0x89   :  { %70 = vst.msk [vmem:[#allocation0] sm:$0x1] %vm69_vm11, %v68_v26  }
  0x8a   :  { %76 = vst.msk [vmem:[#allocation0] sm:$0x1] %vm75_vm12, %v74_v27  }
  0x8c   :  { %v80_v28 = vpop.permute.xlu0 %79   ;;  %v86_v29 = vpop.permute.xlu1 %85  }
  0x8d   :  { %82 = vst.msk [vmem:[#allocation0] sm:$0x1] %vm81_vm13, %v80_v28  }
  0x8e   :  { %88 = vst.msk [vmem:[#allocation0] sm:$0x1] %vm87_vm14, %v86_v29  }
  0x90   :  { %v92_v30 = vpop.permute.xlu0 %91  }
  0x91   :  { %94 = vst.msk [vmem:[#allocation0] sm:$0x1] %vm93_vm15, %v92_v30  }
  0x98   :  { %v99_v31 = vld [vmem:[#allocation0] sm:$0x1] }
  0x99   :  { %102 = vst [vmem:[%s210_s1] sm:$0x1] %v99_v31 }

// kernel: tile.88
= control target key start
LH: loop header
LB: loop body
LE: loop exit
PB: predicated region body
PF: predicated region fallthrough
CT: control target
= control target key end

     0   :  { %s22_s0 = inlined_call_operand.vmem [shape: f32[16], index: 0, kind: input, shape index: {}]   ;;  %s23_s1 = inlined_call_operand.vmem [shape: f32[8,16], index: 1, kind: output, shape index: {}]  }
   0x1   :  { %v4_v0 = vld [vmem:[%s22_s0] ss:$0 sm:$0xff] }
   0x2   :  { %5 = vst [vmem:[%s23_s1] sm:$0xff] %v4_v0 }

// kernel: tile.89
= control target key start
LH: loop header
LB: loop body
LE: loop exit
PB: predicated region body
PF: predicated region fallthrough
CT: control target
= control target key end

     0   :  { %s69_s10 = smov 112   ;;  %s70_s11 = smov 80   ;;  %vm3_vm0 = vcmask 130048   ;;  %vm9_vm1 = vcmask 1048448   ;;  %vm15_vm2 = vcmask 917248   ;;  %vm21_vm3 = vcmask 786048   ;;  %s113_s0 = inlined_call_operand.vmem [shape: f32[8,16], index: 0, kind: input, shape index: {}]   ;;  %s114_s1 = inlined_call_operand.vmem [shape: f32[1,128], index: 1, kind: output, shape index: {}]  }
   0x1   :  { %v55_v0 = vld [vmem:[%s113_s0 + $0x7] sm:$0x1]   ;;  %v57_v1 = vld [vmem:[%s113_s0 + $0x5] sm:$0x1]   ;;  %v56_v2 = vld [vmem:[%s113_s0 + $0x6] sm:$0x1]  }
   0x2   :  { %7 = vrot.lane.b32.xlu0 %v55_v0, %s69_s10  ;;  %19 = vrot.lane.b32.xlu1 %v57_v1, %s70_s11  ;;  %v58_v3 = vld [vmem:[%s113_s0 + $0x4] sm:$0x1]   ;;  %v2_v4 = vld [vmem:[%s113_s0] sm:$0x1]   ;;  %s71_s18 = smov 96   ;;  %s72_s19 = smov 64  }
   0x3   :  { %4 = vst.msk [vmem:[#allocation0] sm:$0x1] %vm3_vm0, %v2_v4   ;;  %v59_v5 = vld [vmem:[%s113_s0 + $0x3] sm:$0x1]   ;;  %v60_v6 = vld [vmem:[%s113_s0 + $0x2] sm:$0x1]  }
   0x4   :  { %s73_s24 = smov 48   ;;  %s74_s25 = smov 32   ;;  %v61_v7 = vld [vmem:[%s113_s0 + $0x1] sm:$0x1]   ;;  %vm27_vm4 = vcmask 654848   ;;  %vm33_vm5 = vcmask 523648  }
   0x5   :  { %s75_s0 = smov 16   ;;  %vm39_vm6 = vcmask 392448   ;;  %vm45_vm7 = vcmask 261248  }
   0x6   :  { %13 = vrot.lane.b32.xlu0 %v56_v2, %s71_s18  ;;  %25 = vrot.lane.b32.xlu1 %v58_v3, %s72_s19 }
   0xa   :  { %31 = vrot.lane.b32.xlu0 %v59_v5, %s73_s24  ;;  %37 = vrot.lane.b32.xlu1 %v60_v6, %s74_s25 }
   0xe   :  { %43 = vrot.lane.b32.xlu0 %v61_v7, %s75_s0 }
  0x74   :  { %v8_v8 = vpop.permute.xlu0 %7   ;;  %v20_v9 = vpop.permute.xlu1 %19  }
  0x75   :  { %10 = vst.msk [vmem:[#allocation0] sm:$0x1] %vm9_vm1, %v8_v8  }
  0x78   :  { %v14_v10 = vpop.permute.xlu0 %13   ;;  %v26_v11 = vpop.permute.xlu1 %25  }
  0x79   :  { %16 = vst.msk [vmem:[#allocation0] sm:$0x1] %vm15_vm2, %v14_v10  }
  0x7a   :  { %22 = vst.msk [vmem:[#allocation0] sm:$0x1] %vm21_vm3, %v20_v9  }
  0x7b   :  { %28 = vst.msk [vmem:[#allocation0] sm:$0x1] %vm27_vm4, %v26_v11  }
  0x7c   :  { %v32_v12 = vpop.permute.xlu0 %31   ;;  %v38_v13 = vpop.permute.xlu1 %37  }
  0x7d   :  { %34 = vst.msk [vmem:[#allocation0] sm:$0x1] %vm33_vm5, %v32_v12  }
  0x7e   :  { %40 = vst.msk [vmem:[#allocation0] sm:$0x1] %vm39_vm6, %v38_v13  }
  0x80   :  { %v44_v14 = vpop.permute.xlu0 %43  }
  0x81   :  { %46 = vst.msk [vmem:[#allocation0] sm:$0x1] %vm45_vm7, %v44_v14  }
  0x88   :  { %v51_v15 = vld [vmem:[#allocation0] sm:$0x1] }
  0x89   :  { %54 = vst [vmem:[%s114_s1] sm:$0x1] %v51_v15 }

// kernel: diff_model_forward.1
= control target key start
LH: loop header
LB: loop body
LE: loop exit
PB: predicated region body
PF: predicated region fallthrough
CT: control target
= control target key end

     0   :  { %s8779_s6 = smov 1   ;;  %s8780_s10 = smov 2   ;;  %s9999_s0 = inlined_call_operand.smem [shape: u32[31], index: -1, kind: input, shape index: {}] }
   0x1   :  { %s8820_s5 = sld [smem:[%s9999_s0]]   ;;  %s8781_s14 = smov 3  }
   0x2   :  { %s8825_s9 = sld [smem:[%s9999_s0 + %s8779_s6]]   ;;  %s8782_s18 = smov 4  }
   0x3   :  { %s8830_s13 = sld [smem:[%s9999_s0 + %s8780_s10]]   ;;  %s8783_s22 = smov 5  }
   0x4   :  { %s8835_s17 = sld [smem:[%s9999_s0 + %s8781_s14]]   ;;  %s8784_s26 = smov 6  }
   0x5   :  { %s8840_s21 = sld [smem:[%s9999_s0 + %s8782_s18]]   ;;  %s8785_s30 = smov 7  }
   0x6   :  { %s8845_s25 = sld [smem:[%s9999_s0 + %s8783_s22]]   ;;  %s8786_s4 = smov 8  }
   0x7   :  { %s8850_s29 = sld [smem:[%s9999_s0 + %s8784_s26]]   ;;  %s8787_s10 = smov 9  }
   0x8   :  { %s8855_s3 = sld [smem:[%s9999_s0 + %s8785_s30]]   ;;  %s8788_s15 = smov 10  }
   0x9   :  { %s8860_s8 = sld [smem:[%s9999_s0 + %s8786_s4]]   ;;  %s8789_s20 = smov 11  }
   0xa   :  { %s8865_s14 = sld [smem:[%s9999_s0 + %s8787_s10]]   ;;  %s8790_s26 = smov 12  }
   0xb   :  { %s8870_s19 = sld [smem:[%s9999_s0 + %s8788_s15]]   ;;  %s8791_s1 = smov 13  }
   0xc   :  { %s8875_s24 = sld [smem:[%s9999_s0 + %s8789_s20]]   ;;  %s8792_s7 = smov 14  }
   0xd   :  { %s8880_s30 = sld [smem:[%s9999_s0 + %s8790_s26]]   ;;  %s8793_s15 = smov 15  }
   0xe   :  { %s8885_s6 = sld [smem:[%s9999_s0 + %s8791_s1]]   ;;  %s8794_s22 = smov 16  }
   0xf   :  { %s8890_s12 = sld [smem:[%s9999_s0 + %s8792_s7]]   ;;  %s8795_s28 = smov 17  }
  0x10   :  { %s8895_s20 = sld [smem:[%s9999_s0 + %s8793_s15]]   ;;  %s8796_s7 = smov 18  }
  0x11   :  { %s8900_s27 = sld [smem:[%s9999_s0 + %s8794_s22]]   ;;  %s8797_s15 = smov 19  }
  0x12   :  { %s8905_s4 = sld [smem:[%s9999_s0 + %s8795_s28]]   ;;  %s8798_s22 = smov 20  }
  0x13   :  { %s8799_s28 = smov 21  }
  0x15   :  { %10007 = sst [smem:[#allocation2_spill]] %s8890_s12 }
  0x16   :  { %10008 = sst [smem:[#allocation3_spill]] %s8895_s20 }
  0x17   :  { %10009 = sst [smem:[#allocation4_spill]] %s8900_s27 }
  0x18   :  { %10010 = sst [smem:[#allocation5_spill]] %s8905_s4 }
  0x19   :  { %s8910_s12 = sld [smem:[%s9999_s0 + %s8796_s7]]   ;;  %s8800_s7 = smov 22  }
  0x1a   :  { %s8915_s20 = sld [smem:[%s9999_s0 + %s8797_s15]]   ;;  %s8801_s15 = smov 23  }
  0x1b   :  { %s8920_s27 = sld [smem:[%s9999_s0 + %s8798_s22]]   ;;  %s8802_s22 = smov 24  }
  0x1c   :  { %s8925_s4 = sld [smem:[%s9999_s0 + %s8799_s28]]   ;;  %s8803_s28 = smov 25  }
  0x1f   :  { %10011 = sst [smem:[#allocation6_spill]] %s8910_s12 }
  0x20   :  { %10012 = sst [smem:[#allocation7_spill]] %s8915_s20 }
  0x21   :  { %10013 = sst [smem:[#allocation8_spill]] %s8920_s27 }
  0x22   :  { %10014 = sst [smem:[#allocation9_spill]] %s8925_s4 }
  0x23   :  { %s8930_s12 = sld [smem:[%s9999_s0 + %s8800_s7]]   ;;  %s8804_s7 = smov 26  }
  0x24   :  { %s8935_s20 = sld [smem:[%s9999_s0 + %s8801_s15]]   ;;  %s8805_s15 = smov 27  }
  0x25   :  { %s8940_s27 = sld [smem:[%s9999_s0 + %s8802_s22]]   ;;  %s8806_s22 = smov 28  }
  0x26   :  { %s8945_s4 = sld [smem:[%s9999_s0 + %s8803_s28]]   ;;  %s8807_s28 = smov 29  }
  0x29   :  { %10015 = sst [smem:[#allocation10_spill]] %s8930_s12 }
  0x2a   :  { %10016 = sst [smem:[#allocation11_spill]] %s8935_s20 }
  0x2b   :  { %10017 = sst [smem:[#allocation12_spill]] %s8940_s27 }
  0x2c   :  { %10018 = sst [smem:[#allocation13_spill]] %s8945_s4 }
  0x2d   :  { %s8950_s12 = sld [smem:[%s9999_s0 + %s8804_s7]]   ;;  %s8808_s7 = smov 30  }
  0x2e   :  { %s8955_s20 = sld [smem:[%s9999_s0 + %s8805_s15]]   ;;  %s8972_s15 = smov 0  }
  0x2f   :  { %s8960_s27 = sld [smem:[%s9999_s0 + %s8806_s22]]  }
  0x30   :  { %s8965_s4 = sld [smem:[%s9999_s0 + %s8807_s28]]  }
  0x33   :  { %10019 = sst [smem:[#allocation14_spill]] %s8950_s12 }
  0x34   :  { %s8970_s12 = sld [smem:[%s9999_s0 + %s8808_s7]]  }
  0x35 LB: > { %s6679_s16 = sadd.s32 4294967295, %s8777_s15   ;;  %p6683_p0 = scmp.ge.s32.totalorder %s8777_s15, 1  ;;  %s8777_s15 = sphi %s8972_s15, %s71_s15  }
  0x36   : > { %p859_p1 = scmp.lt.s32.totalorder %s8777_s15, 3 }
  0x38   : > { %p860_p2 = pnand %p6683_p0, %p859_p1 }
  0x39   : > { %p943_p3 = scmp.lt.s32.totalorder (!%p860_p2), %s6679_s16, 1  ;;  %s10024_s26 = sld [smem:[#allocation2_spill]] (!%p860_p2) }
  0x3a   : > { %863 = sbr.rel (%p860_p2) target bundleno = 4103 (0x1007), region = 140  ;;  %s10025_s28 = sld [smem:[#allocation4_spill]] (!%p860_p2) }
  0x3b   : > { %s10026_s1 = sld [smem:[#allocation3_spill]] (!%p860_p2) }
  0x3c   : > { %s10027_s2 = sld [smem:[#allocation5_spill]] (!%p860_p2) }
  0x3d   : > { %s10028_s7 = sld [smem:[#allocation7_spill]] (!%p860_p2) }
  0x3e   : > { %s10029_s10 = sld [smem:[#allocation6_spill]] (!%p860_p2) }
  0x3f   : > { %v8357_v0 = vld [vmem:[%s8825_s9 + $0x38] sm:$0xff]   ;;  %v8809_v1 = vmov 0.0   ;;  %v8359_v3 = vld [vmem:[%s8825_s9 + $0x30] sm:$0xff]   ;;  %vm8810_vm0 = vmmov 0   ;;  %s10038_s16 = smov (!%p943_p3, %s6679_s16), 1  ;;  %v8361_v5 = vld [vmem:[%s8825_s9 + $0x28] sm:$0xff]  }
  0x40   : > { %7493 = vmatprep.subr.bf16.mxu0 %v8809_v1  ;;  %7505 = vmatprep.subr.bf16.mxu1 %v8809_v1  ;;  %v8358_v2 = vld [vmem:[%s8825_s9 + $0x18] sm:$0xff]   ;;  %v8360_v4 = vld [vmem:[%s8825_s9 + $0x10] sm:$0xff]   ;;  %s7072_s0 = sshll.u32 %s10038_s16, 4  ;;  %v8362_v6 = vld [vmem:[%s8825_s9 + $0x8] sm:$0xff]   ;;  %vm996_vm1 = vcmask 1040384   ;;  %vm1038_vm5 = vcmask 523264   ;;  %s950_s22 = scalar_lea.vmem %s8840_s21, %s10038_s16 }
  0x41   : > { %7494 = vmatpush3.bf16.msra.mxu0 %v8357_v0  ;;  %7501 = vmatprep.mubr.msk.bf16.mxu0 %vm8810_vm0, %v8809_v1  ;;  %s947_s18 = scalar_lea.vmem %s8820_s5, %s7072_s0  ;;  %v8363_v9 = vld [vmem:[%s8825_s9 + $0x20] sm:$0xff]   ;;  %vm997_vm2 = vsmask.f32 256  ;;  %vm1001_vm4 = vsmask.f32 7424  ;;  %v8365_v26 = vld [vmem:[%s8825_s9 + $0x58] sm:$0xff]   ;;  %s953_s23 = scalar_lea.vmem %s8870_s19, %s10038_s16 }
  0x42   : > { %7506 = vmatpush3.bf16.msra.mxu1 %v8358_v2  ;;  %7495 = vmatprep.subr.bf16.mxu0 %v8809_v1  ;;  %v960_v7 = vld [vmem:[%s947_s18] sm:$0xff]  ;;  %v961_v8 = vld [vmem:[%s947_s18 + $0x8] sm:$0xff]  ;;  %vm9006_vm3 = vmand %vm996_vm1, %vm997_vm2  ;;  %vm1152_vm6 = vcmask 1046528   ;;  %vm2350_vm8 = vcmask 130048   ;;  %vm2500_vm9 = vcmask 1044480   ;;  %vm3151_vm12 = vcmask 1043456  }
  0x43   : > { %7507 = vmatprep.subr.bf16.mxu1 %v8809_v1  ;;  %7513 = vmatprep.mubr.msk.bf16.mxu1 %vm8810_vm0, %v8809_v1  ;;  %v986_v10 = vpack.c.bf16 %v961_v8, %v960_v7  ;;  %v8364_v11 = vld [vmem:[%s8825_s9] sm:$0xff]   ;;  %v8366_v29 = vld [vmem:[%s8825_s9 + $0x50] sm:$0xff]   ;;  %v8367_v30 = vld [vmem:[%s8825_s9 + $0x48] sm:$0xff]   ;;  %vm2501_vm10 = vsmask.f32 4352  ;;  %vm3600_vm14 = vcmask 64512  }
  0x44   : > { %v8368_v31 = vld [vmem:[%s8825_s9 + $0x40] sm:$0xff]   ;;  %v8369_v33 = vld [vmem:[%s8835_s17 + $0x38] sm:$0xff]   ;;  %v8370_v34 = vld [vmem:[%s8835_s17 + $0x30] sm:$0xff]   ;;  %s10030_s11 = sld [smem:[#allocation9_spill]] }
  0x45   : > { %7496 = vmatpush3.bf16.msra.mxu0 %v8359_v3  ;;  %v988_v12 = vshrl.u32 %v986_v10, 16  ;;  %v991_v13 = vshll.u32 %v986_v10, 16  ;;  %v8371_v35 = vld [vmem:[%s8835_s17 + $0x78] sm:$0xff]   ;;  %v8372_v36 = vld [vmem:[%s8835_s17 + $0x28] sm:$0xff]   ;;  %v8373_v37 = vld [vmem:[%s8835_s17 + $0x70] sm:$0xff]   ;;  %s10031_s18 = sld [smem:[#allocation8_spill]] }
  0x46   : > { %7508 = vmatpush3.bf16.msra.mxu1 %v8360_v4  ;;  %7497 = vmatprep.subr.bf16.mxu0 %v8809_v1  ;;  %v8374_v38 = vld [vmem:[%s8835_s17 + $0x20] sm:$0xff]   ;;  %v8375_v39 = vld [vmem:[%s8835_s17 + $0x68] sm:$0xff]   ;;  %v8376_v40 = vld [vmem:[%s8835_s17 + $0x18] sm:$0xff]  }
  0x47   : > { %7509 = vmatprep.subr.bf16.mxu1 %v8809_v1  ;;  %v990_v14 = vrot.slane %v988_v12, 7  ;;  %v8377_v41 = vld [vmem:[%s8835_s17 + $0x60] sm:$0xff]   ;;  %v8378_v42 = vld [vmem:[%s8835_s17 + $0x10] sm:$0xff]   ;;  %v8379_v43 = vld [vmem:[%s8835_s17 + $0x58] sm:$0xff]  }
  0x48   : > { %v8380_v44 = vld [vmem:[%s8835_s17 + $0x8] sm:$0xff]   ;;  %v8381_v45 = vld [vmem:[%s8835_s17 + $0x50] sm:$0xff]   ;;  %v8382_v46 = vld [vmem:[%s8835_s17] sm:$0xff]  }
  0x49   : > { %7498 = vmatpush3.bf16.msra.mxu0 %v8361_v5  ;;  %v993_v16 = vor.u32 %v991_v13, %v990_v14  ;;  %v1000_v17 = vsel %vm9006_vm3, %v990_v14, 0  ;;  %v8383_v47 = vld [vmem:[%s8835_s17 + $0x48] sm:$0xff]   ;;  %v8384_v48 = vld [vmem:[%s8835_s17 + $0x40] sm:$0xff]   ;;  %vm9299_vm11 = vmand %vm2500_vm9, %vm2501_vm10 }
  0x4a   : > { %7510 = vmatpush3.bf16.msra.mxu1 %v8362_v6  ;;  %7499 = vmatprep.subr.bf16.mxu0 %v8809_v1  ;;  %v1010_v18 = vshll.u32 %v1000_v17, 16  ;;  %v1154_v19 = vrot.slane %v1000_v17, 1  ;;  %v6703_v57 = vld [vmem:[%s8830_s13] ss:$0 sm:$0xff]  ;;  %v8586_v15 = vld [vmem:[%s10028_s7 + $0xb0] sm:$0xff]  }
  0x4b   : > { %7511 = vmatprep.subr.bf16.mxu1 %v8809_v1  ;;  %v999_v20 = vsel %vm9006_vm3, 0, %v993_v16 }
  0x4c   : > { %v1003_v21 = vshrl.u32 %v999_v20, 16  ;;  %v1005_v22 = vshll.u32 %v999_v20, 16  ;;  %v1012_v23 = vrot.slane %v1010_v18, 1  ;;  %v1153_v24 = vrot.slane %v999_v20, 1 }
  0x4d   : > { %7500 = vmatpush3.bf16.msra.mxu0 %v8363_v9 }
  0x4e   : > { %7512 = vmatpush3.bf16.msra.mxu1 %v8364_v11  ;;  %7517 = vmatprep.subr.bf16.mxu0 %v8809_v1  ;;  %v1007_v25 = vrot.slane %v1005_v22, 1  ;;  %v1155_v32 = vsel %vm1152_vm6, %v1153_v24, %v1154_v19 }
  0x4f   : > { %7529 = vmatprep.subr.bf16.mxu1 %v8809_v1 }
  0x50   : > { %v1008_v27 = vor.u32 %v1007_v25, %v1003_v21 }
  0x51   : > { %7514 = vmatmul.mubr.msk.bf16.vlgmr.msra.gmra.mxu1 %vm1038_vm5, %v999_v20 }
  0x52   : > { %7545 = vmatprep.mubr.msk.bf16.mxu1 %vm8810_vm0, %v8809_v1  ;;  %v1013_v28 = vsel %vm1001_vm4, %v1008_v27, %v1012_v23  ;;  %7530 = vmatpush3.bf16.msra.mxu1 %v8371_v35 }
  0x53   : > { %7502 = vmatmul.mubr.msk.bf16.vlgmr.msra.gmra.mxu0 %vm1038_vm5, %v1013_v28  ;;  %7531 = vmatprep.subr.bf16.mxu1 %v8809_v1 }
  0x54   : > { %7518 = vmatpush3.bf16.msra.mxu0 %v8365_v26  ;;  %7525 = vmatprep.mubr.msk.bf16.mxu0 %vm8810_vm0, %v8809_v1 }
  0x55   : > { %7519 = vmatprep.subr.bf16.mxu0 %v8809_v1 }
  0x56   : > { %7532 = vmatpush3.bf16.msra.mxu1 %v8373_v37  ;;  %v8385_v37 = vld [vmem:[%s8835_s17 + $0xb8] sm:$0xff]  }
  0x57   : > { %7533 = vmatprep.subr.bf16.mxu1 %v8809_v1 }
  0x58   : > { %7520 = vmatpush3.bf16.msra.mxu0 %v8366_v29 }
  0x59   : > { %7521 = vmatprep.subr.bf16.mxu0 %v8809_v1 }
  0x5a   : > { %7534 = vmatpush3.bf16.msra.mxu1 %v8375_v39  ;;  %v8386_v39 = vld [vmem:[%s8835_s17 + $0xb0] sm:$0xff]  }
  0x5b   : > { %7535 = vmatprep.subr.bf16.mxu1 %v8809_v1 }
  0x5c   : > { %7522 = vmatpush3.bf16.msra.mxu0 %v8367_v30 }
  0x5d   : > { %7523 = vmatprep.subr.bf16.mxu0 %v8809_v1 }
  0x5e   : > { %7536 = vmatpush3.bf16.msra.mxu1 %v8377_v41  ;;  %v8388_v41 = vld [vmem:[%s8835_s17 + $0xa0] sm:$0xff]  }
  0x5f   : > { %7537 = vmatprep.subr.bf16.mxu1 %v8809_v1 }
  0x60   : > { %7524 = vmatpush3.bf16.msra.mxu0 %v8368_v31 }
  0x61   : > { %7549 = vmatprep.subr.bf16.mxu0 %v8809_v1 }
  0x62   : > { %7538 = vmatpush3.bf16.msra.mxu1 %v8379_v43  ;;  %v8390_v43 = vld [vmem:[%s8835_s17 + $0x90] sm:$0xff]  }
  0x63   : > { %7526 = vmatmul.mubr.msk.bf16.vlgmr.msra.gmra.mxu0 %vm1038_vm5, %v1155_v32  ;;  %7539 = vmatprep.subr.bf16.mxu1 %v8809_v1  ;;  %vm4964_vm5 = vsmask.f32 1280 }
  0x64   : > { %7565 = vmatprep.mubr.msk.bf16.mxu0 %vm8810_vm0, %v8809_v1  ;;  %7550 = vmatpush3.bf16.msra.mxu0 %v8369_v33 }
  0x65   : > { %7551 = vmatprep.subr.bf16.mxu0 %v8809_v1 }
  0x66   : > { %7540 = vmatpush3.bf16.msra.mxu1 %v8381_v45  ;;  %v8392_v45 = vld [vmem:[%s8835_s17 + $0x80] sm:$0xff]  }
  0x67   : > { %7541 = vmatprep.subr.bf16.mxu1 %v8809_v1 }
  0x68   : > { %7552 = vmatpush3.bf16.msra.mxu0 %v8370_v34 }
  0x69   : > { %7553 = vmatprep.subr.bf16.mxu0 %v8809_v1 }
  0x6a   : > { %7542 = vmatpush3.bf16.msra.mxu1 %v8383_v47 }
  0x6b   : > { %7543 = vmatprep.subr.bf16.mxu1 %v8809_v1 }
  0x6c   : > { %7554 = vmatpush3.bf16.msra.mxu0 %v8372_v36 }
  0x6d   : > { %7555 = vmatprep.subr.bf16.mxu0 %v8809_v1 }
  0x6e   : > { %7544 = vmatpush3.bf16.msra.mxu1 %v8384_v48 }
  0x6f   : > { %7569 = vmatprep.subr.bf16.mxu1 %v8809_v1 }
  0x70   : > { %7556 = vmatpush3.bf16.msra.mxu0 %v8374_v38 }
  0x71   : > { %7557 = vmatprep.subr.bf16.mxu0 %v8809_v1 }
  0x74   : > { %7558 = vmatpush3.bf16.msra.mxu0 %v8376_v40  ;;  %v8387_v40 = vld [vmem:[%s8835_s17 + $0xa8] sm:$0xff]  }
  0x75   : > { %7559 = vmatprep.subr.bf16.mxu0 %v8809_v1 }
  0x78   : > { %7560 = vmatpush3.bf16.msra.mxu0 %v8378_v42  ;;  %v8389_v42 = vld [vmem:[%s8835_s17 + $0x98] sm:$0xff]  }
  0x79   : > { %7561 = vmatprep.subr.bf16.mxu0 %v8809_v1 }
  0x7c   : > { %7562 = vmatpush3.bf16.msra.mxu0 %v8380_v44  ;;  %v8391_v44 = vld [vmem:[%s8835_s17 + $0x88] sm:$0xff]  }
  0x7d   : > { %7563 = vmatprep.subr.bf16.mxu0 %v8809_v1 }
  0x80   : > { %7564 = vmatpush3.bf16.msra.mxu0 %v8382_v46 }
  0x81   : > { %7589 = vmatprep.subr.bf16.mxu0 %v8809_v1 }
 0x111   : > { %v1143_v49 = vpop.f32.mrf.mxu1 }
 0x113   : > { %v7515_v50 = vpop.f32.mrf.mxu1  ;;  %v1076_v53 = vpop.f32.mrf.mxu0 }
 0x114   : > { %v1144_v58 = vadd.f32 %v1143_v49, %v1076_v53  ;;  %v8393_v49 = vld [vmem:[%s8845_s25 + $0x38] sm:$0xff]   ;;  %v8394_v50 = vld [vmem:[%s8845_s25 + $0x30] sm:$0xff]  }
 0x115   : > { %v1146_v51 = vpop.f32.mrf.mxu1  ;;  %v7503_v54 = vpop.f32.mrf.mxu0  ;;  %v8397_v53 = vld [vmem:[%s8845_s25 + $0x70] sm:$0xff]  }
 0x116   : > { %v8398_v54 = vld [vmem:[%s8845_s25 + $0x20] sm:$0xff]  }
 0x117   : > { %v7516_v52 = vpop.f32.mrf.mxu1  ;;  %v1079_v55 = vpop.f32.mrf.mxu0 }
 0x118   : > { %v1147_v62 = vadd.f32 %v1146_v51, %v1079_v55  ;;  %v8395_v51 = vld [vmem:[%s8845_s25 + $0x78] sm:$0xff]   ;;  %v8396_v52 = vld [vmem:[%s8845_s25 + $0x28] sm:$0xff]  }
 0x119   : > { %v7504_v56 = vpop.f32.mrf.mxu0  ;;  %v8399_v55 = vld [vmem:[%s8845_s25 + $0x68] sm:$0xff]  }
 0x11a   : > { %v8400_v56 = vld [vmem:[%s8845_s25 + $0x18] sm:$0xff]  }
 0x123   : > { %v1217_v59 = vpop.f32.mrf.mxu0 }
 0x124   : > { %v1224_v60 = vadd.f32 %v1217_v59, %v1144_v58  ;;  %v8402_v58 = vld [vmem:[%s8845_s25 + $0x10] sm:$0xff]   ;;  %v8403_v59 = vld [vmem:[%s8845_s25 + $0x58] sm:$0xff]  }
 0x125   : > { %v7527_v61 = vpop.f32.mrf.mxu0 }
 0x126   : > { %v9068_v63 = vadd.f32 %v6703_v57, %v1224_v60  ;;  %v8404_v60 = vld [vmem:[%s8845_s25 + $0x8] sm:$0xff]   ;;  %v8405_v61 = vld [vmem:[%s8845_s25 + $0x50] sm:$0xff]  }
 0x127   : > { %v1220_v0 = vpop.f32.mrf.mxu0 }
 0x128   : > { %v1333_v2 = vmul.f32 %v9068_v63, %v9068_v63  ;;  %v1225_v3 = vadd.f32 %v1220_v0, %v1147_v62  ;;  %v8406_v62 = vld [vmem:[%s8845_s25] sm:$0xff]   ;;  %v8407_v0 = vld [vmem:[%s8845_s25 + $0x48] sm:$0xff]  }
 0x129   : > { %v7528_v4 = vpop.f32.mrf.mxu0 }
 0x12a   : > { %v1335_v5 = vmul.f32 %v1333_v2, %v9068_v63  ;;  %v9073_v6 = vadd.f32 %v6703_v57, %v1225_v3  ;;  %v8401_v57 = vld [vmem:[%s8845_s25 + $0x60] sm:$0xff]  }
 0x12b   : > { %v8408_v2 = vld [vmem:[%s8845_s25 + $0x40] sm:$0xff]  }
 0x12c   : > { %v1337_v7 = vmul.f32 0.044715, %v1335_v5  ;;  %v1334_v8 = vmul.f32 %v9073_v6, %v9073_v6 }
 0x12e   : > { %v1339_v9 = vadd.f32 %v1337_v7, %v9068_v63  ;;  %v1336_v10 = vmul.f32 %v1334_v8, %v9073_v6 }
 0x130   : > { %v1341_v11 = vmul.f32 0.7978846, %v1339_v9  ;;  %v1338_v12 = vmul.f32 0.044715, %v1336_v10 }
 0x132   : > { %8729 = vtanh.f32 %v1341_v11  ;;  %v1340_v13 = vadd.f32 %v1338_v12, %v9073_v6 }
 0x134   : > { %v1342_v14 = vmul.f32 0.7978846, %v1340_v13  ;;  %v6728_v13 = vld [vmem:[%s950_s22] ss:$0 sm:$0xff]  ;;  %s10032_s22 = sld [smem:[#allocation11_spill]] }
 0x136   : > { %8731 = vtanh.f32 %v1342_v14 }
 0x13f   : > { %v8730_v16 = vpop.eup %8729 }
 0x140   : > { %v1345_v17 = vadd.f32 1.0, %v8730_v16 }
 0x142   : > { %v1347_v20 = vmul.f32 0.5, %v1345_v17 }
 0x143   : > { %v8732_v18 = vpop.eup %8731 }
 0x144   : > { %v1346_v19 = vadd.f32 1.0, %v8732_v18  ;;  %v1349_v22 = vmul.f32 %v1347_v20, %v9068_v63 }
 0x146   : > { %v1348_v21 = vmul.f32 0.5, %v1346_v19 }
 0x148   : > { %v1350_v23 = vmul.f32 %v1348_v21, %v9073_v6 }
 0x14a   : > { %v1351_v24 = vpack.c.bf16 %v1350_v23, %v1349_v22 }
 0x14c   : > { %v1353_v25 = vshrl.u32 %v1351_v24, 16  ;;  %v1356_v27 = vshll.u32 %v1351_v24, 16 }
 0x14e   : > { %v1355_v26 = vrot.slane %v1353_v25, 7 }
 0x150   : > { %v1358_v28 = vor.u32 %v1356_v27, %v1355_v26  ;;  %v1362_v29 = vsel %vm9006_vm3, %v1355_v26, 0 }
 0x151   : > { %v1371_v32 = vshll.u32 %v1362_v29, 16  ;;  %v1557_v47 = vrot.slane %v1362_v29, 1 }
 0x152   : > { %v1361_v30 = vsel %vm9006_vm3, 0, %v1358_v28 }
 0x153   : > { %v1366_v31 = vshll.u32 %v1361_v30, 16  ;;  %7566 = vmatmul.mubr.bf16.vlgmr.msra.gmra.mxu0 %v1361_v30  ;;  %v1364_v33 = vshrl.u32 %v1361_v30, 16  ;;  %v1373_v36 = vrot.slane %v1371_v32, 1  ;;  %v1556_v46 = vrot.slane %v1361_v30, 1 }
 0x154   : > { %7605 = vmatprep.mubr.msk.bf16.mxu0 %vm8810_vm0, %v8809_v1  ;;  %7590 = vmatpush3.bf16.msra.mxu0 %v8395_v51 }
 0x155   : > { %v1368_v34 = vrot.slane %v1366_v31, 1  ;;  %v1558_v48 = vsel %vm1152_vm6, %v1556_v46, %v1557_v47  ;;  %7591 = vmatprep.subr.bf16.mxu0 %v8809_v1 }
 0x157   : > { %v1369_v35 = vor.u32 %v1368_v34, %v1364_v33 }
 0x158   : > { %7592 = vmatpush3.bf16.msra.mxu0 %v8397_v53 }
 0x159   : > { %v1374_v38 = vsel %vm1001_vm4, %v1369_v35, %v1373_v36  ;;  %7593 = vmatprep.subr.bf16.mxu0 %v8809_v1 }
 0x15a   : > { %7546 = vmatmul.mubr.bf16.vlgmr.msra.gmra.mxu1 %v1374_v38 }
 0x15b   : > { %7570 = vmatpush3.bf16.msra.mxu1 %v8385_v37  ;;  %7585 = vmatprep.mubr.msk.bf16.mxu1 %vm8810_vm0, %v8809_v1 }
 0x15c   : > { %7571 = vmatprep.subr.bf16.mxu1 %v8809_v1  ;;  %7594 = vmatpush3.bf16.msra.mxu0 %v8399_v55  ;;  %v8409_v55 = vld [vmem:[%s8845_s25 + $0xb8] sm:$0xff]  }
 0x15d   : > { %7595 = vmatprep.subr.bf16.mxu0 %v8809_v1 }
 0x15f   : > { %7572 = vmatpush3.bf16.msra.mxu1 %v8386_v39 }
 0x160   : > { %7573 = vmatprep.subr.bf16.mxu1 %v8809_v1  ;;  %7596 = vmatpush3.bf16.msra.mxu0 %v8401_v57  ;;  %v8410_v57 = vld [vmem:[%s8845_s25 + $0xb0] sm:$0xff]  }
 0x161   : > { %7597 = vmatprep.subr.bf16.mxu0 %v8809_v1 }
 0x163   : > { %7574 = vmatpush3.bf16.msra.mxu1 %v8387_v40 }
 0x164   : > { %7575 = vmatprep.subr.bf16.mxu1 %v8809_v1  ;;  %7598 = vmatpush3.bf16.msra.mxu0 %v8403_v59  ;;  %v8412_v59 = vld [vmem:[%s8845_s25 + $0xa0] sm:$0xff]  }
 0x165   : > { %7599 = vmatprep.subr.bf16.mxu0 %v8809_v1 }
 0x167   : > { %7576 = vmatpush3.bf16.msra.mxu1 %v8388_v41 }
 0x168   : > { %7577 = vmatprep.subr.bf16.mxu1 %v8809_v1  ;;  %7600 = vmatpush3.bf16.msra.mxu0 %v8405_v61  ;;  %v8414_v61 = vld [vmem:[%s8845_s25 + $0x90] sm:$0xff]  }
 0x169   : > { %7601 = vmatprep.subr.bf16.mxu0 %v8809_v1 }
 0x16b   : > { %7578 = vmatpush3.bf16.msra.mxu1 %v8389_v42 }
 0x16c   : > { %7579 = vmatprep.subr.bf16.mxu1 %v8809_v1  ;;  %7602 = vmatpush3.bf16.msra.mxu0 %v8407_v0  ;;  %v8416_v0 = vld [vmem:[%s8845_s25 + $0x80] sm:$0xff]  }
 0x16d   : > { %7603 = vmatprep.subr.bf16.mxu0 %v8809_v1 }
 0x16f   : > { %7580 = vmatpush3.bf16.msra.mxu1 %v8390_v43 }
 0x170   : > { %7581 = vmatprep.subr.bf16.mxu1 %v8809_v1  ;;  %7604 = vmatpush3.bf16.msra.mxu0 %v8408_v2 }
 0x171   : > { %7629 = vmatprep.subr.bf16.mxu0 %v8809_v1 }
 0x173   : > { %7582 = vmatpush3.bf16.msra.mxu1 %v8391_v44 }
 0x174   : > { %7583 = vmatprep.subr.bf16.mxu1 %v8809_v1 }
 0x177   : > { %7584 = vmatpush3.bf16.msra.mxu1 %v8392_v45 }
 0x178   : > { %7609 = vmatprep.subr.bf16.mxu1 %v8809_v1 }
 0x17a   : > { %7586 = vmatmul.mubr.bf16.vlgmr.msra.gmra.mxu1 %v1558_v48 }
 0x17b   : > { %7625 = vmatprep.mubr.msk.bf16.mxu1 %vm8810_vm0, %v8809_v1  ;;  %7610 = vmatpush3.bf16.msra.mxu1 %v8393_v49 }
 0x17c   : > { %7611 = vmatprep.subr.bf16.mxu1 %v8809_v1 }
 0x17f   : > { %7612 = vmatpush3.bf16.msra.mxu1 %v8394_v50 }
 0x180   : > { %7613 = vmatprep.subr.bf16.mxu1 %v8809_v1 }
 0x183   : > { %7614 = vmatpush3.bf16.msra.mxu1 %v8396_v52 }
 0x184   : > { %7615 = vmatprep.subr.bf16.mxu1 %v8809_v1 }
 0x187   : > { %7616 = vmatpush3.bf16.msra.mxu1 %v8398_v54 }
 0x188   : > { %7617 = vmatprep.subr.bf16.mxu1 %v8809_v1 }
 0x18b   : > { %7618 = vmatpush3.bf16.msra.mxu1 %v8400_v56 }
 0x18c   : > { %7619 = vmatprep.subr.bf16.mxu1 %v8809_v1 }
 0x18f   : > { %7620 = vmatpush3.bf16.msra.mxu1 %v8402_v58  ;;  %v8411_v58 = vld [vmem:[%s8845_s25 + $0xa8] sm:$0xff]  }
 0x190   : > { %7621 = vmatprep.subr.bf16.mxu1 %v8809_v1 }
 0x193   : > { %7622 = vmatpush3.bf16.msra.mxu1 %v8404_v60  ;;  %v8413_v60 = vld [vmem:[%s8845_s25 + $0x98] sm:$0xff]  }
 0x194   : > { %7623 = vmatprep.subr.bf16.mxu1 %v8809_v1 }
 0x197   : > { %7624 = vmatpush3.bf16.msra.mxu1 %v8406_v62  ;;  %v8415_v62 = vld [vmem:[%s8845_s25 + $0x88] sm:$0xff]  }
 0x198   : > { %7649 = vmatprep.subr.bf16.mxu1 %v8809_v1 }
 0x213   : > { %v1547_v3 = vpop.f32.mrf.mxu0 }
 0x215   : > { %v7567_v4 = vpop.f32.mrf.mxu0 }
 0x217   : > { %v1550_v5 = vpop.f32.mrf.mxu0 }
 0x219   : > { %v7568_v7 = vpop.f32.mrf.mxu0 }
 0x21a   : > { %v1458_v8 = vpop.f32.mrf.mxu1  ;;  %v8419_v7 = vld [vmem:[%s8855_s3 + $0x78] sm:$0xff]  }
 0x21b   : > { %v1548_v12 = vadd.f32 %v1547_v3, %v1458_v8  ;;  %v8418_v8 = vld [vmem:[%s8855_s3 + $0x30] sm:$0xff]  }
 0x21c   : > { %v7547_v9 = vpop.f32.mrf.mxu1 }
 0x21d   : > { %v8421_v9 = vld [vmem:[%s8855_s3 + $0x70] sm:$0xff]  }
 0x21e   : > { %v1461_v10 = vpop.f32.mrf.mxu1 }
 0x21f   : > { %v1551_v18 = vadd.f32 %v1550_v5, %v1461_v10  ;;  %v8417_v5 = vld [vmem:[%s8855_s3 + $0x38] sm:$0xff]   ;;  %v8420_v10 = vld [vmem:[%s8855_s3 + $0x28] sm:$0xff]  }
 0x220   : > { %v7548_v11 = vpop.f32.mrf.mxu1 }
 0x221   : > { %v8422_v11 = vld [vmem:[%s8855_s3 + $0x20] sm:$0xff]  }
 0x23a   : > { %v1642_v14 = vpop.f32.mrf.mxu1 }
 0x23b   : > { %v1649_v16 = vadd.f32 %v1642_v14, %v1548_v12  ;;  %v8423_v12 = vld [vmem:[%s8855_s3 + $0x68] sm:$0xff]   ;;  %v8425_v14 = vld [vmem:[%s8855_s3 + $0x60] sm:$0xff]  }
 0x23c   : > { %v7587_v17 = vpop.f32.mrf.mxu1 }
 0x23d   : > { %v1657_v19 = vadd.f32 %v6728_v13, %v1649_v16  ;;  %v8426_v16 = vld [vmem:[%s8855_s3 + $0x10] sm:$0xff]   ;;  %v8427_v17 = vld [vmem:[%s8855_s3 + $0x58] sm:$0xff]  }
 0x23e   : > { %v1645_v20 = vpop.f32.mrf.mxu1 }
 0x23f   : > { %v1659_v21 = vmul.f32 %v1657_v19, %v1657_v19  ;;  %v1650_v22 = vadd.f32 %v1645_v20, %v1551_v18  ;;  %v8428_v18 = vld [vmem:[%s8855_s3 + $0x8] sm:$0xff]   ;;  %v8430_v20 = vld [vmem:[%s8855_s3] sm:$0xff]  }
 0x240   : > { %v7588_v23 = vpop.f32.mrf.mxu1 }
 0x241   : > { %v1661_v24 = vmul.f32 %v1659_v21, %v1657_v19  ;;  %v1658_v25 = vadd.f32 %v6728_v13, %v1650_v22  ;;  %v8424_v13 = vld [vmem:[%s8855_s3 + $0x18] sm:$0xff]   ;;  %v8431_v21 = vld [vmem:[%s8855_s3 + $0x48] sm:$0xff]   ;;  %v8432_v22 = vld [vmem:[%s8855_s3 + $0x40] sm:$0xff]  }
 0x243   : > { %v1663_v26 = vmul.f32 0.044715, %v1661_v24  ;;  %v1660_v27 = vmul.f32 %v1658_v25, %v1658_v25 }
 0x245   : > { %v1665_v28 = vadd.f32 %v1663_v26, %v1657_v19  ;;  %v1662_v29 = vmul.f32 %v1660_v27, %v1658_v25 }
 0x247   : > { %v1667_v30 = vmul.f32 0.7978846, %v1665_v28  ;;  %v1664_v31 = vmul.f32 0.044715, %v1662_v29 }
 0x249   : > { %8733 = vtanh.f32 %v1667_v30  ;;  %v1666_v32 = vadd.f32 %v1664_v31, %v1658_v25 }
 0x24b   : > { %v1668_v33 = vmul.f32 0.7978846, %v1666_v32 }
 0x24d   : > { %8735 = vtanh.f32 %v1668_v33 }
 0x256   : > { %v8734_v34 = vpop.eup %8733 }
 0x257   : > { %v1671_v35 = vadd.f32 1.0, %v8734_v34  ;;  %v6753_v34 = vld [vmem:[%s8850_s29] ss:$0 sm:$0xff] }
 0x259   : > { %v1673_v37 = vmul.f32 0.5, %v1671_v35 }
 0x25a   : > { %v8736_v36 = vpop.eup %8735 }
 0x25b   : > { %v1672_v38 = vadd.f32 1.0, %v8736_v36  ;;  %v1675_v40 = vmul.f32 %v1673_v37, %v1657_v19  ;;  %v8429_v19 = vld [vmem:[%s8855_s3 + $0x50] sm:$0xff]  }
 0x25d   : > { %v1674_v39 = vmul.f32 0.5, %v1672_v38 }
 0x25f   : > { %v1676_v41 = vmul.f32 %v1674_v39, %v1658_v25 }
 0x261   : > { %v1677_v42 = vpack.c.bf16 %v1676_v41, %v1675_v40 }
 0x263   : > { %v1679_v43 = vshrl.u32 %v1677_v42, 16  ;;  %v1682_v45 = vshll.u32 %v1677_v42, 16 }
 0x265   : > { %v1681_v44 = vrot.slane %v1679_v43, 7 }
 0x267   : > { %v1684_v46 = vor.u32 %v1682_v45, %v1681_v44  ;;  %v1688_v47 = vsel %vm9006_vm3, %v1681_v44, 0 }
 0x268   : > { %v1697_v50 = vshll.u32 %v1688_v47, 16  ;;  %v1883_v3 = vrot.slane %v1688_v47, 1 }
 0x269   : > { %v1687_v48 = vsel %vm9006_vm3, 0, %v1684_v46 }
 0x26a   : > { %v1692_v49 = vshll.u32 %v1687_v48, 16  ;;  %7626 = vmatmul.mubr.bf16.vlgmr.msra.gmra.mxu1 %v1687_v48  ;;  %v1690_v51 = vshrl.u32 %v1687_v48, 16  ;;  %v1699_v54 = vrot.slane %v1697_v50, 1  ;;  %v1882_v2 = vrot.slane %v1687_v48, 1 }
 0x26b   : > { %7665 = vmatprep.mubr.msk.bf16.mxu1 %vm8810_vm0, %v8809_v1  ;;  %7650 = vmatpush3.bf16.msra.mxu1 %v8419_v7 }
 0x26c   : > { %v1694_v52 = vrot.slane %v1692_v49, 1  ;;  %v1884_v4 = vsel %vm1152_vm6, %v1882_v2, %v1883_v3  ;;  %7651 = vmatprep.subr.bf16.mxu1 %v8809_v1 }
 0x26e   : > { %v1695_v53 = vor.u32 %v1694_v52, %v1690_v51 }
 0x26f   : > { %7652 = vmatpush3.bf16.msra.mxu1 %v8421_v9 }
 0x270   : > { %v1700_v56 = vsel %vm1001_vm4, %v1695_v53, %v1699_v54  ;;  %7653 = vmatprep.subr.bf16.mxu1 %v8809_v1 }
 0x271   : > { %7606 = vmatmul.mubr.bf16.vlgmr.msra.gmra.mxu0 %v1700_v56 }
 0x272   : > { %7630 = vmatpush3.bf16.msra.mxu0 %v8409_v55  ;;  %7645 = vmatprep.mubr.msk.bf16.mxu0 %vm8810_vm0, %v8809_v1  ;;  %v8433_v55 = vld [vmem:[%s8855_s3 + $0xb8] sm:$0xff]  }
 0x273   : > { %7631 = vmatprep.subr.bf16.mxu0 %v8809_v1  ;;  %7654 = vmatpush3.bf16.msra.mxu1 %v8423_v12 }
 0x274   : > { %7655 = vmatprep.subr.bf16.mxu1 %v8809_v1 }
 0x276   : > { %7632 = vmatpush3.bf16.msra.mxu0 %v8410_v57  ;;  %v8434_v57 = vld [vmem:[%s8855_s3 + $0xb0] sm:$0xff]  }
 0x277   : > { %7633 = vmatprep.subr.bf16.mxu0 %v8809_v1  ;;  %7656 = vmatpush3.bf16.msra.mxu1 %v8425_v14  ;;  %v2335_v14 = vlaneseq }
 0x278   : > { %7657 = vmatprep.subr.bf16.mxu1 %v8809_v1 }
 0x27a   : > { %7634 = vmatpush3.bf16.msra.mxu0 %v8411_v58  ;;  %v8435_v58 = vld [vmem:[%s8855_s3 + $0xa8] sm:$0xff]  }
 0x27b   : > { %7635 = vmatprep.subr.bf16.mxu0 %v8809_v1  ;;  %7658 = vmatpush3.bf16.msra.mxu1 %v8427_v17 }
 0x27c   : > { %7659 = vmatprep.subr.bf16.mxu1 %v8809_v1 }
 0x27e   : > { %7636 = vmatpush3.bf16.msra.mxu0 %v8412_v59  ;;  %v8436_v59 = vld [vmem:[%s8855_s3 + $0xa0] sm:$0xff]  }
 0x27f   : > { %7637 = vmatprep.subr.bf16.mxu0 %v8809_v1  ;;  %7660 = vmatpush3.bf16.msra.mxu1 %v8429_v19 }
 0x280   : > { %7661 = vmatprep.subr.bf16.mxu1 %v8809_v1 }
 0x282   : > { %7638 = vmatpush3.bf16.msra.mxu0 %v8413_v60  ;;  %v8437_v60 = vld [vmem:[%s8855_s3 + $0x98] sm:$0xff]  }
 0x283   : > { %7639 = vmatprep.subr.bf16.mxu0 %v8809_v1  ;;  %7662 = vmatpush3.bf16.msra.mxu1 %v8431_v21 }
 0x284   : > { %7663 = vmatprep.subr.bf16.mxu1 %v8809_v1 }
 0x286   : > { %7640 = vmatpush3.bf16.msra.mxu0 %v8414_v61  ;;  %v8438_v61 = vld [vmem:[%s8855_s3 + $0x90] sm:$0xff]  }
 0x287   : > { %7641 = vmatprep.subr.bf16.mxu0 %v8809_v1  ;;  %7664 = vmatpush3.bf16.msra.mxu1 %v8432_v22 }
 0x288   : > { %7689 = vmatprep.subr.bf16.mxu1 %v8809_v1 }
 0x28a   : > { %7642 = vmatpush3.bf16.msra.mxu0 %v8415_v62  ;;  %v8439_v62 = vld [vmem:[%s8855_s3 + $0x88] sm:$0xff]  }
 0x28b   : > { %7643 = vmatprep.subr.bf16.mxu0 %v8809_v1 }
 0x28e   : > { %7644 = vmatpush3.bf16.msra.mxu0 %v8416_v0  ;;  %v8440_v0 = vld [vmem:[%s8855_s3 + $0x80] sm:$0xff]  }
 0x28f   : > { %7669 = vmatprep.subr.bf16.mxu0 %v8809_v1 }
 0x291   : > { %7646 = vmatmul.mubr.bf16.vlgmr.msra.gmra.mxu0 %v1884_v4 }
 0x292   : > { %7685 = vmatprep.mubr.msk.bf16.mxu0 %vm8810_vm0, %v8809_v1  ;;  %7670 = vmatpush3.bf16.msra.mxu0 %v8417_v5 }
 0x293   : > { %7671 = vmatprep.subr.bf16.mxu0 %v8809_v1 }
 0x296   : > { %7672 = vmatpush3.bf16.msra.mxu0 %v8418_v8 }
 0x297   : > { %7673 = vmatprep.subr.bf16.mxu0 %v8809_v1 }
 0x29a   : > { %7674 = vmatpush3.bf16.msra.mxu0 %v8420_v10 }
 0x29b   : > { %7675 = vmatprep.subr.bf16.mxu0 %v8809_v1 }
 0x29e   : > { %7676 = vmatpush3.bf16.msra.mxu0 %v8422_v11 }
 0x29f   : > { %7677 = vmatprep.subr.bf16.mxu0 %v8809_v1 }
 0x2a2   : > { %7678 = vmatpush3.bf16.msra.mxu0 %v8424_v13 }
 0x2a3   : > { %7679 = vmatprep.subr.bf16.mxu0 %v8809_v1 }
 0x2a6   : > { %7680 = vmatpush3.bf16.msra.mxu0 %v8426_v16  ;;  %v9247_v16 = vshrl.u32 %v2335_v14, 7 }
 0x2a7   : > { %7681 = vmatprep.subr.bf16.mxu0 %v8809_v1 }
 0x2a8   : > { %v2339_v19 = vmul.u32 2, %v9247_v16 }
 0x2aa   : > { %7682 = vmatpush3.bf16.msra.mxu0 %v8428_v18  ;;  %v9249_v18 = vand.u32 127, %v2335_v14 }
 0x2ab   : > { %7683 = vmatprep.subr.bf16.mxu0 %v8809_v1 }
 0x2ac   : > { %vm2340_vm7 = vcmp.eq.s32.totalorder %v9249_v18, %v2339_v19 }
 0x2ae   : > { %7684 = vmatpush3.bf16.msra.mxu0 %v8430_v20 }
 0x2af   : > { %7709 = vmatprep.subr.mxu0 %v8809_v1 }
 0x32a   : > { %v1873_v23 = vpop.f32.mrf.mxu1 }
 0x32c   : > { %v7627_v24 = vpop.f32.mrf.mxu1 }
 0x32e   : > { %v1876_v25 = vpop.f32.mrf.mxu1 }
 0x330   : > { %v7628_v26 = vpop.f32.mrf.mxu1 }
 0x331   : > { %v1784_v27 = vpop.f32.mrf.mxu0 }
 0x332   : > { %v1874_v31 = vadd.f32 %v1873_v23, %v1784_v27  ;;  %v6778_v27 = vsel %vm2340_vm7, 1.0, %v8809_v1 }
 0x333   : > { %v7607_v28 = vpop.f32.mrf.mxu0 }
 0x334   : > { %v8441_v28 = vld [vmem:[%s8865_s14 + $0x38] sm:$0xff]  }
 0x335   : > { %v1787_v29 = vpop.f32.mrf.mxu0 }
 0x336   : > { %v1877_v36 = vadd.f32 %v1876_v25, %v1787_v29  ;;  %v8443_v29 = vld [vmem:[%s8865_s14 + $0x78] sm:$0xff]  }
 0x337   : > { %v7608_v30 = vpop.f32.mrf.mxu0 }
 0x338   : > { %v8442_v30 = vld [vmem:[%s8865_s14 + $0x30] sm:$0xff]  }
 0x351   : > { %v1968_v32 = vpop.f32.mrf.mxu0 }
 0x352   : > { %v1975_v33 = vadd.f32 %v1968_v32, %v1874_v31  ;;  %v8445_v31 = vld [vmem:[%s8865_s14 + $0x70] sm:$0xff]   ;;  %v8444_v32 = vld [vmem:[%s8865_s14 + $0x28] sm:$0xff]  }
 0x353   : > { %v7647_v35 = vpop.f32.mrf.mxu0 }
 0x354   : > { %v1983_v38 = vadd.f32 %v6753_v34, %v1975_v33  ;;  %v8447_v33 = vld [vmem:[%s8865_s14 + $0x68] sm:$0xff]   ;;  %v8449_v35 = vld [vmem:[%s8865_s14 + $0x60] sm:$0xff]  }
 0x355   : > { %v1971_v37 = vpop.f32.mrf.mxu0 }
 0x356   : > { %v1976_v39 = vadd.f32 %v1971_v37, %v1877_v36  ;;  %v1985_v42 = vadd.f32 %v1983_v38, %v9068_v63  ;;  %v8448_v36 = vld [vmem:[%s8865_s14 + $0x18] sm:$0xff]   ;;  %v8450_v38 = vld [vmem:[%s8865_s14 + $0x10] sm:$0xff]  }
 0x357   : > { %v7648_v40 = vpop.f32.mrf.mxu0  ;;  %v8451_v37 = vld [vmem:[%s8865_s14 + $0x58] sm:$0xff]  }
 0x358   : > { %v1984_v41 = vadd.f32 %v6753_v34, %v1976_v39  ;;  %v8446_v34 = vld [vmem:[%s8865_s14 + $0x20] sm:$0xff]   ;;  %v8453_v39 = vld [vmem:[%s8865_s14 + $0x50] sm:$0xff]   ;;  %v8452_v40 = vld [vmem:[%s8865_s14 + $0x8] sm:$0xff]  }
 0x35a   : > { %v1986_v43 = vadd.f32 %v1984_v41, %v9073_v6  ;;  %v8455_v41 = vld [vmem:[%s8865_s14 + $0x48] sm:$0xff]  }
 0x35c   : > { %v2035_v44 = vpack.c.bf16 %v1986_v43, %v1985_v42  ;;  %v8454_v42 = vld [vmem:[%s8865_s14] sm:$0xff]  }
 0x35d   : > { %v8456_v43 = vld [vmem:[%s8865_s14 + $0x40] sm:$0xff]  }
 0x35e   : > { %v2037_v45 = vshrl.u32 %v2035_v44, 16  ;;  %v2040_v47 = vshll.u32 %v2035_v44, 16  ;;  %v6779_v44 = vld [vmem:[%s8860_s8] ss:$0 sm:$0xff] }
 0x360   : > { %v2039_v46 = vrot.slane %v2037_v45, 7 }
 0x362   : > { %v2042_v48 = vor.u32 %v2040_v47, %v2039_v46  ;;  %v2046_v49 = vsel %vm9006_vm3, %v2039_v46, 0 }
 0x363   : > { %v2055_v6 = vshll.u32 %v2046_v49, 16  ;;  %v2241_v3 = vrot.slane %v2046_v49, 1 }
 0x364   : > { %v9211_v50 = vsel %vm9006_vm3, 0, %v2042_v48 }
 0x365   : > { %7686 = vmatmul.mubr.bf16.vlgmr.msra.gmra.mxu0 %v9211_v50  ;;  %v2050_v63 = vshll.u32 %v9211_v50, 16  ;;  %v2048_v51 = vshrl.u32 %v9211_v50, 16  ;;  %v2057_v54 = vrot.slane %v2055_v6, 1  ;;  %v2240_v2 = vrot.slane %v9211_v50, 1 }
 0x366   : > { %7713 = vmatprep.mubr.msk.f32.mxu0 %vm8810_vm0, %v8809_v1 }
 0x367   : > { %v2052_v52 = vrot.slane %v2050_v63, 1  ;;  %v9242_v4 = vsel %vm1152_vm6, %v2240_v2, %v2241_v3 }
 0x369   : > { %v2053_v53 = vor.u32 %v2052_v52, %v2048_v51 }
 0x36b   : > { %v9220_v56 = vsel %vm1001_vm4, %v2053_v53, %v2057_v54 }
 0x36c   : > { %7666 = vmatmul.mubr.bf16.vlgmr.msra.gmra.mxu1 %v9220_v56 }
 0x36d   : > { %7690 = vmatpush3.bf16.msra.mxu1 %v8433_v55  ;;  %7705 = vmatprep.mubr.msk.bf16.mxu1 %vm8810_vm0, %v8809_v1 }
 0x36e   : > { %7691 = vmatprep.subr.bf16.mxu1 %v8809_v1 }
 0x371   : > { %7692 = vmatpush3.bf16.msra.mxu1 %v8434_v57 }
 0x372   : > { %7693 = vmatprep.subr.bf16.mxu1 %v8809_v1 }
 0x375   : > { %7694 = vmatpush3.bf16.msra.mxu1 %v8435_v58 }
 0x376   : > { %7695 = vmatprep.subr.bf16.mxu1 %v8809_v1 }
 0x379   : > { %7696 = vmatpush3.bf16.msra.mxu1 %v8436_v59 }
 0x37a   : > { %7697 = vmatprep.subr.bf16.mxu1 %v8809_v1 }
 0x37d   : > { %7698 = vmatpush3.bf16.msra.mxu1 %v8437_v60 }
 0x37e   : > { %7699 = vmatprep.subr.bf16.mxu1 %v8809_v1 }
 0x381   : > { %7700 = vmatpush3.bf16.msra.mxu1 %v8438_v61 }
 0x382   : > { %7701 = vmatprep.subr.bf16.mxu1 %v8809_v1 }
 0x385   : > { %7702 = vmatpush3.bf16.msra.mxu1 %v8439_v62 }
 0x386   : > { %7703 = vmatprep.subr.bf16.mxu1 %v8809_v1 }
 0x389   : > { %7704 = vmatpush3.bf16.msra.mxu1 %v8440_v0 }
 0x38a   : > { %7736 = vmatprep.subr.bf16.mxu1 %v8809_v1 }
 0x38c   : > { %7706 = vmatmul.mubr.bf16.vlgmr.msra.gmra.mxu1 %v9242_v4 }
 0x38d   : > { %7752 = vmatprep.mubr.msk.bf16.mxu1 %vm8810_vm0, %v8809_v1  ;;  %7737 = vmatpush3.bf16.msra.mxu1 %v8441_v28  ;;  %v8464_v28 = vld [vmem:[%s8865_s14 + $0x80] sm:$0xff]  }
 0x38e   : > { %7738 = vmatprep.subr.bf16.mxu1 %v8809_v1 }
 0x391   : > { %7739 = vmatpush3.bf16.msra.mxu1 %v8442_v30  ;;  %v8465_v30 = vld [vmem:[%s8875_s24 + $0x38] sm:$0xff]  }
 0x392   : > { %7740 = vmatprep.subr.bf16.mxu1 %v8809_v1 }
 0x395   : > { %7741 = vmatpush3.bf16.msra.mxu1 %v8444_v32  ;;  %v8467_v32 = vld [vmem:[%s8875_s24 + $0x78] sm:$0xff]  }
 0x396   : > { %7742 = vmatprep.subr.bf16.mxu1 %v8809_v1 }
 0x399   : > { %7743 = vmatpush3.bf16.msra.mxu1 %v8446_v34  ;;  %v8469_v34 = vld [vmem:[%s8875_s24 + $0x70] sm:$0xff]  }
 0x39a   : > { %7744 = vmatprep.subr.bf16.mxu1 %v8809_v1 }
 0x39d   : > { %7745 = vmatpush3.bf16.msra.mxu1 %v8448_v36  ;;  %v8471_v36 = vld [vmem:[%s8875_s24 + $0x68] sm:$0xff]  }
 0x39e   : > { %7746 = vmatprep.subr.bf16.mxu1 %v8809_v1 }
 0x3a1   : > { %7747 = vmatpush3.bf16.msra.mxu1 %v8450_v38  ;;  %v8473_v38 = vld [vmem:[%s8875_s24 + $0x60] sm:$0xff]  }
 0x3a2   : > { %7748 = vmatprep.subr.bf16.mxu1 %v8809_v1 }
 0x3a5   : > { %7749 = vmatpush3.bf16.msra.mxu1 %v8452_v40  ;;  %v8475_v40 = vld [vmem:[%s8875_s24 + $0x58] sm:$0xff]  }
 0x3a6   : > { %7750 = vmatprep.subr.bf16.mxu1 %v8809_v1 }
 0x3a9   : > { %7751 = vmatpush3.bf16.msra.mxu1 %v8454_v42  ;;  %v8477_v42 = vld [vmem:[%s8875_s24 + $0x50] sm:$0xff]  }
 0x3aa   : > { %7776 = vmatprep.subr.bf16.mxu1 %v8809_v1 }
 0x425   : > { %v2231_v5 = vpop.f32.mrf.mxu0 }
 0x427   : > { %v7687_v7 = vpop.f32.mrf.mxu0 }
 0x429   : > { %v2234_v8 = vpop.f32.mrf.mxu0 }
 0x42b   : > { %v7688_v9 = vpop.f32.mrf.mxu0 }
 0x42c   : > { %v2142_v10 = vpop.f32.mrf.mxu1 }
 0x42d   : > { %v2232_v23 = vadd.f32 %v2231_v5, %v2142_v10 }
 0x42e   : > { %v7667_v11 = vpop.f32.mrf.mxu1 }
 0x42f   : > { %v8483_v11 = vld [vmem:[%s8875_s24 + $0xa8] sm:$0xff]  }
 0x430   : > { %v2145_v12 = vpop.f32.mrf.mxu1 }
 0x431   : > { %v2235_v21 = vadd.f32 %v2234_v8, %v2145_v12 }
 0x432   : > { %v7668_v13 = vpop.f32.mrf.mxu1 }
 0x44c   : > { %v2326_v17 = vpop.f32.mrf.mxu1 }
 0x44d   : > { %v2333_v26 = vadd.f32 %v2326_v17, %v2232_v23  ;;  %v8459_v23 = vld [vmem:[%s8865_s14 + $0xa8] sm:$0xff]  }
 0x44e   : > { %v7707_v20 = vpop.f32.mrf.mxu1 }
 0x44f   : > { %v8457_v20 = vld [vmem:[%s8865_s14 + $0xb8] sm:$0xff]  }
 0x450   : > { %v2329_v22 = vpop.f32.mrf.mxu1 }
 0x451   : > { %v2334_v24 = vadd.f32 %v2329_v22, %v2235_v21  ;;  %v8458_v22 = vld [vmem:[%s8865_s14 + $0xb0] sm:$0xff]  }
 0x452   : > { %v7708_v25 = vpop.f32.mrf.mxu1 }
 0x453   : > { %7710 = vmatpush3.msra.mxu0 %v2334_v24  ;;  %v8460_v24 = vld [vmem:[%s8865_s14 + $0xa0] sm:$0xff]   ;;  %v8461_v25 = vld [vmem:[%s8865_s14 + $0x98] sm:$0xff]  }
 0x454   : > { %7711 = vmatprep.subr.mxu0 %v8809_v1 }
 0x455   : > { %7712 = vmatpush3.msra.mxu0 %v2333_v26  ;;  %v8462_v26 = vld [vmem:[%s8865_s14 + $0x90] sm:$0xff]  }
 0x456   : > { %7714 = vmatmul.mubr.msk.f32.vlgmr.msra.gmra.mxu0 %vm2350_vm8, %v6778_v27  ;;  %7716 = vmatprep.subr.bf16.mxu0 %v8809_v1  ;;  %v8463_v27 = vld [vmem:[%s8865_s14 + $0x88] sm:$0xff]   ;;  %vm5358_vm8 = vcmask 1045504  }
 0x457   : > { %7732 = vmatprep.mubr.msk.bf16.mxu0 %vm8810_vm0, %v8809_v1  ;;  %7717 = vmatpush3.bf16.msra.mxu0 %v8443_v29 }
 0x458   : > { %7718 = vmatprep.subr.bf16.mxu0 %v8809_v1 }
 0x45b   : > { %7719 = vmatpush3.bf16.msra.mxu0 %v8445_v31  ;;  %v8466_v31 = vld [vmem:[%s8875_s24 + $0x30] sm:$0xff]  }
 0x45c   : > { %7720 = vmatprep.subr.bf16.mxu0 %v8809_v1 }
 0x45f   : > { %7721 = vmatpush3.bf16.msra.mxu0 %v8447_v33  ;;  %v8468_v33 = vld [vmem:[%s8875_s24 + $0x28] sm:$0xff]  }
 0x460   : > { %7722 = vmatprep.subr.bf16.mxu0 %v8809_v1 }
 0x463   : > { %7723 = vmatpush3.bf16.msra.mxu0 %v8449_v35  ;;  %v8470_v35 = vld [vmem:[%s8875_s24 + $0x20] sm:$0xff]  }
 0x464   : > { %7724 = vmatprep.subr.bf16.mxu0 %v8809_v1 }
 0x467   : > { %7725 = vmatpush3.bf16.msra.mxu0 %v8451_v37  ;;  %v8472_v37 = vld [vmem:[%s8875_s24 + $0x18] sm:$0xff]  }
 0x468   : > { %7726 = vmatprep.subr.bf16.mxu0 %v8809_v1 }
 0x46b   : > { %7727 = vmatpush3.bf16.msra.mxu0 %v8453_v39  ;;  %v8474_v39 = vld [vmem:[%s8875_s24 + $0x10] sm:$0xff]  }
 0x46c   : > { %7728 = vmatprep.subr.bf16.mxu0 %v8809_v1 }
 0x46f   : > { %7729 = vmatpush3.bf16.msra.mxu0 %v8455_v41  ;;  %v8476_v41 = vld [vmem:[%s8875_s24 + $0x8] sm:$0xff]  }
 0x470   : > { %7730 = vmatprep.subr.bf16.mxu0 %v8809_v1 }
 0x473   : > { %7731 = vmatpush3.bf16.msra.mxu0 %v8456_v43  ;;  %v8478_v43 = vld [vmem:[%s8875_s24] sm:$0xff]  }
 0x474   : > { %7756 = vmatprep.subr.bf16.mxu0 %v8809_v1 }
 0x516   : > { %v2420_v45 = vpop.f32.mrf.mxu0 }
 0x517   : > { %v2421_v46 = vadd.f32 %v6779_v44, %v2420_v45  ;;  %v8479_v44 = vld [vmem:[%s8875_s24 + $0x48] sm:$0xff]   ;;  %v8480_v45 = vld [vmem:[%s8875_s24 + $0x40] sm:$0xff]  }
 0x518   : > { %v7715_v47 = vpop.f32.mrf.mxu0 }
 0x519   : > { %v2424_v48 = vmul.f32 %v2421_v46, %v2421_v46 }
 0x51b   : > { %v2425_v49 = vmul.f32 %v2424_v48, %v2421_v46 }
 0x51d   : > { %v2426_v63 = vmul.f32 0.044715, %v2425_v49 }
 0x51f   : > { %v2427_v6 = vadd.f32 %v2426_v63, %v2421_v46 }
 0x521   : > { %v2428_v51 = vmul.f32 0.7978846, %v2427_v6 }
 0x523   : > { %8737 = vtanh.f32 %v2428_v51 }
 0x530   : > { %v8738_v52 = vpop.eup %8737 }
 0x531   : > { %v2430_v53 = vadd.f32 1.0, %v8738_v52 }
 0x533   : > { %v2431_v54 = vmul.f32 0.5, %v2430_v53 }
 0x535   : > { %v9291_v55 = vmul.f32 %v2431_v54, %v2421_v46 }
 0x537   : > { %v2433_v57 = vmul.f32 %v9291_v55, %v9291_v55 }
 0x539   : > { %v2434_v58 = vmul.f32 %v2433_v57, %v9291_v55  ;;  %v6805_v57 = vld [vmem:[%s953_s23] ss:$0 sm:$0xff]  ;;  %s10033_s23 = sld [smem:[#allocation10_spill]] }
 0x53b   : > { %v2435_v59 = vmul.f32 0.044715, %v2434_v58 }
 0x53d   : > { %v2436_v60 = vadd.f32 %v2435_v59, %v9291_v55 }
 0x53f   : > { %v2437_v61 = vmul.f32 0.7978846, %v2436_v60 }
 0x541   : > { %8739 = vtanh.f32 %v2437_v61 }
 0x54e   : > { %v8740_v62 = vpop.eup %8739 }
 0x54f   : > { %v2439_v0 = vadd.f32 1.0, %v8740_v62 }
 0x551   : > { %v2440_v2 = vmul.f32 0.5, %v2439_v0 }
 0x553   : > { %v2441_v3 = vmul.f32 %v2440_v2, %v9291_v55 }
 0x555   : > { %v2490_v5 = vpack.c.bf16 %v2441_v3, %v2441_v3 }
 0x557   : > { %v2492_v7 = vshrl.u32 %v2490_v5, 16  ;;  %v2495_v9 = vshll.u32 %v2490_v5, 16 }
 0x559   : > { %v2494_v8 = vrot.slane %v2492_v7, 7 }
 0x55b   : > { %v2497_v10 = vor.u32 %v2495_v9, %v2494_v8 }
 0x55d   : > { %v2499_v12 = vsel %vm9006_vm3, 0, %v2497_v10 }
 0x55e   : > { %v2503_v13 = vsel %vm9299_vm11, %v2499_v12, 0 }
 0x55f   : > { %v2507_v14 = vshll.u32 %v2503_v13, 16  ;;  %7753 = vmatmul.mubr.bf16.vlgmr.msra.gmra.mxu1 %v2503_v13  ;;  %v2505_v17 = vshrl.u32 %v2503_v13, 16  ;;  %v2689_v29 = vrot.slane %v2503_v13, 1 }
 0x560   : > { %7792 = vmatprep.mubr.msk.bf16.mxu1 %vm8810_vm0, %v8809_v1  ;;  %7777 = vmatpush3.bf16.msra.mxu1 %v8467_v32  ;;  %v8487_v32 = vld [vmem:[%s8875_s24 + $0x88] sm:$0xff]  }
 0x561   : > { %v2509_v19 = vrot.slane %v2507_v14, 1  ;;  %7778 = vmatprep.subr.bf16.mxu1 %v8809_v1 }
 0x563   : > { %v2510_v21 = vor.u32 %v2509_v19, %v2505_v17 }
 0x564   : > { %7779 = vmatpush3.bf16.msra.mxu1 %v8469_v34 }
 0x565   : > { %7733 = vmatmul.mubr.bf16.vlgmr.msra.gmra.mxu0 %v2510_v21  ;;  %7780 = vmatprep.subr.bf16.mxu1 %v8809_v1 }
 0x566   : > { %7757 = vmatpush3.bf16.msra.mxu0 %v8457_v20  ;;  %7772 = vmatprep.mubr.msk.bf16.mxu0 %vm8810_vm0, %v8809_v1 }
 0x567   : > { %7758 = vmatprep.subr.bf16.mxu0 %v8809_v1 }
 0x568   : > { %7781 = vmatpush3.bf16.msra.mxu1 %v8471_v36  ;;  %v8491_v36 = vld [vmem:[%s8885_s6 + $0x78] sm:$0xff]  }
 0x569   : > { %7782 = vmatprep.subr.bf16.mxu1 %v8809_v1 }
 0x56a   : > { %7759 = vmatpush3.bf16.msra.mxu0 %v8458_v22 }
 0x56b   : > { %7760 = vmatprep.subr.bf16.mxu0 %v8809_v1 }
 0x56c   : > { %7783 = vmatpush3.bf16.msra.mxu1 %v8473_v38  ;;  %v8493_v38 = vld [vmem:[%s8885_s6 + $0x70] sm:$0xff]  }
 0x56d   : > { %7784 = vmatprep.subr.bf16.mxu1 %v8809_v1 }
 0x56e   : > { %7761 = vmatpush3.bf16.msra.mxu0 %v8459_v23 }
 0x56f   : > { %7762 = vmatprep.subr.bf16.mxu0 %v8809_v1 }
 0x570   : > { %7785 = vmatpush3.bf16.msra.mxu1 %v8475_v40  ;;  %v8495_v40 = vld [vmem:[%s8885_s6 + $0x68] sm:$0xff]  }
 0x571   : > { %7786 = vmatprep.subr.bf16.mxu1 %v8809_v1 }
 0x572   : > { %7763 = vmatpush3.bf16.msra.mxu0 %v8460_v24 }
 0x573   : > { %7764 = vmatprep.subr.bf16.mxu0 %v8809_v1 }
 0x574   : > { %7787 = vmatpush3.bf16.msra.mxu1 %v8477_v42  ;;  %v8496_v42 = vld [vmem:[%s8885_s6 + $0x18] sm:$0xff]  }
 0x575   : > { %7788 = vmatprep.subr.bf16.mxu1 %v8809_v1 }
 0x576   : > { %7765 = vmatpush3.bf16.msra.mxu0 %v8461_v25 }
 0x577   : > { %7766 = vmatprep.subr.bf16.mxu0 %v8809_v1 }
 0x578   : > { %7789 = vmatpush3.bf16.msra.mxu1 %v8479_v44  ;;  %v8498_v44 = vld [vmem:[%s8885_s6 + $0x10] sm:$0xff]  }
 0x579   : > { %7790 = vmatprep.subr.bf16.mxu1 %v8809_v1 }
 0x57a   : > { %7767 = vmatpush3.bf16.msra.mxu0 %v8462_v26  ;;  %v8481_v26 = vld [vmem:[%s8875_s24 + $0xb8] sm:$0xff]  }
 0x57b   : > { %7768 = vmatprep.subr.bf16.mxu0 %v8809_v1 }
 0x57c   : > { %7791 = vmatpush3.bf16.msra.mxu1 %v8480_v45  ;;  %v8499_v45 = vld [vmem:[%s8885_s6 + $0x58] sm:$0xff]  }
 0x57d   : > { %7816 = vmatprep.subr.bf16.mxu1 %v8809_v1 }
 0x57e   : > { %7769 = vmatpush3.bf16.msra.mxu0 %v8463_v27 }
 0x57f   : > { %7770 = vmatprep.subr.bf16.mxu0 %v8809_v1 }
 0x582   : > { %7771 = vmatpush3.bf16.msra.mxu0 %v8464_v28  ;;  %v8482_v28 = vld [vmem:[%s8875_s24 + $0xb0] sm:$0xff]  }
 0x583   : > { %7796 = vmatprep.subr.bf16.mxu0 %v8809_v1 }
 0x585   : > { %7773 = vmatmul.mubr.bf16.vlgmr.msra.gmra.mxu0 %v2689_v29  ;;  %v8484_v29 = vld [vmem:[%s8875_s24 + $0xa0] sm:$0xff]  }
 0x586   : > { %7812 = vmatprep.mubr.msk.bf16.mxu0 %vm8810_vm0, %v8809_v1  ;;  %7797 = vmatpush3.bf16.msra.mxu0 %v8465_v30  ;;  %v8485_v30 = vld [vmem:[%s8875_s24 + $0x98] sm:$0xff]  }
 0x587   : > { %7798 = vmatprep.subr.bf16.mxu0 %v8809_v1 }
 0x58a   : > { %7799 = vmatpush3.bf16.msra.mxu0 %v8466_v31  ;;  %v8486_v31 = vld [vmem:[%s8875_s24 + $0x90] sm:$0xff]  }
 0x58b   : > { %7800 = vmatprep.subr.bf16.mxu0 %v8809_v1 }
 0x58e   : > { %7801 = vmatpush3.bf16.msra.mxu0 %v8468_v33  ;;  %v8488_v33 = vld [vmem:[%s8875_s24 + $0x80] sm:$0xff]  }
 0x58f   : > { %7802 = vmatprep.subr.bf16.mxu0 %v8809_v1 }
 0x592   : > { %7803 = vmatpush3.bf16.msra.mxu0 %v8470_v35  ;;  %v8489_v35 = vld [vmem:[%s8885_s6 + $0x38] sm:$0xff]  }
 0x593   : > { %7804 = vmatprep.subr.bf16.mxu0 %v8809_v1 }
 0x596   : > { %7805 = vmatpush3.bf16.msra.mxu0 %v8472_v37  ;;  %v8490_v37 = vld [vmem:[%s8885_s6 + $0x30] sm:$0xff]  }
 0x597   : > { %7806 = vmatprep.subr.bf16.mxu0 %v8809_v1 }
 0x59a   : > { %7807 = vmatpush3.bf16.msra.mxu0 %v8474_v39  ;;  %v8492_v39 = vld [vmem:[%s8885_s6 + $0x28] sm:$0xff]  }
 0x59b   : > { %7808 = vmatprep.subr.bf16.mxu0 %v8809_v1 }
 0x59e   : > { %7809 = vmatpush3.bf16.msra.mxu0 %v8476_v41  ;;  %v8494_v41 = vld [vmem:[%s8885_s6 + $0x20] sm:$0xff]  }
 0x59f   : > { %7810 = vmatprep.subr.bf16.mxu0 %v8809_v1 }
 0x5a2   : > { %7811 = vmatpush3.bf16.msra.mxu0 %v8478_v43  ;;  %v8497_v43 = vld [vmem:[%s8885_s6 + $0x60] sm:$0xff]  }
 0x5a3   : > { %7836 = vmatprep.subr.bf16.mxu0 %v8809_v1 }
 0x61f   : > { %v2682_v46 = vpop.f32.mrf.mxu1 }
 0x621   : > { %v7754_v47 = vpop.f32.mrf.mxu1 }
 0x622   : > { %v8501_v47 = vld [vmem:[%s8885_s6 + $0x50] sm:$0xff]  }
 0x623   : > { %v2685_v48 = vpop.f32.mrf.mxu1 }
 0x624   : > { %v8502_v48 = vld [vmem:[%s8885_s6] sm:$0xff]  }
 0x625   : > { %v2594_v49 = vpop.f32.mrf.mxu0  ;;  %v7755_v63 = vpop.f32.mrf.mxu1 }
 0x626   : > { %v2683_v53 = vadd.f32 %v2682_v46, %v2594_v49  ;;  %v8500_v46 = vld [vmem:[%s8885_s6 + $0x8] sm:$0xff]   ;;  %v8505_v63 = vld [vmem:[%s8885_s6 + $0x40] sm:$0xff]  }
 0x627   : > { %v7734_v6 = vpop.f32.mrf.mxu0  ;;  %v8503_v49 = vld [vmem:[%s8885_s6 + $0x48] sm:$0xff]  }
 0x629   : > { %v2597_v51 = vpop.f32.mrf.mxu0 }
 0x62b   : > { %v7735_v52 = vpop.f32.mrf.mxu0 }
 0x645   : > { %v2773_v54 = vpop.f32.mrf.mxu0 }
 0x646   : > { %v2779_v58 = vadd.f32 %v2773_v54, %v2683_v53 }
 0x647   : > { %v7774_v59 = vpop.f32.mrf.mxu0 }
 0x648   : > { %v2787_v60 = vadd.f32 %v6805_v57, %v2779_v58 }
 0x649   : > { %v2776_v61 = vpop.f32.mrf.mxu0 }
 0x64a   : > { %v2788_v62 = vmul.f32 %v2787_v60, %v2787_v60 }
 0x64b   : > { %v7775_v0 = vpop.f32.mrf.mxu0 }
 0x64c   : > { %v2789_v2 = vmul.f32 %v2788_v62, %v2787_v60  ;;  %v6830_v62 = vld [vmem:[%s8880_s30] ss:$0 sm:$0xff] }
 0x64e   : > { %v2790_v3 = vmul.f32 0.044715, %v2789_v2 }
 0x650   : > { %v2791_v5 = vadd.f32 %v2790_v3, %v2787_v60 }
 0x652   : > { %v2792_v7 = vmul.f32 0.7978846, %v2791_v5 }
 0x654   : > { %8741 = vtanh.f32 %v2792_v7 }
 0x661   : > { %v8742_v8 = vpop.eup %8741 }
 0x662   : > { %v2794_v9 = vadd.f32 1.0, %v8742_v8 }
 0x664   : > { %v2795_v10 = vmul.f32 0.5, %v2794_v9 }
 0x666   : > { %v2796_v12 = vmul.f32 %v2795_v10, %v2787_v60 }
 0x668   : > { %v2845_v13 = vpack.c.bf16 %v2796_v12, %v2796_v12 }
 0x66a   : > { %v2847_v14 = vshrl.u32 %v2845_v13, 16  ;;  %v2850_v19 = vshll.u32 %v2845_v13, 16 }
 0x66c   : > { %v2849_v17 = vrot.slane %v2847_v14, 7 }
 0x66e   : > { %v2852_v20 = vor.u32 %v2850_v19, %v2849_v17  ;;  %v8504_v17 = vld [vmem:[%s10024_s26 + $0x38] sm:$0xff]  }
 0x670   : > { %v2854_v21 = vsel %vm9006_vm3, 0, %v2852_v20 }
 0x671   : > { %v2855_v22 = vsel %vm9299_vm11, %v2854_v21, 0  ;;  %v8506_v21 = vld [vmem:[%s10024_s26 + $0x30] sm:$0xff]  }
 0x672   : > { %v2859_v23 = vshll.u32 %v2855_v22, 16  ;;  %7813 = vmatmul.mubr.bf16.vlgmr.msra.gmra.mxu0 %v2855_v22  ;;  %v2857_v24 = vshrl.u32 %v2855_v22, 16  ;;  %v3041_v34 = vrot.slane %v2855_v22, 1 }
 0x673   : > { %7852 = vmatprep.mubr.msk.bf16.mxu0 %vm8810_vm0, %v8809_v1  ;;  %7837 = vmatpush3.bf16.msra.mxu0 %v8491_v36  ;;  %v8519_v36 = vld [vmem:[%s10024_s26 + $0x48] sm:$0xff]  }
 0x674   : > { %v2861_v25 = vrot.slane %v2859_v23, 1  ;;  %7838 = vmatprep.subr.bf16.mxu0 %v8809_v1  ;;  %v8507_v23 = vld [vmem:[%s10024_s26 + $0x78] sm:$0xff]  }
 0x676   : > { %v2862_v27 = vor.u32 %v2861_v25, %v2857_v24  ;;  %v8508_v25 = vld [vmem:[%s10024_s26 + $0x28] sm:$0xff]  }
 0x677   : > { %7839 = vmatpush3.bf16.msra.mxu0 %v8493_v38  ;;  %v8520_v38 = vld [vmem:[%s10024_s26 + $0x40] sm:$0xff]  }
 0x678   : > { %7793 = vmatmul.mubr.bf16.vlgmr.msra.gmra.mxu1 %v2862_v27  ;;  %7840 = vmatprep.subr.bf16.mxu0 %v8809_v1  ;;  %v8510_v27 = vld [vmem:[%s10024_s26 + $0x20] sm:$0xff]  }
 0x679   : > { %7817 = vmatpush3.bf16.msra.mxu1 %v8481_v26  ;;  %7832 = vmatprep.mubr.msk.bf16.mxu1 %vm8810_vm0, %v8809_v1  ;;  %v8509_v26 = vld [vmem:[%s10024_s26 + $0x70] sm:$0xff]  }
 0x67a   : > { %7818 = vmatprep.subr.bf16.mxu1 %v8809_v1 }
 0x67b   : > { %7841 = vmatpush3.bf16.msra.mxu0 %v8495_v40 }
 0x67c   : > { %7842 = vmatprep.subr.bf16.mxu0 %v8809_v1 }
 0x67d   : > { %7819 = vmatpush3.bf16.msra.mxu1 %v8482_v28  ;;  %v8511_v28 = vld [vmem:[%s10024_s26 + $0x68] sm:$0xff]  }
 0x67e   : > { %7820 = vmatprep.subr.bf16.mxu1 %v8809_v1 }
 0x67f   : > { %7843 = vmatpush3.bf16.msra.mxu0 %v8497_v43 }
 0x680   : > { %7844 = vmatprep.subr.bf16.mxu0 %v8809_v1 }
 0x681   : > { %7821 = vmatpush3.bf16.msra.mxu1 %v8483_v11  ;;  %v8512_v11 = vld [vmem:[%s10024_s26 + $0x18] sm:$0xff]  }
 0x682   : > { %7822 = vmatprep.subr.bf16.mxu1 %v8809_v1 }
 0x683   : > { %7845 = vmatpush3.bf16.msra.mxu0 %v8499_v45 }
 0x684   : > { %7846 = vmatprep.subr.bf16.mxu0 %v8809_v1 }
 0x685   : > { %7823 = vmatpush3.bf16.msra.mxu1 %v8484_v29  ;;  %v8513_v29 = vld [vmem:[%s10024_s26 + $0x60] sm:$0xff]  }
 0x686   : > { %7824 = vmatprep.subr.bf16.mxu1 %v8809_v1 }
 0x687   : > { %7847 = vmatpush3.bf16.msra.mxu0 %v8501_v47 }
 0x688   : > { %7848 = vmatprep.subr.bf16.mxu0 %v8809_v1 }
 0x689   : > { %7825 = vmatpush3.bf16.msra.mxu1 %v8485_v30  ;;  %v8514_v30 = vld [vmem:[%s10024_s26 + $0x10] sm:$0xff]  }
 0x68a   : > { %7826 = vmatprep.subr.bf16.mxu1 %v8809_v1 }
 0x68b   : > { %7849 = vmatpush3.bf16.msra.mxu0 %v8503_v49 }
 0x68c   : > { %7850 = vmatprep.subr.bf16.mxu0 %v8809_v1 }
 0x68d   : > { %7827 = vmatpush3.bf16.msra.mxu1 %v8486_v31  ;;  %v8515_v31 = vld [vmem:[%s10024_s26 + $0x58] sm:$0xff]  }
 0x68e   : > { %7828 = vmatprep.subr.bf16.mxu1 %v8809_v1 }
 0x68f   : > { %7851 = vmatpush3.bf16.msra.mxu0 %v8505_v63 }
 0x690   : > { %7876 = vmatprep.subr.bf16.mxu0 %v8809_v1 }
 0x691   : > { %7829 = vmatpush3.bf16.msra.mxu1 %v8487_v32  ;;  %v8516_v32 = vld [vmem:[%s10024_s26 + $0x8] sm:$0xff]  }
 0x692   : > { %7830 = vmatprep.subr.bf16.mxu1 %v8809_v1 }
 0x695   : > { %7831 = vmatpush3.bf16.msra.mxu1 %v8488_v33  ;;  %v8517_v33 = vld [vmem:[%s10024_s26 + $0x50] sm:$0xff]  }
 0x696   : > { %7856 = vmatprep.subr.bf16.mxu1 %v8809_v1 }
 0x698   : > { %7833 = vmatmul.mubr.bf16.vlgmr.msra.gmra.mxu1 %v3041_v34  ;;  %v8518_v34 = vld [vmem:[%s10024_s26] sm:$0xff]  }
 0x699   : > { %7872 = vmatprep.mubr.msk.bf16.mxu1 %vm8810_vm0, %v8809_v1  ;;  %7857 = vmatpush3.bf16.msra.mxu1 %v8489_v35 }
 0x69a   : > { %7858 = vmatprep.subr.bf16.mxu1 %v8809_v1 }
 0x69d   : > { %7859 = vmatpush3.bf16.msra.mxu1 %v8490_v37 }
 0x69e   : > { %7860 = vmatprep.subr.bf16.mxu1 %v8809_v1 }
 0x6a1   : > { %7861 = vmatpush3.bf16.msra.mxu1 %v8492_v39 }
 0x6a2   : > { %7862 = vmatprep.subr.bf16.mxu1 %v8809_v1 }
 0x6a5   : > { %7863 = vmatpush3.bf16.msra.mxu1 %v8494_v41 }
 0x6a6   : > { %7864 = vmatprep.subr.bf16.mxu1 %v8809_v1 }
 0x6a9   : > { %7865 = vmatpush3.bf16.msra.mxu1 %v8496_v42  ;;  %v3586_v42 = vmul.u32 2, %v9249_v18 }
 0x6aa   : > { %7866 = vmatprep.subr.bf16.mxu1 %v8809_v1 }
 0x6ab   : > { %v3593_v43 = vadd.s32 1, %v3586_v42  ;;  %vm3587_vm1 = vcmp.eq.s32.totalorder %v9247_v16, %v3586_v42 }
 0x6ad   : > { %7867 = vmatpush3.bf16.msra.mxu1 %v8498_v44  ;;  %vm3594_vm13 = vcmp.eq.s32.totalorder %v9247_v16, %v3593_v43 }
 0x6ae   : > { %7868 = vmatprep.subr.bf16.mxu1 %v8809_v1  ;;  %v6865_v44 = vsel %vm3594_vm13, 1.0, %v8809_v1 }
 0x6b1   : > { %7869 = vmatpush3.bf16.msra.mxu1 %v8500_v46 }
 0x6b2   : > { %7870 = vmatprep.subr.bf16.mxu1 %v8809_v1 }
 0x6b5   : > { %7871 = vmatpush3.bf16.msra.mxu1 %v8502_v48 }
 0x6b6   : > { %7896 = vmatprep.subr.bf16.mxu1 %v8809_v1 }
 0x732   : > { %v3034_v6 = vpop.f32.mrf.mxu0 }
 0x734   : > { %v7814_v51 = vpop.f32.mrf.mxu0 }
 0x736   : > { %v3037_v52 = vpop.f32.mrf.mxu0 }
 0x738   : > { %v2946_v53 = vpop.f32.mrf.mxu1  ;;  %v7815_v54 = vpop.f32.mrf.mxu0 }
 0x739   : > { %v3035_v60 = vadd.f32 %v3034_v6, %v2946_v53  ;;  %v3585_v53 = vadd.s32 8, %v9247_v16 }
 0x73a   : > { %v7794_v57 = vpop.f32.mrf.mxu1 }
 0x73b   : > { %vm3595_vm15 = vcmp.eq.s32.totalorder %v3585_v53, %v3593_v43  ;;  %vm3588_vm2 = vcmp.eq.s32.totalorder %v3585_v53, %v3586_v42 }
 0x73c   : > { %v2949_v58 = vpop.f32.mrf.mxu1 }
 0x73e   : > { %v7795_v59 = vpop.f32.mrf.mxu1 }
 0x758   : > { %v3125_v61 = vpop.f32.mrf.mxu1 }
 0x759   : > { %v3131_v0 = vadd.f32 %v3125_v61, %v3035_v60  ;;  %v6866_v61 = vsel %vm3595_vm15, 1.0, %v8809_v1 }
 0x75a   : > { %v7834_v2 = vpop.f32.mrf.mxu1 }
 0x75b   : > { %v3139_v3 = vadd.f32 %v6830_v62, %v3131_v0  ;;  %v6863_v0 = vsel %vm3587_vm1, 1.0, %v8809_v1 }
 0x75c   : > { %v3128_v5 = vpop.f32.mrf.mxu1 }
 0x75d   : > { %v3140_v7 = vadd.f32 %v3139_v3, %v9291_v55  ;;  %v6864_v5 = vsel %vm3588_vm2, 1.0, %v8809_v1 }
 0x75e   : > { %v7835_v8 = vpop.f32.mrf.mxu1 }
 0x75f   : > { %v3141_v9 = vpack.c.bf16 %v3140_v7, %v3140_v7  ;;  %v8521_v7 = vld [vmem:[%s10025_s28 + $0x38] sm:$0xff]   ;;  %v8522_v8 = vld [vmem:[%s10025_s28 + $0x30] sm:$0xff]  }
 0x761   : > { %v3143_v10 = vshrl.u32 %v3141_v9, 16  ;;  %v3146_v13 = vshll.u32 %v3141_v9, 16  ;;  %v3153_v35 = vsel %vm3151_vm12, %v3141_v9, 0 }
 0x762   : > { %v3404_v37 = vshll.u32 %v3153_v35, 16  ;;  %v3402_v40 = vshrl.u32 %v3153_v35, 16 }
 0x763   : > { %v3145_v12 = vrot.slane %v3143_v10, 7  ;;  %v8524_v10 = vld [vmem:[%s10025_s28 + $0x28] sm:$0xff]  }
 0x764   : > { %v3406_v39 = vrot.slane %v3404_v37, 1 }
 0x765   : > { %v3148_v14 = vor.u32 %v3146_v13, %v3145_v12  ;;  %v8525_v12 = vld [vmem:[%s10025_s28 + $0x70] sm:$0xff]   ;;  %v8526_v13 = vld [vmem:[%s10025_s28 + $0x20] sm:$0xff]  }
 0x766   : > { %v3407_v41 = vor.u32 %v3406_v39, %v3402_v40 }
 0x767   : > { %v3150_v19 = vsel %vm9006_vm3, 0, %v3148_v14  ;;  %v8527_v14 = vld [vmem:[%s10025_s28 + $0x68] sm:$0xff]  }
 0x768   : > { %v3221_v20 = vshll.u32 %v3150_v19, 16  ;;  %7873 = vmatmul.mubr.bf16.vlgmr.msra.gmra.mxu1 %v3150_v19  ;;  %v3219_v55 = vshrl.u32 %v3150_v19, 16  ;;  %v8529_v19 = vld [vmem:[%s10025_s28 + $0x60] sm:$0xff]  }
 0x769   : > { %7897 = vmatpush3.bf16.msra.mxu1 %v8504_v17  ;;  %7912 = vmatprep.mubr.msk.bf16.mxu1 %vm8810_vm0, %v8809_v1  ;;  %v8528_v17 = vld [vmem:[%s10025_s28 + $0x18] sm:$0xff]  }
 0x76a   : > { %v3223_v22 = vrot.slane %v3221_v20, 1  ;;  %7898 = vmatprep.subr.bf16.mxu1 %v8809_v1  ;;  %v8530_v20 = vld [vmem:[%s10025_s28 + $0x10] sm:$0xff]  }
 0x76c   : > { %v3224_v24 = vor.u32 %v3223_v22, %v3219_v55  ;;  %v8532_v55 = vld [vmem:[%s10025_s28 + $0x8] sm:$0xff]   ;;  %v8533_v22 = vld [vmem:[%s10025_s28 + $0x50] sm:$0xff]  }
 0x76d   : > { %7899 = vmatpush3.bf16.msra.mxu1 %v8506_v21  ;;  %v8531_v21 = vld [vmem:[%s10025_s28 + $0x58] sm:$0xff]  }
 0x76e   : > { %7853 = vmatmul.mubr.bf16.vlgmr.msra.gmra.mxu0 %v3224_v24  ;;  %7900 = vmatprep.subr.bf16.mxu1 %v8809_v1  ;;  %v8535_v24 = vld [vmem:[%s10025_s28 + $0x48] sm:$0xff]  }
 0x76f   : > { %7877 = vmatpush3.bf16.msra.mxu0 %v8507_v23  ;;  %7892 = vmatprep.mubr.msk.bf16.mxu0 %vm8810_vm0, %v8809_v1  ;;  %v8534_v23 = vld [vmem:[%s10025_s28] sm:$0xff]  }
 0x770   : > { %7878 = vmatprep.subr.bf16.mxu0 %v8809_v1 }
 0x771   : > { %7901 = vmatpush3.bf16.msra.mxu1 %v8508_v25  ;;  %v8537_v25 = vld [vmem:[%s10025_s28 + $0x40] sm:$0xff]  }
 0x772   : > { %7902 = vmatprep.subr.bf16.mxu1 %v8809_v1 }
 0x773   : > { %7879 = vmatpush3.bf16.msra.mxu0 %v8509_v26 }
 0x774   : > { %7880 = vmatprep.subr.bf16.mxu0 %v8809_v1 }
 0x775   : > { %7903 = vmatpush3.bf16.msra.mxu1 %v8510_v27 }
 0x776   : > { %7904 = vmatprep.subr.bf16.mxu1 %v8809_v1 }
 0x777   : > { %7881 = vmatpush3.bf16.msra.mxu0 %v8511_v28 }
 0x778   : > { %7882 = vmatprep.subr.bf16.mxu0 %v8809_v1 }
 0x779   : > { %7905 = vmatpush3.bf16.msra.mxu1 %v8512_v11  ;;  %v6871_v11 = vld [vmem:[%s10026_s1] ss:$0 sm:$0xff]  ;;  %s10034_s1 = sld [smem:[#allocation14_spill]] }
 0x77a   : > { %7906 = vmatprep.subr.bf16.mxu1 %v8809_v1 }
 0x77b   : > { %7883 = vmatpush3.bf16.msra.mxu0 %v8513_v29 }
 0x77c   : > { %7884 = vmatprep.subr.bf16.mxu0 %v8809_v1 }
 0x77d   : > { %7907 = vmatpush3.bf16.msra.mxu1 %v8514_v30 }
 0x77e   : > { %7908 = vmatprep.subr.bf16.mxu1 %v8809_v1 }
 0x77f   : > { %7885 = vmatpush3.bf16.msra.mxu0 %v8515_v31 }
 0x780   : > { %7886 = vmatprep.subr.bf16.mxu0 %v8809_v1 }
 0x781   : > { %7909 = vmatpush3.bf16.msra.mxu1 %v8516_v32 }
 0x782   : > { %7910 = vmatprep.subr.bf16.mxu1 %v8809_v1 }
 0x783   : > { %7887 = vmatpush3.bf16.msra.mxu0 %v8517_v33 }
 0x784   : > { %7888 = vmatprep.subr.bf16.mxu0 %v8809_v1 }
 0x785   : > { %7911 = vmatpush3.bf16.msra.mxu1 %v8518_v34 }
 0x786   : > { %7926 = vmatprep.subr.bf16.mxu1 %v8809_v1 }
 0x787   : > { %7889 = vmatpush3.bf16.msra.mxu0 %v8519_v36 }
 0x788   : > { %7913 = vmatmul.mubr.bf16.vlgmr.msra.gmra.mxu1 %v3141_v9  ;;  %7890 = vmatprep.subr.bf16.mxu0 %v8809_v1  ;;  %v8523_v9 = vld [vmem:[%s10025_s28 + $0x78] sm:$0xff]  }
 0x789   : > { %7942 = vmatprep.mubr.msk.bf16.mxu1 %vm8810_vm0, %v8809_v1  ;;  %7927 = vmatpush3.bf16.msra.mxu1 %v8523_v9 }
 0x78a   : > { %7928 = vmatprep.subr.bf16.mxu1 %v8809_v1 }
 0x78b   : > { %7891 = vmatpush3.bf16.msra.mxu0 %v8520_v38 }
 0x78d   : > { %7929 = vmatpush3.bf16.msra.mxu1 %v8525_v12  ;;  %v8542_v12 = vld [vmem:[%s10027_s2 + $0x60] sm:$0xff]  }
 0x78e   : > { %7893 = vmatmul.mubr.bf16.vlgmr.msra.gmra.mxu0 %v3407_v41  ;;  %7930 = vmatprep.subr.bf16.mxu1 %v8809_v1 }
 0x78f   : > { %7918 = vmatprep.mubr.msk.f32.mxu0 %vm3600_vm14, %v6865_v44 }
 0x791   : > { %7931 = vmatpush3.bf16.msra.mxu1 %v8527_v14  ;;  %v8544_v14 = vld [vmem:[%s10027_s2 + $0x58] sm:$0xff]  }
 0x792   : > { %7932 = vmatprep.subr.bf16.mxu1 %v8809_v1 }
 0x795   : > { %7933 = vmatpush3.bf16.msra.mxu1 %v8529_v19  ;;  %v8546_v19 = vld [vmem:[%s10027_s2 + $0x50] sm:$0xff]  }
 0x796   : > { %7934 = vmatprep.subr.bf16.mxu1 %v8809_v1 }
 0x799   : > { %7935 = vmatpush3.bf16.msra.mxu1 %v8531_v21  ;;  %v8548_v21 = vld [vmem:[%s10027_s2 + $0x48] sm:$0xff]  }
 0x79a   : > { %7936 = vmatprep.subr.bf16.mxu1 %v8809_v1 }
 0x79d   : > { %7937 = vmatpush3.bf16.msra.mxu1 %v8533_v22  ;;  %v8550_v22 = vld [vmem:[%s10027_s2 + $0x40] sm:$0xff]  }
 0x79e   : > { %7938 = vmatprep.subr.bf16.mxu1 %v8809_v1 }
 0x7a1   : > { %7939 = vmatpush3.bf16.msra.mxu1 %v8535_v24  ;;  %v8552_v24 = vld [vmem:[%s10027_s2 + $0xb8] sm:$0xff]  }
 0x7a2   : > { %7940 = vmatprep.subr.bf16.mxu1 %v8809_v1 }
 0x7a5   : > { %7941 = vmatpush3.bf16.msra.mxu1 %v8537_v25  ;;  %v8553_v25 = vld [vmem:[%s10025_s28 + $0x80] sm:$0xff]  }
 0x7a6   : > { %7966 = vmatprep.subr.bf16.mxu1 %v8809_v1 }
 0x828   : > { %v3396_v45 = vpop.f32.mrf.mxu1 }
 0x82a   : > { %v7874_v46 = vpop.f32.mrf.mxu1 }
 0x82c   : > { %v3399_v47 = vpop.f32.mrf.mxu1 }
 0x82e   : > { %v3308_v48 = vpop.f32.mrf.mxu0  ;;  %v7875_v49 = vpop.f32.mrf.mxu1 }
 0x82f   : > { %v3397_v62 = vadd.f32 %v3396_v45, %v3308_v48 }
 0x830   : > { %v7854_v63 = vpop.f32.mrf.mxu0 }
 0x832   : > { %v3311_v6 = vpop.f32.mrf.mxu0 }
 0x834   : > { %v7855_v51 = vpop.f32.mrf.mxu0 }
 0x848   : > { %v3579_v52 = vpop.f32.mrf.mxu1 }
 0x84a   : > { %v7914_v18 = vpop.f32.mrf.mxu1 }
 0x84c   : > { %v3582_v54 = vpop.f32.mrf.mxu1 }
 0x84e   : > { %v3491_v57 = vpop.f32.mrf.mxu0  ;;  %v7915_v58 = vpop.f32.mrf.mxu1 }
 0x84f   : > { %v3580_v59 = vadd.f32 %v3579_v52, %v3491_v57  ;;  %v8536_v57 = vld [vmem:[%s10027_s2 + $0x78] sm:$0xff]  }
 0x850   : > { %v7894_v60 = vpop.f32.mrf.mxu0 }
 0x851   : > { %7916 = vmatprep.subr.mxu0 %v3580_v59 }
 0x852   : > { %v3494_v2 = vpop.f32.mrf.mxu0  ;;  %7917 = vmatpush3.msra.mxu0 %v3580_v59 }
 0x853   : > { %7919 = vmatmul.mubr.msk.f32.vlgmr.msra.gmra.mxu0 %vm3600_vm14, %v6866_v61  ;;  %7921 = vmatprep.subr.mxu0 %v3397_v62 }
 0x854   : > { %v7895_v3 = vpop.f32.mrf.mxu0  ;;  %7922 = vmatpush3.msra.mxu0 %v3397_v62  ;;  %7923 = vmatprep.mubr.msk.f32.mxu0 %vm3600_vm14, %v6863_v0  ;;  %v8538_v62 = vld [vmem:[%s10027_s2 + $0x70] sm:$0xff]  }
 0x855   : > { %7946 = vmatprep.subr.bf16.mxu0 %v8809_v1 }
 0x857   : > { %7924 = vmatmul.mubr.msk.f32.vlgmr.msra.gmra.mxu0 %vm3600_vm14, %v6864_v5 }
 0x858   : > { %7962 = vmatprep.mubr.msk.bf16.mxu0 %vm8810_vm0, %v8809_v1  ;;  %7947 = vmatpush3.bf16.msra.mxu0 %v8521_v7  ;;  %v8539_v7 = vld [vmem:[%s10025_s28 + $0xb8] sm:$0xff]  }
 0x859   : > { %7948 = vmatprep.subr.bf16.mxu0 %v8809_v1 }
 0x85c   : > { %7949 = vmatpush3.bf16.msra.mxu0 %v8522_v8  ;;  %v8540_v8 = vld [vmem:[%s10027_s2 + $0x68] sm:$0xff]  }
 0x85d   : > { %7950 = vmatprep.subr.bf16.mxu0 %v8809_v1 }
 0x860   : > { %7951 = vmatpush3.bf16.msra.mxu0 %v8524_v10  ;;  %v8541_v10 = vld [vmem:[%s10025_s28 + $0xb0] sm:$0xff]  }
 0x861   : > { %7952 = vmatprep.subr.bf16.mxu0 %v8809_v1 }
 0x864   : > { %7953 = vmatpush3.bf16.msra.mxu0 %v8526_v13  ;;  %v8543_v13 = vld [vmem:[%s10025_s28 + $0xa8] sm:$0xff]  }
 0x865   : > { %7954 = vmatprep.subr.bf16.mxu0 %v8809_v1 }
 0x868   : > { %7955 = vmatpush3.bf16.msra.mxu0 %v8528_v17  ;;  %v8545_v17 = vld [vmem:[%s10025_s28 + $0xa0] sm:$0xff]  }
 0x869   : > { %7956 = vmatprep.subr.bf16.mxu0 %v8809_v1 }
 0x86c   : > { %7957 = vmatpush3.bf16.msra.mxu0 %v8530_v20  ;;  %v8547_v20 = vld [vmem:[%s10025_s28 + $0x98] sm:$0xff]  }
 0x86d   : > { %7958 = vmatprep.subr.bf16.mxu0 %v8809_v1 }
 0x870   : > { %7959 = vmatpush3.bf16.msra.mxu0 %v8532_v55  ;;  %v8549_v55 = vld [vmem:[%s10025_s28 + $0x90] sm:$0xff]  }
 0x871   : > { %7960 = vmatprep.subr.bf16.mxu0 %v8809_v1 }
 0x874   : > { %7961 = vmatpush3.bf16.msra.mxu0 %v8534_v23  ;;  %v8551_v23 = vld [vmem:[%s10025_s28 + $0x88] sm:$0xff]  }
 0x875   : > { %7986 = vmatprep.subr.bf16.mxu0 %v8809_v1 }
 0x913   : > { %v7920_v26 = vpop.f32.mrf.mxu0 }
 0x915   : > { %v3673_v27 = vpop.f32.mrf.mxu0 }
 0x917   : > { %v7925_v28 = vpop.f32.mrf.mxu0 }
 0x918   : > { %v3760_v29 = vadd.f32 %v7925_v28, %v7920_v26  ;;  %v8554_v26 = vld [vmem:[%s10027_s2 + $0xb0] sm:$0xff]  }
 0x919   : > { %v3754_v30 = vpop.f32.mrf.mxu0 }
 0x91a   : > { %v3771_v31 = vadd.f32 %v6871_v11, %v3760_v29  ;;  %v3755_v32 = vadd.f32 %v3754_v30, %v3673_v27  ;;  %v8557_v30 = vld [vmem:[%s10027_s2 + $0x30] sm:$0xff]  }
 0x91c   : > { %v3773_v33 = vmul.f32 %v3771_v31, %v3771_v31  ;;  %v3770_v34 = vadd.f32 %v6871_v11, %v3755_v32  ;;  %v8555_v11 = vld [vmem:[%s10027_s2 + $0x38] sm:$0xff]   ;;  %v8559_v32 = vld [vmem:[%s10027_s2 + $0x28] sm:$0xff]  }
 0x91e   : > { %v3775_v35 = vmul.f32 %v3773_v33, %v3771_v31  ;;  %v3772_v36 = vmul.f32 %v3770_v34, %v3770_v34  ;;  %v8560_v33 = vld [vmem:[%s10027_s2 + $0x98] sm:$0xff]  }
 0x920   : > { %v3777_v37 = vmul.f32 0.044715, %v3775_v35  ;;  %v3774_v38 = vmul.f32 %v3772_v36, %v3770_v34  ;;  %v8562_v35 = vld [vmem:[%s10027_s2 + $0x90] sm:$0xff]   ;;  %v8563_v36 = vld [vmem:[%s10027_s2 + $0x18] sm:$0xff]  }
 0x922   : > { %v3779_v39 = vadd.f32 %v3777_v37, %v3771_v31  ;;  %v3776_v40 = vmul.f32 0.044715, %v3774_v38  ;;  %v8564_v37 = vld [vmem:[%s10027_s2 + $0x88] sm:$0xff]   ;;  %v8565_v38 = vld [vmem:[%s10027_s2 + $0x10] sm:$0xff]  }
 0x924   : > { %v3781_v41 = vmul.f32 0.7978846, %v3779_v39  ;;  %v3778_v42 = vadd.f32 %v3776_v40, %v3770_v34  ;;  %v8566_v39 = vld [vmem:[%s10027_s2 + $0x80] sm:$0xff]   ;;  %v8567_v40 = vld [vmem:[%s10027_s2 + $0x8] sm:$0xff]  }
 0x926   : > { %8743 = vtanh.f32 %v3781_v41  ;;  %v3780_v43 = vmul.f32 0.7978846, %v3778_v42  ;;  %v8568_v41 = vld [vmem:[%s10027_s2] sm:$0xff]   ;;  %v8569_v42 = vld [vmem:[%s10028_s7 + $0x38] sm:$0xff]  }
 0x928   : > { %8745 = vtanh.f32 %v3780_v43  ;;  %v8571_v43 = vld [vmem:[%s10028_s7 + $0x78] sm:$0xff]  }
 0x933   : > { %v8744_v44 = vpop.eup %8743 }
 0x934   : > { %v3785_v45 = vadd.f32 1.0, %v8744_v44  ;;  %v8572_v44 = vld [vmem:[%s10028_s7 + $0x28] sm:$0xff]  }
 0x935   : > { %v8746_v46 = vpop.eup %8745 }
 0x936   : > { %v3787_v47 = vmul.f32 0.5, %v3785_v45  ;;  %v3784_v48 = vadd.f32 1.0, %v8746_v46  ;;  %v8573_v45 = vld [vmem:[%s10028_s7 + $0x70] sm:$0xff]   ;;  %v8575_v46 = vld [vmem:[%s10028_s7 + $0x68] sm:$0xff]  }
 0x938   : > { %v3786_v49 = vmul.f32 0.5, %v3784_v48  ;;  %v3789_v63 = vmul.f32 %v3787_v47, %v3771_v31  ;;  %v8558_v31 = vld [vmem:[%s10027_s2 + $0xa0] sm:$0xff]   ;;  %v8576_v47 = vld [vmem:[%s10028_s7 + $0x18] sm:$0xff]  }
 0x939   : > { %v8577_v48 = vld [vmem:[%s10028_s7 + $0x60] sm:$0xff]  }
 0x93a   : > { %v3788_v6 = vmul.f32 %v3786_v49, %v3770_v34  ;;  %v8561_v34 = vld [vmem:[%s10027_s2 + $0x20] sm:$0xff]   ;;  %v8578_v49 = vld [vmem:[%s10028_s7 + $0x10] sm:$0xff]  }
 0x93c   : > { %v3838_v51 = vpack.c.bf16 %v3789_v63, %v3788_v6  ;;  %v8579_v63 = vld [vmem:[%s10028_s7 + $0x58] sm:$0xff]   ;;  %v8580_v6 = vld [vmem:[%s10028_s7 + $0x8] sm:$0xff]  }
 0x93e   : > { %v3840_v52 = vshrl.u32 %v3838_v51, 16  ;;  %v3843_v18 = vshll.u32 %v3838_v51, 16  ;;  %v8581_v51 = vld [vmem:[%s10028_s7 + $0x50] sm:$0xff]  }
 0x940   : > { %v3842_v53 = vrot.slane %v3840_v52, 7  ;;  %v8582_v52 = vld [vmem:[%s10028_s7] sm:$0xff]  }
 0x942   : > { %v3845_v54 = vor.u32 %v3843_v18, %v3842_v53  ;;  %v9513_v58 = vsel %vm9006_vm3, %v3842_v53, 0  ;;  %v8583_v53 = vld [vmem:[%s10028_s7 + $0x48] sm:$0xff]   ;;  %v8584_v18 = vld [vmem:[%s10028_s7 + $0x40] sm:$0xff]  }
 0x943   : > { %v3858_v61 = vshll.u32 %v9513_v58, 16  ;;  %v4044_v28 = vrot.slane %v9513_v58, 1 }
 0x944   : > { %v9517_v59 = vsel %vm9006_vm3, 0, %v3845_v54 }
 0x945   : > { %v3853_v60 = vshll.u32 %v9517_v59, 16  ;;  %7963 = vmatmul.mubr.bf16.vlgmr.msra.gmra.mxu0 %v9517_v59  ;;  %v3851_v0 = vshrl.u32 %v9517_v59, 16  ;;  %v3860_v5 = vrot.slane %v3858_v61, 1  ;;  %v4043_v27 = vrot.slane %v9517_v59, 1 }
 0x946   : > { %7987 = vmatpush3.bf16.msra.mxu0 %v8536_v57  ;;  %8002 = vmatprep.mubr.msk.bf16.mxu0 %vm8810_vm0, %v8809_v1 }
 0x947   : > { %v3855_v2 = vrot.slane %v3853_v60, 1  ;;  %7988 = vmatprep.subr.bf16.mxu0 %v8809_v1  ;;  %v4045_v29 = vsel %vm1152_vm6, %v4043_v27, %v4044_v28 }
 0x949   : > { %v3856_v3 = vor.u32 %v3855_v2, %v3851_v0 }
 0x94a   : > { %7989 = vmatpush3.bf16.msra.mxu0 %v8538_v62 }
 0x94b   : > { %v3861_v9 = vsel %vm1001_vm4, %v3856_v3, %v3860_v5  ;;  %7990 = vmatprep.subr.bf16.mxu0 %v8809_v1 }
 0x94c   : > { %7943 = vmatmul.mubr.bf16.vlgmr.msra.gmra.mxu1 %v3861_v9 }
 0x94d   : > { %7967 = vmatpush3.bf16.msra.mxu1 %v8539_v7  ;;  %7982 = vmatprep.mubr.msk.bf16.mxu1 %vm8810_vm0, %v8809_v1 }
 0x94e   : > { %7991 = vmatpush3.bf16.msra.mxu0 %v8540_v8  ;;  %7968 = vmatprep.subr.bf16.mxu1 %v8809_v1 }
 0x94f   : > { %7992 = vmatprep.subr.bf16.mxu0 %v8809_v1 }
 0x951   : > { %7969 = vmatpush3.bf16.msra.mxu1 %v8541_v10 }
 0x952   : > { %7993 = vmatpush3.bf16.msra.mxu0 %v8542_v12  ;;  %7970 = vmatprep.subr.bf16.mxu1 %v8809_v1 }
 0x953   : > { %7994 = vmatprep.subr.bf16.mxu0 %v8809_v1 }
 0x955   : > { %7971 = vmatpush3.bf16.msra.mxu1 %v8543_v13 }
 0x956   : > { %7995 = vmatpush3.bf16.msra.mxu0 %v8544_v14  ;;  %7972 = vmatprep.subr.bf16.mxu1 %v8809_v1 }
 0x957   : > { %7996 = vmatprep.subr.bf16.mxu0 %v8809_v1 }
 0x959   : > { %7973 = vmatpush3.bf16.msra.mxu1 %v8545_v17 }
 0x95a   : > { %7997 = vmatpush3.bf16.msra.mxu0 %v8546_v19  ;;  %7974 = vmatprep.subr.bf16.mxu1 %v8809_v1 }
 0x95b   : > { %7998 = vmatprep.subr.bf16.mxu0 %v8809_v1 }
 0x95d   : > { %7975 = vmatpush3.bf16.msra.mxu1 %v8547_v20 }
 0x95e   : > { %7999 = vmatpush3.bf16.msra.mxu0 %v8548_v21  ;;  %7976 = vmatprep.subr.bf16.mxu1 %v8809_v1 }
 0x95f   : > { %8000 = vmatprep.subr.bf16.mxu0 %v8809_v1 }
 0x961   : > { %7977 = vmatpush3.bf16.msra.mxu1 %v8549_v55 }
 0x962   : > { %8001 = vmatpush3.bf16.msra.mxu0 %v8550_v22  ;;  %7978 = vmatprep.subr.bf16.mxu1 %v8809_v1 }
 0x963   : > { %8026 = vmatprep.subr.bf16.mxu0 %v8809_v1 }
 0x965   : > { %7979 = vmatpush3.bf16.msra.mxu1 %v8551_v23  ;;  %8003 = vmatmul.mubr.bf16.vlgmr.msra.gmra.mxu0 %v9220_v56  ;;  %v8556_v56 = vld [vmem:[%s10027_s2 + $0xa8] sm:$0xff]  }
 0x966   : > { %8027 = vmatpush3.bf16.msra.mxu0 %v8552_v24  ;;  %7980 = vmatprep.subr.bf16.mxu1 %v8809_v1 }
 0x967   : > { %8028 = vmatprep.subr.bf16.mxu0 %v8809_v1  ;;  %8042 = vmatprep.mubr.msk.bf16.mxu0 %vm8810_vm0, %v8809_v1 }
 0x969   : > { %7981 = vmatpush3.bf16.msra.mxu1 %v8553_v25 }
 0x96a   : > { %8029 = vmatpush3.bf16.msra.mxu0 %v8554_v26  ;;  %8006 = vmatprep.subr.bf16.mxu1 %v8809_v1  ;;  %v6920_v26 = vld [vmem:[%s10029_s10] ss:$0 sm:$0xff]  ;;  %s10035_s10 = sld [smem:[#allocation12_spill]] }
 0x96b   : > { %8030 = vmatprep.subr.bf16.mxu0 %v8809_v1 }
 0x96c   : > { %7983 = vmatmul.mubr.bf16.vlgmr.msra.gmra.mxu1 %v4045_v29 }
 0x96d   : > { %8007 = vmatpush3.bf16.msra.mxu1 %v8555_v11  ;;  %8022 = vmatprep.mubr.msk.bf16.mxu1 %vm8810_vm0, %v8809_v1 }
 0x96e   : > { %8031 = vmatpush3.bf16.msra.mxu0 %v8556_v56  ;;  %8008 = vmatprep.subr.bf16.mxu1 %v8809_v1 }
 0x96f   : > { %8032 = vmatprep.subr.bf16.mxu0 %v8809_v1 }
 0x971   : > { %8009 = vmatpush3.bf16.msra.mxu1 %v8557_v30 }
 0x972   : > { %8033 = vmatpush3.bf16.msra.mxu0 %v8558_v31  ;;  %8010 = vmatprep.subr.bf16.mxu1 %v8809_v1 }
 0x973   : > { %8034 = vmatprep.subr.bf16.mxu0 %v8809_v1 }
 0x975   : > { %8011 = vmatpush3.bf16.msra.mxu1 %v8559_v32 }
 0x976   : > { %8035 = vmatpush3.bf16.msra.mxu0 %v8560_v33  ;;  %8012 = vmatprep.subr.bf16.mxu1 %v8809_v1 }
 0x977   : > { %8036 = vmatprep.subr.bf16.mxu0 %v8809_v1 }
 0x979   : > { %8013 = vmatpush3.bf16.msra.mxu1 %v8561_v34 }
 0x97a   : > { %8037 = vmatpush3.bf16.msra.mxu0 %v8562_v35  ;;  %8014 = vmatprep.subr.bf16.mxu1 %v8809_v1 }
 0x97b   : > { %8038 = vmatprep.subr.bf16.mxu0 %v8809_v1 }
 0x97d   : > { %8015 = vmatpush3.bf16.msra.mxu1 %v8563_v36 }
 0x97e   : > { %8039 = vmatpush3.bf16.msra.mxu0 %v8564_v37  ;;  %8016 = vmatprep.subr.bf16.mxu1 %v8809_v1 }
 0x97f   : > { %8040 = vmatprep.subr.bf16.mxu0 %v8809_v1 }
 0x981   : > { %8017 = vmatpush3.bf16.msra.mxu1 %v8565_v38 }
 0x982   : > { %8041 = vmatpush3.bf16.msra.mxu0 %v8566_v39  ;;  %8018 = vmatprep.subr.bf16.mxu1 %v8809_v1 }
 0x983   : > { %8066 = vmatprep.subr.bf16.mxu0 %v8809_v1 }
 0x985   : > { %8019 = vmatpush3.bf16.msra.mxu1 %v8567_v40  ;;  %8043 = vmatmul.mubr.bf16.vlgmr.msra.gmra.mxu0 %v9242_v4  ;;  %v8570_v4 = vld [vmem:[%s10028_s7 + $0x30] sm:$0xff]  }
 0x986   : > { %8020 = vmatprep.subr.bf16.mxu1 %v8809_v1  ;;  %8082 = vmatprep.mubr.msk.bf16.mxu0 %vm8810_vm0, %v8809_v1 }
 0x987   : > { %8067 = vmatpush3.bf16.msra.mxu0 %v8569_v42 }
 0x988   : > { %8068 = vmatprep.subr.bf16.mxu0 %v8809_v1 }
 0x989   : > { %8021 = vmatpush3.bf16.msra.mxu1 %v8568_v41 }
 0x98a   : > { %8046 = vmatprep.subr.bf16.mxu1 %v8809_v1 }
 0x98b   : > { %8069 = vmatpush3.bf16.msra.mxu0 %v8570_v4 }
 0x98c   : > { %8023 = vmatmul.mubr.bf16.vlgmr.msra.gmra.mxu1 %v9211_v50  ;;  %8070 = vmatprep.subr.bf16.mxu0 %v8809_v1  ;;  %v8574_v50 = vld [vmem:[%s10028_s7 + $0x20] sm:$0xff]  }
 0x98d   : > { %8062 = vmatprep.mubr.msk.bf16.mxu1 %vm8810_vm0, %v8809_v1  ;;  %8047 = vmatpush3.bf16.msra.mxu1 %v8571_v43 }
 0x98e   : > { %8048 = vmatprep.subr.bf16.mxu1 %v8809_v1 }
 0x98f   : > { %8071 = vmatpush3.bf16.msra.mxu0 %v8572_v44 }
 0x990   : > { %8072 = vmatprep.subr.bf16.mxu0 %v8809_v1 }
 0x991   : > { %8049 = vmatpush3.bf16.msra.mxu1 %v8573_v45 }
 0x992   : > { %8050 = vmatprep.subr.bf16.mxu1 %v8809_v1 }
 0x993   : > { %8073 = vmatpush3.bf16.msra.mxu0 %v8574_v50 }
 0x994   : > { %8074 = vmatprep.subr.bf16.mxu0 %v8809_v1 }
 0x995   : > { %8051 = vmatpush3.bf16.msra.mxu1 %v8575_v46 }
 0x996   : > { %8052 = vmatprep.subr.bf16.mxu1 %v8809_v1 }
 0x997   : > { %8075 = vmatpush3.bf16.msra.mxu0 %v8576_v47 }
 0x998   : > { %8076 = vmatprep.subr.bf16.mxu0 %v8809_v1 }
 0x999   : > { %8053 = vmatpush3.bf16.msra.mxu1 %v8577_v48 }
 0x99a   : > { %8054 = vmatprep.subr.bf16.mxu1 %v8809_v1 }
 0x99b   : > { %8077 = vmatpush3.bf16.msra.mxu0 %v8578_v49 }
 0x99c   : > { %8078 = vmatprep.subr.bf16.mxu0 %v8809_v1 }
 0x99d   : > { %8055 = vmatpush3.bf16.msra.mxu1 %v8579_v63 }
 0x99e   : > { %8056 = vmatprep.subr.bf16.mxu1 %v8809_v1 }
 0x99f   : > { %8079 = vmatpush3.bf16.msra.mxu0 %v8580_v6 }
 0x9a0   : > { %8080 = vmatprep.subr.bf16.mxu0 %v8809_v1 }
 0x9a1   : > { %8057 = vmatpush3.bf16.msra.mxu1 %v8581_v51 }
 0x9a2   : > { %8058 = vmatprep.subr.bf16.mxu1 %v8809_v1 }
 0x9a3   : > { %8081 = vmatpush3.bf16.msra.mxu0 %v8582_v52 }
 0x9a4   : > { %8106 = vmatprep.subr.bf16.mxu0 %v8809_v1 }
 0x9a5   : > { %8059 = vmatpush3.bf16.msra.mxu1 %v8583_v53 }
 0x9a6   : > { %8060 = vmatprep.subr.bf16.mxu1 %v8809_v1 }
 0x9a9   : > { %8061 = vmatpush3.bf16.msra.mxu1 %v8584_v18 }
 0x9aa   : > { %8086 = vmatprep.subr.bf16.mxu1 %v8809_v1 }
 0xa05   : > { %v4034_v54 = vpop.f32.mrf.mxu0 }
 0xa07   : > { %v7964_v57 = vpop.f32.mrf.mxu0 }
 0xa09   : > { %v4037_v58 = vpop.f32.mrf.mxu0 }
 0xa0b   : > { %v7965_v59 = vpop.f32.mrf.mxu0 }
 0xa0c   : > { %v3945_v60 = vpop.f32.mrf.mxu1 }
 0xa0d   : > { %v4035_v61 = vadd.f32 %v4034_v54, %v3945_v60 }
 0xa0e   : > { %v7944_v62 = vpop.f32.mrf.mxu1 }
 0xa10   : > { %v3948_v0 = vpop.f32.mrf.mxu1 }
 0xa11   : > { %v4038_v2 = vadd.f32 %v4037_v58, %v3948_v0  ;;  %v8585_v0 = vld [vmem:[%s10028_s7 + $0xb8] sm:$0xff]  }
 0xa12   : > { %v7945_v3 = vpop.f32.mrf.mxu1 }
 0xa13   : > { %v8587_v3 = vld [vmem:[%s10028_s7 + $0xa8] sm:$0xff]  }
 0xa25   : > { %v4268_v5 = vpop.f32.mrf.mxu0 }
 0xa27   : > { %v8004_v7 = vpop.f32.mrf.mxu0 }
 0xa28   : > { %v8589_v7 = vld [vmem:[%s10028_s7 + $0x98] sm:$0xff]  }
 0xa29   : > { %v4271_v8 = vpop.f32.mrf.mxu0 }
 0xa2b   : > { %v8005_v9 = vpop.f32.mrf.mxu0 }
 0xa2c   : > { %v4129_v10 = vpop.f32.mrf.mxu1  ;;  %v8591_v9 = vld [vmem:[%s10028_s7 + $0x88] sm:$0xff]  }
 0xa2d   : > { %v4136_v24 = vadd.f32 %v4129_v10, %v4035_v61  ;;  %v8592_v10 = vld [vmem:[%s10028_s7 + $0x80] sm:$0xff]  }
 0xa2e   : > { %v7984_v12 = vpop.f32.mrf.mxu1 }
 0xa30   : > { %v4132_v13 = vpop.f32.mrf.mxu1 }
 0xa31   : > { %v4137_v29 = vadd.f32 %v4132_v13, %v4038_v2 }
 0xa32   : > { %v7985_v14 = vpop.f32.mrf.mxu1 }
 0xa45   : > { %v4446_v17 = vpop.f32.mrf.mxu0 }
 0xa47   : > { %v8044_v19 = vpop.f32.mrf.mxu0 }
 0xa48   : > { %v8595_v19 = vld [vmem:[%s10030_s11 + $0x78] sm:$0xff]  }
 0xa49   : > { %v4449_v20 = vpop.f32.mrf.mxu0 }
 0xa4b   : > { %v8045_v21 = vpop.f32.mrf.mxu0 }
 0xa4c   : > { %v4357_v55 = vpop.f32.mrf.mxu1  ;;  %v8597_v21 = vld [vmem:[%s10030_s11 + $0x70] sm:$0xff]  }
 0xa4d   : > { %v4358_v22 = vadd.f32 %v4357_v55, %v4268_v5  ;;  %v8588_v5 = vld [vmem:[%s10028_s7 + $0xa0] sm:$0xff]   ;;  %v8596_v55 = vld [vmem:[%s10030_s11 + $0x28] sm:$0xff]  }
 0xa4e   : > { %v8024_v23 = vpop.f32.mrf.mxu1 }
 0xa4f   : > { %v4453_v25 = vadd.f32 %v4446_v17, %v4358_v22  ;;  %v8593_v17 = vld [vmem:[%s10030_s11 + $0x38] sm:$0xff]   ;;  %v8598_v22 = vld [vmem:[%s10030_s11 + $0x20] sm:$0xff]   ;;  %v8599_v23 = vld [vmem:[%s10030_s11 + $0x68] sm:$0xff]  }
 0xa50   : > { %v4360_v27 = vpop.f32.mrf.mxu1 }
 0xa51   : > { %v4455_v28 = vadd.f32 %v4453_v25, %v4136_v24  ;;  %v4361_v11 = vadd.f32 %v4360_v27, %v4271_v8  ;;  %v8590_v8 = vld [vmem:[%s10028_s7 + $0x90] sm:$0xff]   ;;  %v8600_v24 = vld [vmem:[%s10030_s11 + $0x18] sm:$0xff]   ;;  %v8601_v25 = vld [vmem:[%s10030_s11 + $0x60] sm:$0xff]  }
 0xa52   : > { %v8025_v56 = vpop.f32.mrf.mxu1  ;;  %v8603_v27 = vld [vmem:[%s10030_s11 + $0x58] sm:$0xff]  }
 0xa53   : > { %v4464_v30 = vadd.f32 %v6920_v26, %v4455_v28  ;;  %v4454_v31 = vadd.f32 %v4449_v20, %v4361_v11  ;;  %v8594_v20 = vld [vmem:[%s10030_s11 + $0x30] sm:$0xff]   ;;  %v8604_v28 = vld [vmem:[%s10030_s11 + $0x8] sm:$0xff]   ;;  %v8606_v56 = vld [vmem:[%s10030_s11] sm:$0xff]  }
 0xa54   : > { %v8605_v11 = vld [vmem:[%s10030_s11 + $0x50] sm:$0xff]  }
 0xa55   : > { %v4466_v32 = vmul.f32 %v4464_v30, %v4464_v30  ;;  %v4456_v33 = vadd.f32 %v4454_v31, %v4137_v29  ;;  %v8607_v29 = vld [vmem:[%s10030_s11 + $0x48] sm:$0xff]  }
 0xa57   : > { %v4468_v34 = vmul.f32 %v4466_v32, %v4464_v30  ;;  %v4465_v35 = vadd.f32 %v6920_v26, %v4456_v33  ;;  %v8602_v26 = vld [vmem:[%s10030_s11 + $0x10] sm:$0xff]  }
 0xa59   : > { %v4470_v36 = vmul.f32 0.044715, %v4468_v34  ;;  %v4467_v37 = vmul.f32 %v4465_v35, %v4465_v35 }
 0xa5b   : > { %v4472_v38 = vadd.f32 %v4470_v36, %v4464_v30  ;;  %v4469_v39 = vmul.f32 %v4467_v37, %v4465_v35 }
 0xa5d   : > { %v4474_v40 = vmul.f32 0.7978846, %v4472_v38  ;;  %v4471_v41 = vmul.f32 0.044715, %v4469_v39 }
 0xa5f   : > { %8747 = vtanh.f32 %v4474_v40  ;;  %v4473_v42 = vadd.f32 %v4471_v41, %v4465_v35 }
 0xa61   : > { %v4475_v4 = vmul.f32 0.7978846, %v4473_v42 }
 0xa63   : > { %8749 = vtanh.f32 %v4475_v4 }
 0xa6c   : > { %v8748_v43 = vpop.eup %8747 }
 0xa6d   : > { %v4478_v44 = vadd.f32 1.0, %v8748_v43  ;;  %v6945_v43 = vld [vmem:[%s10031_s18] ss:$0 sm:$0xff]  ;;  %s10036_s18 = sld [smem:[#allocation13_spill]] }
 0xa6f   : > { %v4480_v46 = vmul.f32 0.5, %v4478_v44 }
 0xa70   : > { %v8750_v45 = vpop.eup %8749 }
 0xa71   : > { %v4479_v50 = vadd.f32 1.0, %v8750_v45  ;;  %v4482_v48 = vmul.f32 %v4480_v46, %v4464_v30  ;;  %v8609_v30 = vld [vmem:[%s10030_s11 + $0x40] sm:$0xff]  }
 0xa73   : > { %v4481_v47 = vmul.f32 0.5, %v4479_v50 }
 0xa75   : > { %v4483_v49 = vmul.f32 %v4481_v47, %v4465_v35 }
 0xa77   : > { %v4532_v63 = vpack.c.bf16 %v4483_v49, %v4482_v48 }
 0xa79   : > { %v4534_v6 = vshrl.u32 %v4532_v63, 16  ;;  %v4537_v52 = vshll.u32 %v4532_v63, 16 }
 0xa7b   : > { %v4536_v51 = vrot.slane %v4534_v6, 7 }
 0xa7d   : > { %v4539_v53 = vor.u32 %v4537_v52, %v4536_v51  ;;  %v4543_v18 = vsel %vm9006_vm3, %v4536_v51, 0 }
 0xa7e   : > { %v4552_v58 = vshll.u32 %v4543_v18, 16  ;;  %v4738_v13 = vrot.slane %v4543_v18, 1 }
 0xa7f   : > { %v4542_v54 = vsel %vm9006_vm3, 0, %v4539_v53  ;;  %vm4963_vm3 = vcmask 1041408   ;;  %v8608_v53 = vld [vmem:[%s10030_s11 + $0xf8] sm:$0xff]  }
 0xa80   : > { %v4547_v57 = vshll.u32 %v4542_v54, 16  ;;  %8083 = vmatmul.mubr.bf16.vlgmr.msra.gmra.mxu0 %v4542_v54  ;;  %v4545_v59 = vshrl.u32 %v4542_v54, 16  ;;  %v4554_v62 = vrot.slane %v4552_v58, 1  ;;  %v4737_v12 = vrot.slane %v4542_v54, 1  ;;  %vm4965_vm7 = vmand %vm4963_vm3, %vm4964_vm5 }
 0xa81   : > { %8122 = vmatprep.mubr.msk.bf16.mxu0 %vm8810_vm0, %v8809_v1  ;;  %8107 = vmatpush3.bf16.msra.mxu0 %v8595_v19  ;;  %v8616_v19 = vld [vmem:[%s10030_s11 + $0xd8] sm:$0xff]  }
 0xa82   : > { %v4549_v60 = vrot.slane %v4547_v57, 1  ;;  %v4739_v14 = vsel %vm1152_vm6, %v4737_v12, %v4738_v13  ;;  %8108 = vmatprep.subr.bf16.mxu0 %v8809_v1  ;;  %v8613_v12 = vld [vmem:[%s10030_s11 + $0xb0] sm:$0xff]  }
 0xa84   : > { %v4550_v61 = vor.u32 %v4549_v60, %v4545_v59  ;;  %v8610_v59 = vld [vmem:[%s10030_s11 + $0xf0] sm:$0xff]  }
 0xa85   : > { %8109 = vmatpush3.bf16.msra.mxu0 %v8597_v21  ;;  %v8618_v21 = vld [vmem:[%s10030_s11 + $0xd0] sm:$0xff]  }
 0xa86   : > { %v4555_v2 = vsel %vm1001_vm4, %v4550_v61, %v4554_v62  ;;  %8110 = vmatprep.subr.bf16.mxu0 %v8809_v1 }
 0xa87   : > { %8063 = vmatmul.mubr.bf16.vlgmr.msra.gmra.mxu1 %v4555_v2 }
 0xa88   : > { %8087 = vmatpush3.bf16.msra.mxu1 %v8585_v0  ;;  %8102 = vmatprep.mubr.msk.bf16.mxu1 %vm8810_vm0, %v8809_v1 }
 0xa89   : > { %8088 = vmatprep.subr.bf16.mxu1 %v8809_v1  ;;  %8111 = vmatpush3.bf16.msra.mxu0 %v8599_v23  ;;  %v8620_v23 = vld [vmem:[%s10030_s11 + $0xc8] sm:$0xff]  }
 0xa8a   : > { %8112 = vmatprep.subr.bf16.mxu0 %v8809_v1 }
 0xa8c   : > { %8089 = vmatpush3.bf16.msra.mxu1 %v8586_v15 }
 0xa8d   : > { %8090 = vmatprep.subr.bf16.mxu1 %v8809_v1  ;;  %8113 = vmatpush3.bf16.msra.mxu0 %v8601_v25 }
 0xa8e   : > { %8114 = vmatprep.subr.bf16.mxu0 %v8809_v1 }
 0xa90   : > { %8091 = vmatpush3.bf16.msra.mxu1 %v8587_v3  ;;  %v8611_v3 = vld [vmem:[%s10030_s11 + $0xb8] sm:$0xff]  }
 0xa91   : > { %8092 = vmatprep.subr.bf16.mxu1 %v8809_v1  ;;  %8115 = vmatpush3.bf16.msra.mxu0 %v8603_v27 }
 0xa92   : > { %8116 = vmatprep.subr.bf16.mxu0 %v8809_v1 }
 0xa94   : > { %8093 = vmatpush3.bf16.msra.mxu1 %v8588_v5  ;;  %v8612_v5 = vld [vmem:[%s10030_s11 + $0xe8] sm:$0xff]  }
 0xa95   : > { %8094 = vmatprep.subr.bf16.mxu1 %v8809_v1  ;;  %8117 = vmatpush3.bf16.msra.mxu0 %v8605_v11  ;;  %v8622_v11 = vld [vmem:[%s10030_s11 + $0xc0] sm:$0xff]  }
 0xa96   : > { %8118 = vmatprep.subr.bf16.mxu0 %v8809_v1 }
 0xa98   : > { %8095 = vmatpush3.bf16.msra.mxu1 %v8589_v7 }
 0xa99   : > { %8096 = vmatprep.subr.bf16.mxu1 %v8809_v1  ;;  %8119 = vmatpush3.bf16.msra.mxu0 %v8607_v29 }
 0xa9a   : > { %8120 = vmatprep.subr.bf16.mxu0 %v8809_v1 }
 0xa9c   : > { %8097 = vmatpush3.bf16.msra.mxu1 %v8590_v8 }
 0xa9d   : > { %8098 = vmatprep.subr.bf16.mxu1 %v8809_v1  ;;  %8121 = vmatpush3.bf16.msra.mxu0 %v8609_v30  ;;  %v8623_v30 = vld [vmem:[%s10030_s11 + $0x88] sm:$0xff]  }
 0xa9e   : > { %8146 = vmatprep.subr.bf16.mxu0 %v8809_v1 }
 0xaa0   : > { %8099 = vmatpush3.bf16.msra.mxu1 %v8591_v9 }
 0xaa1   : > { %8100 = vmatprep.subr.bf16.mxu1 %v8809_v1 }
 0xaa4   : > { %8101 = vmatpush3.bf16.msra.mxu1 %v8592_v10 }
 0xaa5   : > { %8126 = vmatprep.subr.bf16.mxu1 %v8809_v1 }
 0xaa7   : > { %8103 = vmatmul.mubr.bf16.vlgmr.msra.gmra.mxu1 %v4739_v14  ;;  %v8614_v14 = vld [vmem:[%s10030_s11 + $0xe0] sm:$0xff]  }
 0xaa8   : > { %8142 = vmatprep.mubr.msk.bf16.mxu1 %vm8810_vm0, %v8809_v1  ;;  %8127 = vmatpush3.bf16.msra.mxu1 %v8593_v17  ;;  %v8615_v17 = vld [vmem:[%s10030_s11 + $0xa8] sm:$0xff]  }
 0xaa9   : > { %8128 = vmatprep.subr.bf16.mxu1 %v8809_v1 }
 0xaac   : > { %8129 = vmatpush3.bf16.msra.mxu1 %v8594_v20  ;;  %v8617_v20 = vld [vmem:[%s10030_s11 + $0xa0] sm:$0xff]  }
 0xaad   : > { %8130 = vmatprep.subr.bf16.mxu1 %v8809_v1 }
 0xab0   : > { %8131 = vmatpush3.bf16.msra.mxu1 %v8596_v55 }
 0xab1   : > { %8132 = vmatprep.subr.bf16.mxu1 %v8809_v1 }
 0xab4   : > { %8133 = vmatpush3.bf16.msra.mxu1 %v8598_v22  ;;  %v8619_v22 = vld [vmem:[%s10030_s11 + $0x98] sm:$0xff]  }
 0xab5   : > { %8134 = vmatprep.subr.bf16.mxu1 %v8809_v1 }
 0xab8   : > { %8135 = vmatpush3.bf16.msra.mxu1 %v8600_v24 }
 0xab9   : > { %8136 = vmatprep.subr.bf16.mxu1 %v8809_v1 }
 0xabc   : > { %8137 = vmatpush3.bf16.msra.mxu1 %v8602_v26 }
 0xabd   : > { %8138 = vmatprep.subr.bf16.mxu1 %v8809_v1 }
 0xac0   : > { %8139 = vmatpush3.bf16.msra.mxu1 %v8604_v28  ;;  %v8621_v28 = vld [vmem:[%s10030_s11 + $0x90] sm:$0xff]  }
 0xac1   : > { %8140 = vmatprep.subr.bf16.mxu1 %v8809_v1 }
 0xac4   : > { %8141 = vmatpush3.bf16.msra.mxu1 %v8606_v56 }
 0xac5   : > { %8166 = vmatprep.subr.bf16.mxu1 %v8809_v1 }
 0xb40   : > { %v4728_v31 = vpop.f32.mrf.mxu0 }
 0xb42   : > { %v8084_v32 = vpop.f32.mrf.mxu0 }
 0xb44   : > { %v4731_v33 = vpop.f32.mrf.mxu0 }
 0xb46   : > { %v8085_v34 = vpop.f32.mrf.mxu0 }
 0xb47   : > { %v4639_v35 = vpop.f32.mrf.mxu1  ;;  %v8626_v34 = vld [vmem:[%s10030_s11 + $0x170] sm:$0xff]  }
 0xb48   : > { %v4729_v40 = vadd.f32 %v4728_v31, %v4639_v35  ;;  %v8624_v31 = vld [vmem:[%s10030_s11 + $0x178] sm:$0xff]  }
 0xb49   : > { %v8064_v36 = vpop.f32.mrf.mxu1 }
 0xb4b   : > { %v4642_v37 = vpop.f32.mrf.mxu1 }
 0xb4c   : > { %v4732_v42 = vadd.f32 %v4731_v33, %v4642_v37  ;;  %v8625_v33 = vld [vmem:[%s10030_s11 + $0x80] sm:$0xff]   ;;  %v8627_v37 = vld [vmem:[%s10030_s11 + $0x138] sm:$0xff]  }
 0xb4d   : > { %v8065_v38 = vpop.f32.mrf.mxu1 }
 0xb4e   : > { %v8628_v38 = vld [vmem:[%s10030_s11 + $0x168] sm:$0xff]  }
 0xb67   : > { %v4823_v39 = vpop.f32.mrf.mxu1 }
 0xb68   : > { %v4830_v4 = vadd.f32 %v4823_v39, %v4729_v40  ;;  %v8629_v40 = vld [vmem:[%s10030_s11 + $0x130] sm:$0xff]  }
 0xb69   : > { %v8104_v41 = vpop.f32.mrf.mxu1 }
 0xb6a   : > { %v9699_v46 = vadd.f32 %v6945_v43, %v4830_v4  ;;  %v8630_v41 = vld [vmem:[%s10030_s11 + $0x160] sm:$0xff]   ;;  %v8632_v4 = vld [vmem:[%s10030_s11 + $0x158] sm:$0xff]  }
 0xb6b   : > { %v4826_v44 = vpop.f32.mrf.mxu1 }
 0xb6c   : > { %v4831_v45 = vadd.f32 %v4826_v44, %v4732_v42  ;;  %v8631_v42 = vld [vmem:[%s10030_s11 + $0x128] sm:$0xff]   ;;  %v8634_v44 = vld [vmem:[%s10030_s11 + $0x150] sm:$0xff]  }
 0xb6d   : > { %v8105_v50 = vpop.f32.mrf.mxu1 }
 0xb6e   : > { %v9701_v47 = vadd.f32 %v6945_v43, %v4831_v45  ;;  %v8633_v43 = vld [vmem:[%s10030_s11 + $0x120] sm:$0xff]   ;;  %v8635_v45 = vld [vmem:[%s10030_s11 + $0x118] sm:$0xff]   ;;  %v8636_v50 = vld [vmem:[%s10030_s11 + $0x148] sm:$0xff]  }
 0xb70   : > { %v4953_v48 = vpack.c.bf16 %v9701_v47, %v9699_v46 }
 0xb72   : > { %v4955_v49 = vshrl.u32 %v4953_v48, 16  ;;  %v4958_v63 = vshll.u32 %v4953_v48, 16 }
 0xb74   : > { %v4957_v6 = vrot.slane %v4955_v49, 6  ;;  %v4960_v51 = vrot.slane %v4958_v63, 7 }
 0xb76   : > { %v4961_v52 = vor.u32 %v4960_v51, %v4957_v6  ;;  %v8637_v51 = vld [vmem:[%s10030_s11 + $0x110] sm:$0xff]  }
 0xb78   : > { %v9706_v18 = vsel %vm4965_vm7, 0, %v4961_v52  ;;  %v9708_v54 = vsel %vm4965_vm7, %v4961_v52, 0  ;;  %v8638_v52 = vld [vmem:[%s10030_s11 + $0x140] sm:$0xff]  }
 0xb79   : > { %8143 = vmatmul.mubr.bf16.vlgmr.msra.gmra.mxu1 %v9706_v18  ;;  %v9712_v57 = vshll.u32 %v9706_v18, 16  ;;  %v9715_v58 = vshll.u32 %v9708_v54, 16  ;;  %v5359_v60 = vrot.slane %v9706_v18, 2  ;;  %v5360_v61 = vrot.slane %v9708_v54, 2 }
 0xb7a   : > { %8167 = vmatpush3.bf16.msra.mxu1 %v8608_v53  ;;  %8182 = vmatprep.mubr.msk.bf16.mxu1 %vm8810_vm0, %v8809_v1  ;;  %v9724_v62 = vshrl.u32 %v9706_v18, 16  ;;  %v5554_v8 = vrot.slane %v9706_v18, 3  ;;  %v5555_v10 = vrot.slane %v9708_v54, 3  ;;  %v5260_v55 = vshrl.u32 %v9708_v54, 16 }
 0xb7b   : > { %8168 = vmatprep.subr.bf16.mxu1 %v8809_v1  ;;  %v4973_v0 = vrot.slane %v9712_v57, 1  ;;  %v4978_v15 = vrot.slane %v9715_v58, 1  ;;  %v9731_v7 = vsel %vm5358_vm8, %v5359_v60, %v5360_v61  ;;  %v5258_v25 = vrot.slane %v9712_v57, 2  ;;  %v8642_v60 = vld [vmem:[%s10030_s11 + $0x1b0] sm:$0xff]   ;;  %v8643_v61 = vld [vmem:[%s10030_s11 + $0x1a8] sm:$0xff]  }
 0xb7c   : > { %v9741_v13 = vsel %vm2500_vm9, %v5554_v8, %v5555_v10  ;;  %v5257_v24 = vrot.slane %v9724_v62, 1  ;;  %v5262_v26 = vrot.slane %v5260_v55, 1  ;;  %v5263_v27 = vrot.slane %v9715_v58, 2  ;;  %v5671_v8 = vld [vmem:[%s10032_s22 + $0x68] sm:$0xff]  ;;  %v5668_v10 = vld [vmem:[%s10032_s22 + $0x50] sm:$0xff] }
 0xb7d   : > { %v4974_v2 = vor.u32 %v4973_v0, %v9724_v62  ;;  %v5161_v35 = vrot.slane %v9706_v18, 1  ;;  %v5162_v36 = vrot.slane %v9708_v54, 1  ;;  %v5455_v48 = vrot.slane %v9724_v62, 2  ;;  %v8644_v62 = vld [vmem:[%s10030_s11 + $0x1a0] sm:$0xff]   ;;  %v8645_v0 = vld [vmem:[%s10030_s11 + $0x198] sm:$0xff]  }
 0xb7e   : > { %8169 = vmatpush3.bf16.msra.mxu1 %v8610_v59  ;;  %v5259_v56 = vor.u32 %v5258_v25, %v5257_v24  ;;  %v5264_v29 = vor.u32 %v5263_v27, %v5262_v26  ;;  %v5456_v49 = vrot.slane %v9712_v57, 3  ;;  %v5458_v63 = vrot.slane %v5260_v55, 2  ;;  %v8639_v57 = vld [vmem:[%s10030_s11 + $0x108] sm:$0xff]   ;;  %v8641_v59 = vld [vmem:[%s10030_s11 + $0x1b8] sm:$0xff]   ;;  %v5660_v55 = vld [vmem:[%s10032_s22 + $0x10] sm:$0xff] }
 0xb7f   : > { %v4979_v9 = vsel %vm1001_vm4, %v4974_v2, %v4978_v15  ;;  %8170 = vmatprep.subr.bf16.mxu1 %v8809_v1  ;;  %vm5256_vm4 = vsmask.f32 6400  ;;  %v5163_v39 = vsel %vm1152_vm6, %v5161_v35, %v5162_v36  ;;  %v5459_v6 = vrot.slane %v9715_v58, 3  ;;  %v8640_v58 = vld [vmem:[%s10030_s11 + $0x100] sm:$0xff]   ;;  %v8646_v2 = vld [vmem:[%s10030_s11 + $0x190] sm:$0xff]   ;;  %v8647_v15 = vld [vmem:[%s10030_s11 + $0x188] sm:$0xff]  }
 0xb80   : > { %8123 = vmatmul.mubr.bf16.vlgmr.msra.gmra.mxu0 %v4979_v9  ;;  %v5265_v32 = vsel %vm5256_vm4, %v5259_v56, %v5264_v29  ;;  %v5457_v53 = vor.u32 %v5456_v49, %v5455_v48  ;;  %vm5454_vm6 = vsmask.f32 5376  ;;  %v5670_v9 = vld [vmem:[%s10032_s22 + $0x60] sm:$0xff] }
 0xb81   : > { %8147 = vmatpush3.bf16.msra.mxu0 %v8611_v3  ;;  %8162 = vmatprep.mubr.msk.bf16.mxu0 %vm8810_vm0, %v8809_v1  ;;  %v5460_v18 = vor.u32 %v5459_v6, %v5458_v63  ;;  %v8648_v3 = vld [vmem:[%s10030_s11 + $0x180] sm:$0xff]  }
 0xb82   : > { %8171 = vmatpush3.bf16.msra.mxu1 %v8612_v5  ;;  %8148 = vmatprep.subr.bf16.mxu0 %v8809_v1  ;;  %v5673_v5 = vld [vmem:[%s10032_s22 + $0x78] sm:$0xff] }
 0xb83   : > { %8172 = vmatprep.subr.bf16.mxu1 %v8809_v1  ;;  %v5461_v54 = vsel %vm5454_vm6, %v5457_v53, %v5460_v18 }
 0xb85   : > { %8149 = vmatpush3.bf16.msra.mxu0 %v8613_v12  ;;  %v5667_v12 = vld [vmem:[%s10032_s22 + $0x48] sm:$0xff] }
 0xb86   : > { %8173 = vmatpush3.bf16.msra.mxu1 %v8614_v14  ;;  %8150 = vmatprep.subr.bf16.mxu0 %v8809_v1  ;;  %v5665_v14 = vld [vmem:[%s10032_s22 + $0x38] sm:$0xff] }
 0xb87   : > { %8174 = vmatprep.subr.bf16.mxu1 %v8809_v1 }
 0xb89   : > { %8151 = vmatpush3.bf16.msra.mxu0 %v8615_v17  ;;  %v5664_v17 = vld [vmem:[%s10032_s22 + $0x30] sm:$0xff] }
 0xb8a   : > { %8175 = vmatpush3.bf16.msra.mxu1 %v8616_v19  ;;  %8152 = vmatprep.subr.bf16.mxu0 %v8809_v1  ;;  %v5663_v19 = vld [vmem:[%s10032_s22 + $0x28] sm:$0xff] }
 0xb8b   : > { %8176 = vmatprep.subr.bf16.mxu1 %v8809_v1 }
 0xb8d   : > { %8153 = vmatpush3.bf16.msra.mxu0 %v8617_v20  ;;  %v5662_v20 = vld [vmem:[%s10032_s22 + $0x20] sm:$0xff] }
 0xb8e   : > { %8177 = vmatpush3.bf16.msra.mxu1 %v8618_v21  ;;  %8154 = vmatprep.subr.bf16.mxu0 %v8809_v1  ;;  %v5661_v21 = vld [vmem:[%s10032_s22 + $0x18] sm:$0xff] }
 0xb8f   : > { %8178 = vmatprep.subr.bf16.mxu1 %v8809_v1 }
 0xb91   : > { %8155 = vmatpush3.bf16.msra.mxu0 %v8619_v22  ;;  %v5659_v22 = vld [vmem:[%s10032_s22 + $0x8] sm:$0xff] }
 0xb92   : > { %8179 = vmatpush3.bf16.msra.mxu1 %v8620_v23  ;;  %8156 = vmatprep.subr.bf16.mxu0 %v8809_v1  ;;  %v5658_v23 = vld [vmem:[%s10032_s22] sm:$0xff] }
 0xb93   : > { %8180 = vmatprep.subr.bf16.mxu1 %v8809_v1 }
 0xb95   : > { %8157 = vmatpush3.bf16.msra.mxu0 %v8621_v28 }
 0xb96   : > { %8181 = vmatpush3.bf16.msra.mxu1 %v8622_v11  ;;  %8158 = vmatprep.subr.bf16.mxu0 %v8809_v1 }
 0xb97   : > { %8206 = vmatprep.subr.bf16.mxu1 %v8809_v1 }
 0xb99   : > { %8159 = vmatpush3.bf16.msra.mxu0 %v8623_v30  ;;  %8183 = vmatmul.mubr.bf16.vlgmr.msra.gmra.mxu1 %v5265_v32 }
 0xb9a   : > { %8207 = vmatpush3.bf16.msra.mxu1 %v8624_v31  ;;  %8160 = vmatprep.subr.bf16.mxu0 %v8809_v1 }
 0xb9b   : > { %8208 = vmatprep.subr.bf16.mxu1 %v8809_v1  ;;  %8222 = vmatprep.mubr.msk.bf16.mxu1 %vm8810_vm0, %v8809_v1 }
 0xb9d   : > { %8161 = vmatpush3.bf16.msra.mxu0 %v8625_v33 }
 0xb9e   : > { %8209 = vmatpush3.bf16.msra.mxu1 %v8626_v34  ;;  %8186 = vmatprep.subr.bf16.mxu0 %v8809_v1 }
 0xb9f   : > { %8210 = vmatprep.subr.bf16.mxu1 %v8809_v1 }
 0xba0   : > { %8163 = vmatmul.mubr.bf16.vlgmr.msra.gmra.mxu0 %v5163_v39 }
 0xba1   : > { %8187 = vmatpush3.bf16.msra.mxu0 %v8627_v37  ;;  %8202 = vmatprep.mubr.msk.bf16.mxu0 %vm8810_vm0, %v8809_v1 }
 0xba2   : > { %8211 = vmatpush3.bf16.msra.mxu1 %v8628_v38  ;;  %8188 = vmatprep.subr.bf16.mxu0 %v8809_v1 }
 0xba3   : > { %8212 = vmatprep.subr.bf16.mxu1 %v8809_v1 }
 0xba5   : > { %8189 = vmatpush3.bf16.msra.mxu0 %v8629_v40 }
 0xba6   : > { %8213 = vmatpush3.bf16.msra.mxu1 %v8630_v41  ;;  %8190 = vmatprep.subr.bf16.mxu0 %v8809_v1 }
 0xba7   : > { %8214 = vmatprep.subr.bf16.mxu1 %v8809_v1 }
 0xba9   : > { %8191 = vmatpush3.bf16.msra.mxu0 %v8631_v42 }
 0xbaa   : > { %8215 = vmatpush3.bf16.msra.mxu1 %v8632_v4  ;;  %8192 = vmatprep.subr.bf16.mxu0 %v8809_v1 }
 0xbab   : > { %8216 = vmatprep.subr.bf16.mxu1 %v8809_v1 }
 0xbad   : > { %8193 = vmatpush3.bf16.msra.mxu0 %v8633_v43 }
 0xbae   : > { %8217 = vmatpush3.bf16.msra.mxu1 %v8634_v44  ;;  %8194 = vmatprep.subr.bf16.mxu0 %v8809_v1 }
 0xbaf   : > { %8218 = vmatprep.subr.bf16.mxu1 %v8809_v1 }
 0xbb1   : > { %8195 = vmatpush3.bf16.msra.mxu0 %v8635_v45 }
 0xbb2   : > { %8219 = vmatpush3.bf16.msra.mxu1 %v8636_v50  ;;  %8196 = vmatprep.subr.bf16.mxu0 %v8809_v1 }
 0xbb3   : > { %8220 = vmatprep.subr.bf16.mxu1 %v8809_v1 }
 0xbb5   : > { %8197 = vmatpush3.bf16.msra.mxu0 %v8637_v51 }
 0xbb6   : > { %8221 = vmatpush3.bf16.msra.mxu1 %v8638_v52  ;;  %8198 = vmatprep.subr.bf16.mxu0 %v8809_v1 }
 0xbb7   : > { %8246 = vmatprep.subr.mxu1 %v5673_v5 }
 0xbb9   : > { %8199 = vmatpush3.bf16.msra.mxu0 %v8639_v57  ;;  %8223 = vmatmul.mubr.bf16.vlgmr.msra.gmra.mxu1 %v5461_v54  ;;  %v7002_v57 = vld [vmem:[%s10033_s23] ss:$0 sm:$0xff]  ;;  %s958_s23 = scalar_lea.vmem %s8970_s12, %s7072_s0 }
 0xbba   : > { %8200 = vmatprep.subr.bf16.mxu0 %v8809_v1  ;;  %8247 = vmatpush3.msra.mxu1 %v5673_v5 }
 0xbbd   : > { %8201 = vmatpush3.bf16.msra.mxu0 %v8640_v58 }
 0xbbe   : > { %8226 = vmatprep.subr.bf16.mxu0 %v8809_v1 }
 0xbc0   : > { %8203 = vmatmul.mubr.bf16.vlgmr.msra.gmra.mxu0 %v9731_v7  ;;  %v5672_v7 = vld [vmem:[%s10032_s22 + $0x70] sm:$0xff] }
 0xbc1   : > { %8227 = vmatpush3.bf16.msra.mxu0 %v8641_v59  ;;  %8242 = vmatprep.mubr.msk.bf16.mxu0 %vm8810_vm0, %v8809_v1 }
 0xbc2   : > { %8228 = vmatprep.subr.bf16.mxu0 %v8809_v1  ;;  %8248 = vmatprep.subr.mxu1 %v5672_v7 }
 0xbc3   : > { %8249 = vmatpush3.msra.mxu1 %v5672_v7 }
 0xbc4   : > { %8250 = vmatprep.subr.mxu1 %v5671_v8 }
 0xbc5   : > { %8229 = vmatpush3.bf16.msra.mxu0 %v8642_v60  ;;  %8251 = vmatpush3.msra.mxu1 %v5671_v8 }
 0xbc6   : > { %8230 = vmatprep.subr.bf16.mxu0 %v8809_v1  ;;  %8252 = vmatprep.subr.mxu1 %v5670_v9 }
 0xbc7   : > { %8253 = vmatpush3.msra.mxu1 %v5670_v9 }
 0xbc9   : > { %8231 = vmatpush3.bf16.msra.mxu0 %v8643_v61 }
 0xbca   : > { %8232 = vmatprep.subr.bf16.mxu0 %v8809_v1 }
 0xbcd   : > { %8233 = vmatpush3.bf16.msra.mxu0 %v8644_v62 }
 0xbce   : > { %8234 = vmatprep.subr.bf16.mxu0 %v8809_v1 }
 0xbd1   : > { %8235 = vmatpush3.bf16.msra.mxu0 %v8645_v0 }
 0xbd2   : > { %8236 = vmatprep.subr.bf16.mxu0 %v8809_v1 }
 0xbd5   : > { %8237 = vmatpush3.bf16.msra.mxu0 %v8646_v2 }
 0xbd6   : > { %8238 = vmatprep.subr.bf16.mxu0 %v8809_v1 }
 0xbd9   : > { %8239 = vmatpush3.bf16.msra.mxu0 %v8647_v15  ;;  %v8649_v15 = vld [vmem:[%s10034_s1 + $0xe0] ss:$16 sps:$4 sm:$0xff]  }
 0xbda   : > { %8240 = vmatprep.subr.bf16.mxu0 %v8809_v1  ;;  %v5669_v1 = vld [vmem:[%s10032_s22 + $0x58] sm:$0xff] }
 0xbdb   : > { %8254 = vmatprep.subr.mxu1 %v5669_v1 }
 0xbdc   : > { %8255 = vmatpush3.msra.mxu1 %v5669_v1 }
 0xbdd   : > { %8241 = vmatpush3.bf16.msra.mxu0 %v8648_v3  ;;  %8256 = vmatprep.subr.mxu1 %v5668_v10  ;;  %v8651_v3 = vld [vmem:[%s10034_s1 + $0xe4] ss:$16 sps:$4 sm:$0xff]  }
 0xbde   : > { %8281 = vmatprep.subr.mxu0 %v5673_v5  ;;  %8257 = vmatpush3.msra.mxu1 %v5668_v10 }
 0xbdf   : > { %8258 = vmatprep.subr.mxu1 %v5667_v12 }
 0xbe0   : > { %8243 = vmatmul.mubr.bf16.vlgmr.msra.gmra.mxu0 %v9741_v13  ;;  %v5666_v13 = vld [vmem:[%s10032_s22 + $0x40] sm:$0xff]  ;;  %8259 = vmatpush3.msra.mxu1 %v5667_v12 }
 0xbe1   : > { %8282 = vmatpush3.msra.mxu0 %v5673_v5  ;;  %8260 = vmatprep.subr.mxu1 %v5666_v13  ;;  %v8654_v5 = vld [vmem:[%s10034_s1 + $0xec] ss:$16 sps:$4 sm:$0xff]  }
 0xbe2   : > { %8283 = vmatprep.subr.mxu0 %v5672_v7  ;;  %8261 = vmatpush3.msra.mxu1 %v5666_v13 }
 0xbe3   : > { %8284 = vmatpush3.msra.mxu0 %v5672_v7  ;;  %8262 = vmatprep.subr.mxu1 %v5665_v14  ;;  %v8657_v7 = vld [vmem:[%s10034_s1 + $0xc4] ss:$16 sps:$4 sm:$0xff]  }
 0xbe4   : > { %8285 = vmatprep.subr.mxu0 %v5671_v8  ;;  %8263 = vmatpush3.msra.mxu1 %v5665_v14 }
 0xbe5   : > { %8286 = vmatpush3.msra.mxu0 %v5671_v8  ;;  %8264 = vmatprep.subr.mxu1 %v5664_v17  ;;  %v8655_v8 = vld [vmem:[%s10034_s1 + $0xc0] ss:$16 sps:$4 sm:$0xff]  }
 0xbe6   : > { %8287 = vmatprep.subr.mxu0 %v5670_v9  ;;  %8265 = vmatpush3.msra.mxu1 %v5664_v17 }
 0xbe7   : > { %8288 = vmatpush3.msra.mxu0 %v5670_v9  ;;  %8266 = vmatprep.subr.mxu1 %v5663_v19 }
 0xbe8   : > { %8289 = vmatprep.subr.mxu0 %v5669_v1  ;;  %8267 = vmatpush3.msra.mxu1 %v5663_v19 }
 0xbe9   : > { %8290 = vmatpush3.msra.mxu0 %v5669_v1  ;;  %8268 = vmatprep.subr.mxu1 %v5662_v20 }
 0xbea   : > { %8291 = vmatprep.subr.mxu0 %v5668_v10  ;;  %8269 = vmatpush3.msra.mxu1 %v5662_v20 }
 0xbeb   : > { %8292 = vmatpush3.msra.mxu0 %v5668_v10  ;;  %8270 = vmatprep.subr.mxu1 %v5661_v21 }
 0xbec   : > { %8293 = vmatprep.subr.mxu0 %v5667_v12  ;;  %8271 = vmatpush3.msra.mxu1 %v5661_v21 }
 0xbed   : > { %8294 = vmatpush3.msra.mxu0 %v5667_v12  ;;  %8272 = vmatprep.subr.mxu1 %v5660_v55 }
 0xbee   : > { %8295 = vmatprep.subr.mxu0 %v5666_v13  ;;  %8273 = vmatpush3.msra.mxu1 %v5660_v55 }
 0xbef   : > { %8296 = vmatpush3.msra.mxu0 %v5666_v13  ;;  %8274 = vmatprep.subr.mxu1 %v5659_v22 }
 0xbf0   : > { %8297 = vmatprep.subr.mxu0 %v5665_v14  ;;  %8275 = vmatpush3.msra.mxu1 %v5659_v22 }
 0xbf1   : > { %8298 = vmatpush3.msra.mxu0 %v5665_v14  ;;  %8276 = vmatprep.subr.mxu1 %v5658_v23  ;;  %v8652_v14 = vld [vmem:[%s10034_s1 + $0xe8] ss:$16 sps:$4 sm:$0xff]  }
 0xbf2   : > { %8299 = vmatprep.subr.mxu0 %v5664_v17  ;;  %8277 = vmatpush3.msra.mxu1 %v5658_v23 }
 0xbf3   : > { %8300 = vmatpush3.msra.mxu0 %v5664_v17  ;;  %6065 = vmatprep.subr.bf16.mxu1 %v8651_v3  ;;  %v8705_v3 = vld [vmem:[%s8960_s27 + $0x68] sm:$0xff]  }
 0xbf4   : > { %8301 = vmatprep.subr.mxu0 %v5663_v19 }
 0xbf5   : > { %8302 = vmatpush3.msra.mxu0 %v5663_v19  ;;  %v8660_v19 = vld [vmem:[%s10034_s1 + $0xcc] ss:$16 sps:$4 sm:$0xff]  }
 0xbf6   : > { %8303 = vmatprep.subr.mxu0 %v5662_v20 }
 0xbf7   : > { %8304 = vmatpush3.msra.mxu0 %v5662_v20  ;;  %v8658_v20 = vld [vmem:[%s10034_s1 + $0xc8] ss:$16 sps:$4 sm:$0xff]  }
 0xbf8   : > { %8305 = vmatprep.subr.mxu0 %v5661_v21 }
 0xbf9   : > { %8306 = vmatpush3.msra.mxu0 %v5661_v21  ;;  %v8661_v21 = vld [vmem:[%s10034_s1 + $0xa0] ss:$16 sps:$4 sm:$0xff]  }
 0xbfa   : > { %8307 = vmatprep.subr.mxu0 %v5660_v55 }
 0xbfb   : > { %8308 = vmatpush3.msra.mxu0 %v5660_v55  ;;  %v8663_v55 = vld [vmem:[%s10034_s1 + $0xa4] ss:$16 sps:$4 sm:$0xff]  }
 0xbfc   : > { %8309 = vmatprep.subr.mxu0 %v5659_v22 }
 0xbfd   : > { %8310 = vmatpush3.msra.mxu0 %v5659_v22  ;;  %v8664_v22 = vld [vmem:[%s10034_s1 + $0xa8] ss:$16 sps:$4 sm:$0xff]  }
 0xbfe   : > { %8311 = vmatprep.subr.mxu0 %v5658_v23 }
 0xbff   : > { %8312 = vmatpush3.msra.mxu0 %v5658_v23  ;;  %v8666_v23 = vld [vmem:[%s10034_s1 + $0xac] ss:$16 sps:$4 sm:$0xff]  }
 0xc00   : > { %6108 = vmatprep.subr.bf16.mxu0 %v8654_v5  ;;  %v8706_v5 = vld [vmem:[%s8960_s27 + $0xe8] sm:$0xff]  }
 0xc39   : > { %v5152_v24 = vpop.f32.mrf.mxu1 }
 0xc3b   : > { %v8144_v25 = vpop.f32.mrf.mxu1 }
 0xc3c   : > { %v8672_v25 = vld [vmem:[%s10034_s1 + $0x8c] ss:$16 sps:$4 sm:$0xff]  }
 0xc3d   : > { %v5155_v26 = vpop.f32.mrf.mxu1 }
 0xc3f   : > { %v8145_v27 = vpop.f32.mrf.mxu1 }
 0xc40   : > { %v5063_v28 = vpop.f32.mrf.mxu0  ;;  %v8670_v27 = vld [vmem:[%s10034_s1 + $0x88] ss:$16 sps:$4 sm:$0xff]  }
 0xc41   : > { %v5153_v11 = vadd.f32 %v5152_v24, %v5063_v28  ;;  %v8669_v24 = vld [vmem:[%s10034_s1 + $0x84] ss:$16 sps:$4 sm:$0xff]  }
 0xc42   : > { %v8124_v56 = vpop.f32.mrf.mxu0  ;;  %v8675_v28 = vld [vmem:[%s10034_s1 + $0x64] ss:$16 sps:$4 sm:$0xff]  }
 0xc43   : > { %v8673_v56 = vld [vmem:[%s10034_s1 + $0x60] ss:$16 sps:$4 sm:$0xff]  }
 0xc44   : > { %v5066_v29 = vpop.f32.mrf.mxu0 }
 0xc45   : > { %v5156_v30 = vadd.f32 %v5155_v26, %v5066_v29  ;;  %v8667_v26 = vld [vmem:[%s10034_s1 + $0x80] ss:$16 sps:$4 sm:$0xff]   ;;  %v8676_v29 = vld [vmem:[%s10034_s1 + $0x68] ss:$16 sps:$4 sm:$0xff]  }
 0xc46   : > { %v8125_v31 = vpop.f32.mrf.mxu0 }
 0xc47   : > { %v8684_v31 = vld [vmem:[%s10034_s1 + $0x4c] ss:$16 sps:$4 sm:$0xff]  }
 0xc59   : > { %v5349_v32 = vpop.f32.mrf.mxu1 }
 0xc5b   : > { %v8184_v33 = vpop.f32.mrf.mxu1 }
 0xc5c   : > { %v8679_v33 = vld [vmem:[%s10034_s1 + $0x40] ss:$16 sps:$4 sm:$0xff]  }
 0xc5d   : > { %v5352_v34 = vpop.f32.mrf.mxu1 }
 0xc5f   : > { %v8185_v35 = vpop.f32.mrf.mxu1 }
 0xc60   : > { %v5247_v36 = vpop.f32.mrf.mxu0  ;;  %v8687_v35 = vld [vmem:[%s10034_s1 + $0x24] ss:$16 sps:$4 sm:$0xff]  }
 0xc61   : > { %v5254_v37 = vadd.f32 %v5247_v36, %v5153_v11  ;;  %v8678_v11 = vld [vmem:[%s10034_s1 + $0x6c] ss:$16 sps:$4 sm:$0xff]  }
 0xc62   : > { %v8164_v38 = vpop.f32.mrf.mxu0  ;;  %v8690_v36 = vld [vmem:[%s10034_s1 + $0x2c] ss:$16 sps:$4 sm:$0xff]  }
 0xc63   : > { %v5356_v39 = vadd.f32 %v5349_v32, %v5254_v37  ;;  %v8811_v32 = vmov 0   ;;  %v8685_v37 = vld [vmem:[%s10034_s1 + $0x20] ss:$16 sps:$4 sm:$0xff]   ;;  %v8688_v38 = vld [vmem:[%s10034_s1 + $0x28] ss:$16 sps:$4 sm:$0xff]  }
 0xc64   : > { %v5250_v40 = vpop.f32.mrf.mxu0 }
 0xc65   : > { %v5255_v41 = vadd.f32 %v5250_v40, %v5156_v30  ;;  %v8681_v30 = vld [vmem:[%s10034_s1 + $0x44] ss:$16 sps:$4 sm:$0xff]   ;;  %v8696_v40 = vld [vmem:[%s10034_s1 + $0xc] ss:$16 sps:$4 sm:$0xff]  }
 0xc66   : > { %v8165_v42 = vpop.f32.mrf.mxu0 }
 0xc67   : > { %v5357_v4 = vadd.f32 %v5352_v34, %v5255_v41  ;;  %v8682_v34 = vld [vmem:[%s10034_s1 + $0x48] ss:$16 sps:$4 sm:$0xff]   ;;  %v8691_v41 = vld [vmem:[%s10034_s1] ss:$16 sps:$4 sm:$0xff]  }
 0xc68   : > { %v8694_v42 = vld [vmem:[%s10034_s1 + $0x8] ss:$16 sps:$4 sm:$0xff]  }
 0xc79   : > { %v5545_v43 = vpop.f32.mrf.mxu1 }
 0xc7b   : > { %v8224_v44 = vpop.f32.mrf.mxu1 }
 0xc7d   : > { %v5548_v45 = vpop.f32.mrf.mxu1 }
 0xc7f   : > { %v8225_v50 = vpop.f32.mrf.mxu1 }
 0xc80   : > { %v5445_v48 = vpop.f32.mrf.mxu0 }
 0xc81   : > { %v5452_v51 = vadd.f32 %v5445_v48, %v5356_v39  ;;  %v8693_v39 = vld [vmem:[%s10034_s1 + $0x4] ss:$16 sps:$4 sm:$0xff]   ;;  %v7003_v48 = vld [vmem:[%s10035_s10] ss:$0 sm:$0xff] }
 0xc82   : > { %v8204_v49 = vpop.f32.mrf.mxu0 }
 0xc83   : > { %v5552_v53 = vadd.f32 %v5545_v43, %v5452_v51 }
 0xc84   : > { %v5448_v63 = vpop.f32.mrf.mxu0 }
 0xc85   : > { %v5453_v52 = vadd.f32 %v5448_v63, %v5357_v4 }
 0xc86   : > { %v8205_v6 = vpop.f32.mrf.mxu0 }
 0xc87   : > { %v5553_v60 = vadd.f32 %v5548_v45, %v5453_v52  ;;  %v7004_v52 = vld [vmem:[%s10036_s18] ss:$0 sm:$0xff] }
 0xca0   : > { %v5640_v18 = vpop.f32.mrf.mxu0 }
 0xca1   : > { %v5647_v54 = vadd.f32 %v5640_v18, %v5552_v53 }
 0xca2   : > { %v8244_v58 = vpop.f32.mrf.mxu0 }
 0xca3   : > { %v5656_v59 = vadd.f32 %v7002_v57, %v5647_v54  ;;  %v8697_v58 = vld [vmem:[%s8960_s27 + $0x78] sm:$0xff]  }
 0xca4   : > { %v5643_v61 = vpop.f32.mrf.mxu0 }
 0xca5   : > { %v5648_v62 = vadd.f32 %v5643_v61, %v5553_v60  ;;  %8278 = vmatprep.mubr.f32.mxu1 %v5656_v59  ;;  %v8699_v60 = vld [vmem:[%s8960_s27 + $0x38] sm:$0xff]  }
 0xca6   : > { %v8245_v0 = vpop.f32.mrf.mxu0  ;;  %v8700_v61 = vld [vmem:[%s8960_s27 + $0xb8] sm:$0xff]  }
 0xca7   : > { %v5657_v2 = vadd.f32 %v7002_v57, %v5648_v62  ;;  %v8701_v62 = vld [vmem:[%s8960_s27 + $0x70] sm:$0xff]  }
 0xca8   : > { %v8702_v0 = vld [vmem:[%s8960_s27 + $0xf0] sm:$0xff]  }
 0xca9   : > { %8279 = vmatmul.mubr.f32.vlgmr.msra.gmra.mxu1 %v5657_v2 }
 0xcaa   : > { %6066 = vmatpush1.bf16.msra.mxu1 %v8649_v15  ;;  %6097 = vmatprep.mubr.bf16.mxu1 %v8811_v32  ;;  %v8704_v15 = vld [vmem:[%s8960_s27 + $0xb0] sm:$0xff]  }
 0xcab   : > { %6067 = vmatprep.subr.bf16.mxu1 %v8657_v7  ;;  %v8707_v7 = vld [vmem:[%s8960_s27 + $0x28] sm:$0xff]  }
 0xcae   : > { %6068 = vmatpush1.bf16.msra.mxu1 %v8655_v8  ;;  %v8708_v8 = vld [vmem:[%s8960_s27 + $0xa8] sm:$0xff]  }
 0xcaf   : > { %6069 = vmatprep.subr.bf16.mxu1 %v8663_v55  ;;  %v8719_v55 = vld [vmem:[%s8960_s27 + $0x10] sm:$0xff]  }
 0xcb2   : > { %6070 = vmatpush1.bf16.msra.mxu1 %v8661_v21  ;;  %v8718_v21 = vld [vmem:[%s8960_s27 + $0xd0] sm:$0xff]  }
 0xcb3   : > { %6071 = vmatprep.subr.bf16.mxu1 %v8669_v24  ;;  %v8722_v24 = vld [vmem:[%s8960_s27 + $0xc8] sm:$0xff]  }
 0xcb6   : > { %6072 = vmatpush1.bf16.msra.mxu1 %v8667_v26  ;;  %v8724_v26 = vld [vmem:[%s8960_s27 + $0x88] sm:$0xff]  }
 0xcb7   : > { %6073 = vmatprep.subr.bf16.mxu1 %v8675_v28  ;;  %v8726_v28 = vld [vmem:[%s8960_s27 + $0xc0] sm:$0xff]  }
 0xcba   : > { %6074 = vmatpush1.bf16.msra.mxu1 %v8673_v56  ;;  %v8728_v56 = vld [vmem:[%s8960_s27 + $0x80] sm:$0xff]  }
 0xcbb   : > { %6075 = vmatprep.subr.bf16.mxu1 %v8681_v30  ;;  %v5895_v30 = vsub.s32 2, %v9247_v16 }
 0xcbe   : > { %6076 = vmatpush1.bf16.msra.mxu1 %v8679_v33  ;;  %v5899_v33 = vsub.s32 3, %v9247_v16 }
 0xcbf   : > { %6077 = vmatprep.subr.bf16.mxu1 %v8687_v35 }
 0xcc2   : > { %6078 = vmatpush1.bf16.msra.mxu1 %v8685_v37 }
 0xcc3   : > { %6079 = vmatprep.subr.bf16.mxu1 %v8693_v39 }
 0xcc6   : > { %6080 = vmatpush1.bf16.msra.mxu1 %v8691_v41 }
 0xcc7   : > { %7449 = vmatprep.subr.bf16.mxu1 %v8697_v58 }
 0xd69   : > { %v8280_v9 = vpop.f32.mrf.mxu1 }
 0xd6a   : > { %v9858_v1 = vsub.f32 %v5657_v2, %v8280_v9  ;;  %v8703_v2 = vld [vmem:[%s8960_s27 + $0x30] sm:$0xff]   ;;  %v8709_v9 = vld [vmem:[%s8960_s27 + $0x60] sm:$0xff]  }
 0xd6b   : > { %v5740_v10 = vpop.f32.mrf.mxu1 }
 0xd6c   : > { %v9860_v12 = vsub.f32 %v5656_v59, %v5740_v10  ;;  %v5752_v17 = vmul.f32 %v9858_v1, %v9858_v1  ;;  %v8698_v59 = vld [vmem:[%s8960_s27 + $0xf8] sm:$0xff]   ;;  %v8711_v10 = vld [vmem:[%s8960_s27 + $0x20] sm:$0xff]  }
 0xd6e   : > { %v5751_v13 = vmul.f32 %v9860_v12, %v9860_v12 }
 0xd70   : > { %8313 = vmatprep.mubr.f32.mxu0 %v5751_v13  ;;  %v8713_v13 = vld [vmem:[%s8960_s27 + $0x58] sm:$0xff]  }
 0xd71   : > { %8314 = vmatmul.mubr.f32.vlgmr.msra.gmra.mxu0 %v5752_v17  ;;  %v8715_v17 = vld [vmem:[%s8960_s27 + $0x18] sm:$0xff]  }
 0xd72   : > { %6109 = vmatpush1.bf16.msra.mxu0 %v8652_v14  ;;  %6140 = vmatprep.mubr.bf16.mxu0 %v8811_v32  ;;  %v8714_v14 = vld [vmem:[%s8960_s27 + $0xd8] sm:$0xff]   ;;  %v5891_v32 = vsub.s32 1, %v9247_v16 }
 0xd73   : > { %6110 = vmatprep.subr.bf16.mxu0 %v8660_v19  ;;  %v8716_v19 = vld [vmem:[%s8960_s27 + $0x98] sm:$0xff]  }
 0xd76   : > { %6111 = vmatpush1.bf16.msra.mxu0 %v8658_v20  ;;  %v8717_v20 = vld [vmem:[%s8960_s27 + $0x50] sm:$0xff]  }
 0xd77   : > { %6112 = vmatprep.subr.bf16.mxu0 %v8666_v23  ;;  %v8721_v23 = vld [vmem:[%s8960_s27 + $0x48] sm:$0xff]  }
 0xd7a   : > { %6113 = vmatpush1.bf16.msra.mxu0 %v8664_v22  ;;  %v8720_v22 = vld [vmem:[%s8960_s27 + $0x90] sm:$0xff]  }
 0xd7b   : > { %6114 = vmatprep.subr.bf16.mxu0 %v8672_v25  ;;  %v8723_v25 = vld [vmem:[%s8960_s27 + $0x8] sm:$0xff]  }
 0xd7e   : > { %6115 = vmatpush1.bf16.msra.mxu0 %v8670_v27  ;;  %v8725_v27 = vld [vmem:[%s8960_s27 + $0x40] sm:$0xff]  }
 0xd7f   : > { %6116 = vmatprep.subr.bf16.mxu0 %v8678_v11  ;;  %v8727_v11 = vld [vmem:[%s8960_s27] sm:$0xff]  }
 0xd82   : > { %6117 = vmatpush1.bf16.msra.mxu0 %v8676_v29  ;;  %v5887_v29 = vsub.s32 0, %v9247_v16 }
 0xd83   : > { %6118 = vmatprep.subr.bf16.mxu0 %v8684_v31  ;;  %v5883_v31 = vld [vmem:[%s8955_s20] sm:$0xf] }
 0xd84   : > { %v5896_v35 = vrot.slane %v5883_v31, %v5895_v30  ;;  %v5900_v37 = vrot.slane %v5883_v31, %v5899_v33 }
 0xd86   : > { %6119 = vmatpush1.bf16.msra.mxu0 %v8682_v34  ;;  %v5888_v34 = vrot.slane %v5883_v31, %v5887_v29 }
 0xd87   : > { %6120 = vmatprep.subr.bf16.mxu0 %v8690_v36  ;;  %v5892_v36 = vrot.slane %v5883_v31, %v5891_v32 }
 0xd8a   : > { %6121 = vmatpush1.bf16.msra.mxu0 %v8688_v38 }
 0xd8b   : > { %6122 = vmatprep.subr.bf16.mxu0 %v8696_v40 }
 0xd8e   : > { %6123 = vmatpush1.bf16.msra.mxu0 %v8694_v42 }
 0xd8f   : > { %7471 = vmatprep.subr.bf16.mxu0 %v8698_v59 }
 0xe31   : > { %v8315_v4 = vpop.f32.mrf.mxu0 }
 0xe32   : > { %v5825_v43 = vadd.f32 1e-06, %v8315_v4 }
 0xe33   : > { %v5819_v44 = vpop.f32.mrf.mxu0 }
 0xe34   : > { %8751 = vrsqrt.f32 %v5825_v43  ;;  %v5820_v45 = vadd.f32 1e-06, %v5819_v44 }
 0xe36   : > { %8753 = vrsqrt.f32 %v5820_v45 }
 0xe41   : > { %v8752_v50 = vpop.eup %8751 }
 0xe42   : > { %v5831_v49 = vmul.f32 %v8752_v50, %v9858_v1  ;;  %v8710_v1 = vld [vmem:[%s8960_s27 + $0xe0] sm:$0xff]  }
 0xe43   : > { %v8754_v63 = vpop.eup %8753 }
 0xe44   : > { %v5830_v6 = vmul.f32 %v8754_v63, %v9860_v12  ;;  %v5840_v51 = vmul.f32 %v7003_v48, %v5831_v49  ;;  %v8712_v12 = vld [vmem:[%s8960_s27 + $0xa0] sm:$0xff]  }
 0xe46   : > { %v5839_v53 = vmul.f32 %v7003_v48, %v5830_v6  ;;  %v5849_v57 = vadd.f32 %v7004_v52, %v5840_v51 }
 0xe48   : > { %v5848_v18 = vadd.f32 %v7004_v52, %v5839_v53 }
 0xe4a   : > { %v5850_v54 = vpack.c.bf16 %v5849_v57, %v5848_v18 }
 0xe4c   : > { %6098 = vmatmul.mubr.bf16.vlgmr.msra.gmra.mxu1 %v5850_v54  ;;  %6141 = vmatmul.mubr.bf16.vlgmr.msra.gmra.mxu0 %v5850_v54 }
 0xe4d   : > { %7450 = vmatpush3.bf16.msra.mxu1 %v8699_v60  ;;  %7472 = vmatpush3.bf16.msra.mxu0 %v8700_v61 }
 0xe4e   : > { %7451 = vmatprep.subr.bf16.mxu1 %v8701_v62  ;;  %7473 = vmatprep.subr.bf16.mxu0 %v8702_v0 }
 0xe51   : > { %7452 = vmatpush3.bf16.msra.mxu1 %v8703_v2  ;;  %7474 = vmatpush3.bf16.msra.mxu0 %v8704_v15 }
 0xe52   : > { %7453 = vmatprep.subr.bf16.mxu1 %v8705_v3  ;;  %7475 = vmatprep.subr.bf16.mxu0 %v8706_v5 }
 0xe55   : > { %7454 = vmatpush3.bf16.msra.mxu1 %v8707_v7  ;;  %7476 = vmatpush3.bf16.msra.mxu0 %v8708_v8 }
 0xe56   : > { %7455 = vmatprep.subr.bf16.mxu1 %v8709_v9  ;;  %7477 = vmatprep.subr.bf16.mxu0 %v8710_v1 }
 0xe59   : > { %7456 = vmatpush3.bf16.msra.mxu1 %v8711_v10  ;;  %7478 = vmatpush3.bf16.msra.mxu0 %v8712_v12 }
 0xe5a   : > { %7457 = vmatprep.subr.bf16.mxu1 %v8713_v13  ;;  %7479 = vmatprep.subr.bf16.mxu0 %v8714_v14 }
 0xe5d   : > { %7458 = vmatpush3.bf16.msra.mxu1 %v8715_v17  ;;  %7480 = vmatpush3.bf16.msra.mxu0 %v8716_v19 }
 0xe5e   : > { %7459 = vmatprep.subr.bf16.mxu1 %v8717_v20  ;;  %7481 = vmatprep.subr.bf16.mxu0 %v8718_v21 }
 0xe61   : > { %7460 = vmatpush3.bf16.msra.mxu1 %v8719_v55  ;;  %7482 = vmatpush3.bf16.msra.mxu0 %v8720_v22 }
 0xe62   : > { %7461 = vmatprep.subr.bf16.mxu1 %v8721_v23  ;;  %7483 = vmatprep.subr.bf16.mxu0 %v8722_v24 }
 0xe65   : > { %7462 = vmatpush3.bf16.msra.mxu1 %v8723_v25  ;;  %7484 = vmatpush3.bf16.msra.mxu0 %v8724_v26 }
 0xe66   : > { %7463 = vmatprep.subr.bf16.mxu1 %v8725_v27  ;;  %7485 = vmatprep.subr.bf16.mxu0 %v8726_v28 }
 0xe69   : > { %7464 = vmatpush3.bf16.msra.mxu1 %v8727_v11  ;;  %7486 = vmatpush3.bf16.msra.mxu0 %v8728_v56 }
 0xf0c   : > { %v6099_v38 = vpop.f32.mrf.mxu1  ;;  %v6142_v39 = vpop.f32.mrf.mxu0 }
 0xf0d   : > { %v9934_v40 = vadd.f32 %v6099_v38, %v5888_v34  ;;  %v9936_v41 = vadd.f32 %v6142_v39, %v5896_v35 }
 0xf0e   : > { %v6101_v42 = vpop.f32.mrf.mxu1  ;;  %v6144_v4 = vpop.f32.mrf.mxu0 }
 0xf0f   : > { %v6151_v43 = vmul.f32 %v9934_v40, %v9934_v40  ;;  %v6153_v44 = vmul.f32 %v9936_v41, %v9936_v41  ;;  %v9942_v45 = vadd.f32 %v6101_v42, %v5892_v36  ;;  %v9944_v16 = vadd.f32 %v6144_v4, %v5900_v37 }
 0xf10   : > { %v6103_v50 = vpop.f32.mrf.mxu1  ;;  %v6146_v48 = vpop.f32.mrf.mxu0 }
 0xf11   : > { %v6159_v49 = vmul.f32 %v6151_v43, %v9934_v40  ;;  %v6161_v63 = vmul.f32 %v6153_v44, %v9936_v41  ;;  %v6152_v6 = vmul.f32 %v9942_v45, %v9942_v45  ;;  %v6154_v51 = vmul.f32 %v9944_v16, %v9944_v16 }
 0xf12   : > { %v9952_v52 = vadd.f32 %v6103_v50, %v5888_v34  ;;  %v9954_v53 = vadd.f32 %v6146_v48, %v5896_v35  ;;  %v6105_v18 = vpop.f32.mrf.mxu1  ;;  %v6148_v57 = vpop.f32.mrf.mxu0 }
 0xf13   : > { %v6167_v54 = vmul.f32 0.044715, %v6159_v49  ;;  %v6169_v58 = vmul.f32 0.044715, %v6161_v63  ;;  %v6160_v59 = vmul.f32 %v6152_v6, %v9942_v45  ;;  %v6162_v60 = vmul.f32 %v6154_v51, %v9944_v16 }
 0xf14   : > { %v6155_v61 = vmul.f32 %v9952_v52, %v9952_v52  ;;  %v6157_v62 = vmul.f32 %v9954_v53, %v9954_v53  ;;  %v9962_v0 = vadd.f32 %v6105_v18, %v5892_v36  ;;  %v9964_v2 = vadd.f32 %v6148_v57, %v5900_v37 }
 0xf15   : > { %v6175_v15 = vadd.f32 %v6167_v54, %v9934_v40  ;;  %v6177_v3 = vadd.f32 %v6169_v58, %v9936_v41  ;;  %v6168_v5 = vmul.f32 0.044715, %v6160_v59  ;;  %v6170_v7 = vmul.f32 0.044715, %v6162_v60 }
 0xf16   : > { %v6163_v8 = vmul.f32 %v6155_v61, %v9952_v52  ;;  %v6165_v9 = vmul.f32 %v6157_v62, %v9954_v53  ;;  %v6156_v1 = vmul.f32 %v9962_v0, %v9962_v0  ;;  %v6158_v10 = vmul.f32 %v9964_v2, %v9964_v2 }
 0xf17   : > { %v6183_v12 = vmul.f32 0.7978846, %v6175_v15  ;;  %v6185_v13 = vmul.f32 0.7978846, %v6177_v3  ;;  %v6176_v14 = vadd.f32 %v6168_v5, %v9942_v45  ;;  %v6178_v17 = vadd.f32 %v6170_v7, %v9944_v16 }
 0xf18   : > { %v6171_v19 = vmul.f32 0.044715, %v6163_v8  ;;  %v6173_v20 = vmul.f32 0.044715, %v6165_v9  ;;  %v6164_v21 = vmul.f32 %v6156_v1, %v9962_v0  ;;  %v6166_v55 = vmul.f32 %v6158_v10, %v9964_v2 }
 0xf19   : > { %8755 = vtanh.f32 %v6183_v12  ;;  %v6184_v22 = vmul.f32 0.7978846, %v6176_v14  ;;  %v6186_v23 = vmul.f32 0.7978846, %v6178_v17 }
 0xf1a   : > { %8757 = vtanh.f32 %v6185_v13  ;;  %v6179_v24 = vadd.f32 %v6171_v19, %v9952_v52  ;;  %v6181_v25 = vadd.f32 %v6173_v20, %v9954_v53  ;;  %v6172_v26 = vmul.f32 0.044715, %v6164_v21 }
 0xf1b   : > { %8759 = vtanh.f32 %v6184_v22  ;;  %v6174_v27 = vmul.f32 0.044715, %v6166_v55 }
 0xf1c   : > { %8761 = vtanh.f32 %v6186_v23  ;;  %v6187_v28 = vmul.f32 0.7978846, %v6179_v24  ;;  %v6189_v11 = vmul.f32 0.7978846, %v6181_v25  ;;  %v6180_v56 = vadd.f32 %v6172_v26, %v9962_v0 }
 0xf1d   : > { %v6182_v29 = vadd.f32 %v6174_v27, %v9964_v2 }
 0xf1e   : > { %8763 = vtanh.f32 %v6187_v28  ;;  %v6188_v30 = vmul.f32 0.7978846, %v6180_v56 }
 0xf1f   : > { %8765 = vtanh.f32 %v6189_v11  ;;  %v6190_v31 = vmul.f32 0.7978846, %v6182_v29 }
 0xf20   : > { %8767 = vtanh.f32 %v6188_v30 }
 0xf21   : > { %8769 = vtanh.f32 %v6190_v31 }
 0xf26   : > { %v8756_v32 = vpop.eup %8755 }
 0xf27   : > { %v8758_v33 = vpop.eup %8757  ;;  %v6199_v38 = vadd.f32 1.0, %v8756_v32 }
 0xf28   : > { %v8760_v34 = vpop.eup %8759  ;;  %v6201_v4 = vadd.f32 1.0, %v8758_v33 }
 0xf29   : > { %v8762_v35 = vpop.eup %8761  ;;  %v6200_v36 = vadd.f32 1.0, %v8760_v34  ;;  %v6207_v51 = vmul.f32 0.5, %v6199_v38 }
 0xf2a   : > { %v6202_v39 = vadd.f32 1.0, %v8762_v35  ;;  %v6209_v58 = vmul.f32 0.5, %v6201_v4 }
 0xf2b   : > { %v8764_v37 = vpop.eup %8763  ;;  %v6208_v6 = vmul.f32 0.5, %v6200_v36  ;;  %v6215_v5 = vmul.f32 %v6207_v51, %v9934_v40 }
 0xf2c   : > { %v8766_v42 = vpop.eup %8765  ;;  %v6203_v43 = vadd.f32 1.0, %v8764_v37  ;;  %v6210_v54 = vmul.f32 0.5, %v6202_v39  ;;  %v6217_v9 = vmul.f32 %v6209_v58, %v9936_v41 }
 0xf2d   : > { %v8768_v44 = vpop.eup %8767  ;;  %v6205_v50 = vadd.f32 1.0, %v8766_v42  ;;  %v6216_v15 = vmul.f32 %v6208_v6, %v9942_v45 }
 0xf2e   : > { %v8770_v48 = vpop.eup %8769  ;;  %v6211_v49 = vmul.f32 0.5, %v6203_v43  ;;  %v6204_v63 = vadd.f32 1.0, %v8768_v44  ;;  %v6218_v7 = vmul.f32 %v6210_v54, %v9944_v16 }
 0xf2f   : > { %v6213_v18 = vmul.f32 0.5, %v6205_v50  ;;  %v6206_v57 = vadd.f32 1.0, %v8770_v48 }
 0xf30   : > { %v6212_v59 = vmul.f32 0.5, %v6204_v63  ;;  %v6219_v60 = vmul.f32 %v6211_v49, %v9952_v52 }
 0xf31   : > { %v6214_v61 = vmul.f32 0.5, %v6206_v57  ;;  %v6221_v62 = vmul.f32 %v6213_v18, %v9954_v53 }
 0xf32   : > { %v6220_v3 = vmul.f32 %v6212_v59, %v9962_v0  ;;  %v6223_v12 = vpack.c.bf16 %v6219_v60, %v6215_v5  ;;  %v7037_v0 = vld [vmem:[%s8965_s4] ss:$0 sm:$0xff] }
 0xf33   : > { %v6222_v8 = vmul.f32 %v6214_v61, %v9964_v2  ;;  %v6225_v52 = vpack.c.bf16 %v6221_v62, %v6217_v9 }
 0xf34   : > { %v6224_v1 = vpack.c.bf16 %v6220_v3, %v6216_v15 }
 0xf35   : > { %v6226_v10 = vpack.c.bf16 %v6222_v8, %v6218_v7 }
 0xf36   : > { %6522 = vmatprep.mubr.bf16.mxu1 %v6224_v1 }
 0xf37   : > { %6563 = vmatprep.mubr.bf16.mxu0 %v6226_v10  ;;  %6523 = vmatmul.mubr.bf16.vlgmr.msra.gmra.mxu1 %v6223_v12 }
 0xf38   : > { %6564 = vmatmul.mubr.bf16.vlgmr.msra.gmra.mxu0 %v6225_v52 }
 0xff7   : > { %v7465_v45 = vpop.f32.mrf.mxu1 }
 0xff8   : > { %v7487_v53 = vpop.f32.mrf.mxu0 }
 0xff9   : > { %v7466_v40 = vpop.f32.mrf.mxu1 }
 0xffa   : > { %v7467_v13 = vadd.f32 %v7466_v40, %v7465_v45  ;;  %v7488_v16 = vpop.f32.mrf.mxu0 }
 0xffb   : > { %v7468_v14 = vpop.f32.mrf.mxu1  ;;  %v7489_v17 = vadd.f32 %v7488_v16, %v7487_v53 }
 0xffc   : > { %v6525_v2 = vadd.f32 %v7467_v13, %v7037_v0  ;;  %v7490_v41 = vpop.f32.mrf.mxu0 }
 0xffd   : > { %v7469_v19 = vpop.f32.mrf.mxu1 }
 0xffe   : > { %v6566_v20 = vadd.f32 %v7489_v17, %v6525_v2  ;;  %v7470_v21 = vadd.f32 %v7469_v19, %v7468_v14  ;;  %v7491_v55 = vpop.f32.mrf.mxu0 }
 0xfff   : > { %v7492_v24 = vadd.f32 %v7491_v55, %v7490_v41 }
0x1000   : > { %v6572_v22 = vadd.f32 %v6566_v20, %v9699_v46  ;;  %v6528_v23 = vadd.f32 %v7470_v21, %v7037_v0 }
0x1002   : > { %6574 = vst [vmem:[%s958_s23] sm:$0xff] %v6572_v22  ;;  %v6569_v25 = vadd.f32 %v7492_v24, %v6528_v23 }
0x1004   : > { %v6573_v26 = vadd.f32 %v6569_v25, %v9701_v47 }
0x1006   : > { %6575 = vst [vmem:[%s958_s23 + $0x8] sm:$0xff] %v6573_v26 }
0x1007 PF: > { %s71_s15 = sadd.s32 1, %s8777_s15  }
0x1008   : > { %p68_p4 = scmp.ge.s32.totalorder %s71_s15, 4  }
0x100a   :  { %70 = sbr.rel (!%p68_p4) target bundleno = 53 (0x35), region = 206 }

</bundles_post_ra>
